<compile_context>
chip_gen: v7x
topology: tpu7x:2x2x1
jax: 0.10.0
libtpu: 0.0.40
codegen_flags: <defaults>
</compile_context>

<pallas_src>
import math

import jax
import jax.numpy as jnp
from jax import lax
from jax.experimental import pallas as pl
from jax.experimental.pallas import tpu as pltpu

NUM_HEADS = 4


def _dot(a, b):
    return jnp.dot(a, b, preferred_element_type=jnp.float32)


def _dot_nt(a, b):
    # a @ b.T without materializing a transpose.
    return lax.dot_general(a, b, (((1,), (1,)), ((), ())),
                           preferred_element_type=jnp.float32)


def _callosum_kernel(
    alpha_ref,                     # SMEM (1,) scalar-prefetch
    left_ref, right_ref,           # (1, TQ, F), (1, S, F)
    wl_ref, bl_ref, wr_ref, br_ref,
    wqg_ref, bqg_ref, wg2_ref,     # fused [Wq | Wg1], [bq | bg], Wg2
    wkv_ref, bkv_ref,              # fused [Wk | Wv], [bk | bv]
    wo_ref, bo_ref,
    wf1_ref, wf2_ref, bf_ref,
    out_ref,                       # (1, TQ, fd)
    re_sc, kv_sc,                  # VMEM scratch: (S, fd), (S, 2*fd) resident per batch
):
    fd = wl_ref.shape[1]
    hs = fd // NUM_HEADS
    inv_sqrt_fd = 1.0 / math.sqrt(fd)
    inv_sqrt_hs = 1.0 / math.sqrt(hs)

    # --- right-side projections: computed once per batch element, kept resident ---
    @pl.when(pl.program_id(1) == 0)
    def _():
        right = right_ref[0]                                    # (S, F)
        re_full = _dot(right, wr_ref[...]) + br_ref[...]        # (S, fd)
        re_sc[...] = re_full
        kv_sc[...] = _dot(re_full, wkv_ref[...]) + bkv_ref[...] # (S, 2*fd) = [K | V]

    left = left_ref[0]                                          # (TQ, F)
    tq = left.shape[0]
    re = re_sc[...]                                             # (S, fd)

    # --- left projection on this query-row tile ---
    le = _dot(left, wl_ref[...]) + bl_ref[...]                  # (TQ, fd)

    # --- cross alignment softmax (deferred normalization) ---
    scores = _dot_nt(le, re) * inv_sqrt_fd                      # (TQ, S)
    p = jnp.exp(scores - jnp.max(scores, axis=-1, keepdims=True))
    la = _dot(p, re) * pl.reciprocal(jnp.sum(p, axis=-1, keepdims=True), approx=True)

    # --- alpha-weighted fusion (alpha scalar read from SMEM) ---
    alpha = jax.nn.sigmoid(jnp.full((1, 1), alpha_ref[0], dtype=jnp.float32))
    weighted = alpha * le + (1.0 - alpha) * la

    # --- fused q / gate projection sharing LHS `le`: [q | le@Wg1+bg] ---
    qg = _dot(le, wqg_ref[...]) + bqg_ref[...]                  # (TQ, 2*fd)
    q = qg[:, :fd]
    gate = jax.nn.sigmoid(qg[:, fd:] + _dot(la, wg2_ref[...]))
    gated = gate * le + (1.0 - gate) * la

    # --- multi-head attention: q from le; K,V resident in kv_sc.
    #     Per-head context accumulates through Wo row-slices (no lane concat). ---
    attentive = jnp.zeros((tq, fd), jnp.float32) + bo_ref[...]
    for h in range(NUM_HEADS):                                  # static unrolled head loop
        qh = q[:, h * hs:(h + 1) * hs]                          # (TQ, hs)
        kh = kv_sc[:, h * hs:(h + 1) * hs]                      # (S, hs)
        vh = kv_sc[:, fd + h * hs: fd + (h + 1) * hs]           # (S, hs)
        sh = _dot_nt(qh, kh) * inv_sqrt_hs                      # (TQ, S)
        ph = jnp.exp(sh - jnp.max(sh, axis=-1, keepdims=True))
        ctx = _dot(ph, vh) * pl.reciprocal(jnp.sum(ph, axis=-1, keepdims=True), approx=True)
        attentive = attentive + _dot(ctx, wo_ref[h * hs:(h + 1) * hs, :])

    # --- fusion layer over [weighted | gated] (split matmuls) + 0.1 * attentive ---
    fused = _dot(weighted, wf1_ref[...]) + _dot(gated, wf2_ref[...]) + bf_ref[...]
    out_ref[0] = (fused + 0.1 * attentive).astype(out_ref.dtype)


def corpus_callosum_forward(left, right, params, *, tq=None):
    """left, right: (B, S, feature_dim) f32 -> (B, S, fusion_dim) f32."""
    B, S, F = left.shape
    fd = params["wl"].shape[1]
    assert fd % NUM_HEADS == 0

    if tq is None:
        tq = S
        for cand in (256, 128, 64, 32, 16, 8):
            if S % cand == 0:
                tq = cand
                break
    assert S % tq == 0, "sequence length must be divisible by the query-row tile"
    assert tq % 8 == 0 or tq == S, "query-row tile must be a multiple of 8"

    # Fuse matmuls that share a LHS.
    wqg = jnp.concatenate([params["wq"], params["wg1"]], axis=1)   # (fd, 2fd)
    bqg = jnp.concatenate([params["bq"], params["bg"]], axis=1)    # (1, 2fd)
    wkv = jnp.concatenate([params["wk"], params["wv"]], axis=1)    # (fd, 2fd)
    bkv = jnp.concatenate([params["bk"], params["bv"]], axis=1)    # (1, 2fd)
    alpha = params["alpha"].reshape(-1).astype(jnp.float32)        # (1,) -> SMEM prefetch

    ordered = [
        left, right,
        params["wl"], params["bl"], params["wr"], params["br"],
        wqg, bqg, params["wg2"],
        wkv, bkv,
        params["wo"], params["bo"],
        params["wf1"], params["wf2"], params["bf"],
    ]

    full2d = lambda a: pl.BlockSpec(a.shape, lambda b, qi, alpha_ref: (0, 0))
    in_specs = (
        [pl.BlockSpec((1, tq, F), lambda b, qi, alpha_ref: (b, qi, 0)),
         pl.BlockSpec((1, S, F), lambda b, qi, alpha_ref: (b, 0, 0))]
        + [full2d(a) for a in ordered[2:]]
    )

    return pl.pallas_call(
        _callosum_kernel,
        out_shape=jax.ShapeDtypeStruct((B, S, fd), jnp.float32),
        grid_spec=pltpu.PrefetchScalarGridSpec(
            num_scalar_prefetch=1,
            grid=(B, S // tq),
            in_specs=in_specs,
            out_specs=pl.BlockSpec((1, tq, fd), lambda b, qi, alpha_ref: (b, qi, 0)),
            scratch_shapes=[
                pltpu.VMEM((S, fd), jnp.float32),       # resident right_encoded
                pltpu.VMEM((S, 2 * fd), jnp.float32),   # resident [K | V]
            ],
        ),
        compiler_params=pltpu.CompilerParams(
            dimension_semantics=("parallel", "arbitrary"),
            vmem_limit_bytes=64 * 1024 * 1024,
        ),
    )(alpha, *ordered)


def _linear_init(key, fan_in, fan_out):
    """Mimic torch.nn.Linear default init; returns (W[in,out], b[1,out])."""
    kw, kb = jax.random.split(key)
    bound = 1.0 / math.sqrt(fan_in)
    w = jax.random.uniform(kw, (fan_in, fan_out), jnp.float32, -bound, bound)
    b = jax.random.uniform(kb, (1, fan_out), jnp.float32, -bound, bound)
    return w, b


def make_params(key, feature_dim, fusion_dim):
    keys = jax.random.split(key, 8)
    wl, bl = _linear_init(keys[0], feature_dim, fusion_dim)
    wr, br = _linear_init(keys[1], feature_dim, fusion_dim)
    wg, bg = _linear_init(keys[2], 2 * fusion_dim, fusion_dim)
    wf, bf = _linear_init(keys[3], 2 * fusion_dim, fusion_dim)
    wq, bq = _linear_init(keys[4], fusion_dim, fusion_dim)
    wk, bk = _linear_init(keys[5], fusion_dim, fusion_dim)
    wv, bv = _linear_init(keys[6], fusion_dim, fusion_dim)
    wo, bo = _linear_init(keys[7], fusion_dim, fusion_dim)
    return dict(
        alpha=jnp.zeros((1,), jnp.float32),  # torch.zeros(1) -> sigmoid = 0.5
        wl=wl, bl=bl, wr=wr, br=br,
        wg1=wg[:fusion_dim], wg2=wg[fusion_dim:], bg=bg,
        wq=wq, bq=bq, wk=wk, bk=bk, wv=wv, bv=bv, wo=wo, bo=bo,
        wf1=wf[:fusion_dim], wf2=wf[fusion_dim:], bf=bf,
    )


def reference_forward(left, right, p):
    """Pure-JAX reference matching the PyTorch forward."""
    fd = p["wl"].shape[1]
    le = left @ p["wl"] + p["bl"]
    re = right @ p["wr"] + p["br"]
    align = jax.nn.softmax(jnp.einsum("bsd,btd->bst", le, re) / math.sqrt(fd), axis=-1)
    la = jnp.einsum("bst,btd->bsd", align, re)
    alpha = jax.nn.sigmoid(p["alpha"][0])
    weighted = alpha * le + (1 - alpha) * la
    gate = jax.nn.sigmoid(le @ p["wg1"] + la @ p["wg2"] + p["bg"])
    gated = gate * le + (1 - gate) * la
    hs = fd // NUM_HEADS
    B, S, _ = le.shape

    def heads(x):
        return x.reshape(B, S, NUM_HEADS, hs).transpose(0, 2, 1, 3)

    q = heads(le @ p["wq"] + p["bq"])
    k = heads(re @ p["wk"] + p["bk"])
    v = heads(re @ p["wv"] + p["bv"])
    a = jax.nn.softmax(jnp.einsum("bhqd,bhkd->bhqk", q, k) / math.sqrt(hs), axis=-1)
    ctx = jnp.einsum("bhqk,bhkd->bhqd", a, v).transpose(0, 2, 1, 3).reshape(B, S, fd)
    attentive = ctx @ p["wo"] + p["bo"]
    fused = weighted @ p["wf1"] + gated @ p["wf2"] + p["bf"]
    return fused + 0.1 * attentive


if __name__ == "__main__":
    # Small but lane-dense shapes (fusion_dim multiple of 128; 2 query-row tiles per batch).
    B, S, FEATURE_DIM, FUSION_DIM, TQ = 2, 128, 64, 128, 64

    key = jax.random.PRNGKey(0)
    k_left, k_right, k_params = jax.random.split(key, 3)
    left = jax.random.normal(k_left, (B, S, FEATURE_DIM), jnp.float32)
    right = jax.random.normal(k_right, (B, S, FEATURE_DIM), jnp.float32)
    params = make_params(k_params, FEATURE_DIM, FUSION_DIM)

    out = corpus_callosum_forward(left, right, params, tq=TQ)
    out = jax.block_until_ready(out)

    ref = reference_forward(left, right, params)
    assert out.shape == (B, S, FUSION_DIM)
    max_err = float(jnp.max(jnp.abs(out - ref)))
    # Tolerance accounts for pl.reciprocal(approx=True) in the softmax epilogues.
    assert jnp.allclose(out, ref, atol=5e-3, rtol=5e-3), f"mismatch vs reference (max abs err {max_err})"

    print("KERNEL_OK")
</pallas_src>

<mosaic_0001>
module attributes {stable_mosaic.version = 11 : i64} {
  func.func @_callosum_kernel(%arg0: i32, %arg1: i32, %arg2: memref<1xf32, #tpu.memory_space<smem>>, %arg3: memref<1x64x64xf32, #tpu.memory_space<vmem>>, %arg4: memref<1x128x64xf32, #tpu.memory_space<vmem>>, %arg5: memref<64x128xf32, #tpu.memory_space<vmem>>, %arg6: memref<1x128xf32, #tpu.memory_space<vmem>>, %arg7: memref<64x128xf32, #tpu.memory_space<vmem>>, %arg8: memref<1x128xf32, #tpu.memory_space<vmem>>, %arg9: memref<128x256xf32, #tpu.memory_space<vmem>>, %arg10: memref<1x256xf32, #tpu.memory_space<vmem>>, %arg11: memref<128x128xf32, #tpu.memory_space<vmem>>, %arg12: memref<128x256xf32, #tpu.memory_space<vmem>>, %arg13: memref<1x256xf32, #tpu.memory_space<vmem>>, %arg14: memref<128x128xf32, #tpu.memory_space<vmem>>, %arg15: memref<1x128xf32, #tpu.memory_space<vmem>>, %arg16: memref<128x128xf32, #tpu.memory_space<vmem>>, %arg17: memref<128x128xf32, #tpu.memory_space<vmem>>, %arg18: memref<1x128xf32, #tpu.memory_space<vmem>>, %arg19: memref<1x64x128xf32, #tpu.memory_space<vmem>>, %arg20: memref<128x128xf32, #tpu.memory_space<vmem>>, %arg21: memref<128x256xf32, #tpu.memory_space<vmem>>) attributes {dimension_semantics = [#tpu.dimension_semantics<parallel>, #tpu.dimension_semantics<arbitrary>], iteration_bounds = array<i64: 2, 2>, scalar_prefetch = 1 : i64, scratch_operands = 2 : i64, tpu.core_type = #tpu.core_type<tc>, window_params = [{transform_indices = @transform_0, window_bounds = array<i64: 1, 64, 64>}, {transform_indices = @transform_1, window_bounds = array<i64: 1, 128, 64>}, {pipeline_mode = #tpu.pipeline_mode<synchronous>, transform_indices = @transform_2, window_bounds = array<i64: 64, 128>}, {pipeline_mode = #tpu.pipeline_mode<synchronous>, transform_indices = @transform_3, window_bounds = array<i64: 1, 128>}, {pipeline_mode = #tpu.pipeline_mode<synchronous>, transform_indices = @transform_4, window_bounds = array<i64: 64, 128>}, {pipeline_mode = #tpu.pipeline_mode<synchronous>, transform_indices = @transform_5, window_bounds = array<i64: 1, 128>}, {pipeline_mode = #tpu.pipeline_mode<synchronous>, transform_indices = @transform_6, window_bounds = array<i64: 128, 256>}, {pipeline_mode = #tpu.pipeline_mode<synchronous>, transform_indices = @transform_7, window_bounds = array<i64: 1, 256>}, {pipeline_mode = #tpu.pipeline_mode<synchronous>, transform_indices = @transform_8, window_bounds = array<i64: 128, 128>}, {pipeline_mode = #tpu.pipeline_mode<synchronous>, transform_indices = @transform_9, window_bounds = array<i64: 128, 256>}, {pipeline_mode = #tpu.pipeline_mode<synchronous>, transform_indices = @transform_10, window_bounds = array<i64: 1, 256>}, {pipeline_mode = #tpu.pipeline_mode<synchronous>, transform_indices = @transform_11, window_bounds = array<i64: 128, 128>}, {pipeline_mode = #tpu.pipeline_mode<synchronous>, transform_indices = @transform_12, window_bounds = array<i64: 1, 128>}, {pipeline_mode = #tpu.pipeline_mode<synchronous>, transform_indices = @transform_13, window_bounds = array<i64: 128, 128>}, {pipeline_mode = #tpu.pipeline_mode<synchronous>, transform_indices = @transform_14, window_bounds = array<i64: 128, 128>}, {pipeline_mode = #tpu.pipeline_mode<synchronous>, transform_indices = @transform_15, window_bounds = array<i64: 1, 128>}, {transform_indices = @transform_16, window_bounds = array<i64: 1, 64, 128>}]} {
    %c0_i32 = arith.constant 0 : i32
    %0 = arith.cmpi eq, %arg1, %c0_i32 : i32
    %1 = arith.extui %0 : i1 to i32
    %c0_i32_0 = arith.constant 0 : i32
    %2 = arith.cmpi ne, %1, %c0_i32_0 : i32
    scf.if %2 {
      %c0_83 = arith.constant 0 : index
      %c0_84 = arith.constant 0 : index
      %c0_85 = arith.constant 0 : index
      %157 = vector.load %arg4[%c0_83, %c0_84, %c0_85] : memref<1x128x64xf32, #tpu.memory_space<vmem>>, vector<1x128x64xf32>
      %158 = vector.shape_cast %157 : vector<1x128x64xf32> to vector<128x64xf32>
      %c0_86 = arith.constant 0 : index
      %c0_87 = arith.constant 0 : index
      %159 = vector.load %arg7[%c0_86, %c0_87] : memref<64x128xf32, #tpu.memory_space<vmem>>, vector<64x128xf32>
      %cst_88 = arith.constant dense<0.000000e+00> : vector<128x128xf32>
      %160 = tpu.matmul %158, %159, %cst_88 {dimension_numbers = #tpu.dot_dimension_numbers<[1], [0], [0], [1], [0, 0, 1, 1], [], []>} : vector<128x64xf32>, vector<64x128xf32>, vector<128x128xf32> -> vector<128x128xf32>
      %c0_89 = arith.constant 0 : index
      %c0_90 = arith.constant 0 : index
      %161 = vector.load %arg8[%c0_89, %c0_90] : memref<1x128xf32, #tpu.memory_space<vmem>>, vector<1x128xf32>
      %162 = vector.broadcast %161 : vector<1x128xf32> to vector<128x128xf32>
      %163 = arith.addf %160, %162 : vector<128x128xf32>
      %c0_91 = arith.constant 0 : index
      %c0_92 = arith.constant 0 : index
      %164 = vector.load %arg20[%c0_91, %c0_92] : memref<128x128xf32, #tpu.memory_space<vmem>>, vector<128x128xf32>
      tpu.vector_store %arg20[%c0_91, %c0_92], %163 {strides = array<i32>} : memref<128x128xf32, #tpu.memory_space<vmem>>, vector<128x128xf32>,
      %c0_93 = arith.constant 0 : index
      %c0_94 = arith.constant 0 : index
      %165 = vector.load %arg12[%c0_93, %c0_94] : memref<128x256xf32, #tpu.memory_space<vmem>>, vector<128x256xf32>
      %cst_95 = arith.constant dense<0.000000e+00> : vector<128x256xf32>
      %166 = tpu.matmul %163, %165, %cst_95 {dimension_numbers = #tpu.dot_dimension_numbers<[1], [0], [0], [1], [0, 0, 1, 1], [], []>} : vector<128x128xf32>, vector<128x256xf32>, vector<128x256xf32> -> vector<128x256xf32>
      %c0_96 = arith.constant 0 : index
      %c0_97 = arith.constant 0 : index
      %167 = vector.load %arg13[%c0_96, %c0_97] : memref<1x256xf32, #tpu.memory_space<vmem>>, vector<1x256xf32>
      %168 = vector.broadcast %167 : vector<1x256xf32> to vector<128x256xf32>
      %169 = arith.addf %166, %168 : vector<128x256xf32>
      %c0_98 = arith.constant 0 : index
      %c0_99 = arith.constant 0 : index
      %170 = vector.load %arg21[%c0_98, %c0_99] : memref<128x256xf32, #tpu.memory_space<vmem>>, vector<128x256xf32>
      tpu.vector_store %arg21[%c0_98, %c0_99], %169 {strides = array<i32>} : memref<128x256xf32, #tpu.memory_space<vmem>>, vector<128x256xf32>,
    } else {
    }
    %c0 = arith.constant 0 : index
    %c0_1 = arith.constant 0 : index
    %c0_2 = arith.constant 0 : index
    %3 = vector.load %arg3[%c0, %c0_1, %c0_2] : memref<1x64x64xf32, #tpu.memory_space<vmem>>, vector<1x64x64xf32>
    %4 = vector.shape_cast %3 : vector<1x64x64xf32> to vector<64x64xf32>
    %c0_3 = arith.constant 0 : index
    %c0_4 = arith.constant 0 : index
    %5 = vector.load %arg20[%c0_3, %c0_4] : memref<128x128xf32, #tpu.memory_space<vmem>>, vector<128x128xf32>
    %c0_5 = arith.constant 0 : index
    %c0_6 = arith.constant 0 : index
    %6 = vector.load %arg5[%c0_5, %c0_6] : memref<64x128xf32, #tpu.memory_space<vmem>>, vector<64x128xf32>
    %cst = arith.constant dense<0.000000e+00> : vector<64x128xf32>
    %7 = tpu.matmul %4, %6, %cst {dimension_numbers = #tpu.dot_dimension_numbers<[1], [0], [0], [1], [0, 0, 1, 1], [], []>} : vector<64x64xf32>, vector<64x128xf32>, vector<64x128xf32> -> vector<64x128xf32>
    %c0_7 = arith.constant 0 : index
    %c0_8 = arith.constant 0 : index
    %8 = vector.load %arg6[%c0_7, %c0_8] : memref<1x128xf32, #tpu.memory_space<vmem>>, vector<1x128xf32>
    %9 = vector.broadcast %8 : vector<1x128xf32> to vector<64x128xf32>
    %10 = arith.addf %7, %9 : vector<64x128xf32>
    %cst_9 = arith.constant dense<0.000000e+00> : vector<64x128xf32>
    %11 = tpu.matmul %10, %5, %cst_9 {dimension_numbers = #tpu.dot_dimension_numbers<[1], [1], [0], [0], [0, 0, 1, 0], [], []>} : vector<64x128xf32>, vector<128x128xf32>, vector<64x128xf32> -> vector<64x128xf32>
    %cst_10 = arith.constant 0.0883883461 : f32
    %12 = vector.broadcast %cst_10 : f32 to vector<64x128xf32>
    %13 = arith.mulf %11, %12 : vector<64x128xf32>
    %cst_11 = arith.constant dense<0xFF800000> : vector<64xf32>
    %14 = vector.multi_reduction <maximumf>, %13, %cst_11 [1] : vector<64x128xf32> to vector<64xf32>
    %15 = vector.shape_cast %14 : vector<64xf32> to vector<64x1xf32>
    %16 = vector.broadcast %15 : vector<64x1xf32> to vector<64x128xf32>
    %17 = arith.subf %13, %16 : vector<64x128xf32>
    %18 = math.exp %17 : vector<64x128xf32>
    %cst_12 = arith.constant dense<0.000000e+00> : vector<64x128xf32>
    %19 = tpu.matmul %18, %5, %cst_12 {dimension_numbers = #tpu.dot_dimension_numbers<[1], [0], [0], [1], [0, 0, 1, 1], [], []>} : vector<64x128xf32>, vector<128x128xf32>, vector<64x128xf32> -> vector<64x128xf32>
    %cst_13 = arith.constant dense<0.000000e+00> : vector<64xf32>
    %20 = vector.multi_reduction <add>, %18, %cst_13 [1] : vector<64x128xf32> to vector<64xf32>
    %21 = vector.shape_cast %20 : vector<64xf32> to vector<64x1xf32>
    %22 = tpu.reciprocal %21 {approx = true} : vector<64x1xf32> -> vector<64x1xf32>
    %23 = vector.broadcast %22 : vector<64x1xf32> to vector<64x128xf32>
    %24 = arith.mulf %19, %23 : vector<64x128xf32>
    %c0_14 = arith.constant 0 : index
    %25 = memref.load %arg2[%c0_14] : memref<1xf32, #tpu.memory_space<smem>>
    %26 = vector.broadcast %25 : f32 to vector<1x1xf32>
    %27 = arith.negf %26 : vector<1x1xf32>
    %28 = math.exp %27 : vector<1x1xf32>
    %cst_15 = arith.constant 1.000000e+00 : f32
    %29 = vector.broadcast %cst_15 : f32 to vector<1x1xf32>
    %30 = arith.addf %29, %28 : vector<1x1xf32>
    %31 = arith.divf %29, %30 : vector<1x1xf32>
    %32 = vector.broadcast %31 : vector<1x1xf32> to vector<64x128xf32>
    %33 = arith.mulf %32, %10 : vector<64x128xf32>
    %cst_16 = arith.constant 1.000000e+00 : f32
    %34 = vector.broadcast %cst_16 : f32 to vector<1x1xf32>
    %35 = arith.subf %34, %31 : vector<1x1xf32>
    %36 = vector.broadcast %35 : vector<1x1xf32> to vector<64x128xf32>
    %37 = arith.mulf %36, %24 : vector<64x128xf32>
    %38 = arith.addf %33, %37 : vector<64x128xf32>
    %c0_17 = arith.constant 0 : index
    %c0_18 = arith.constant 0 : index
    %39 = vector.load %arg9[%c0_17, %c0_18] : memref<128x256xf32, #tpu.memory_space<vmem>>, vector<128x256xf32>
    %cst_19 = arith.constant dense<0.000000e+00> : vector<64x256xf32>
    %40 = tpu.matmul %10, %39, %cst_19 {dimension_numbers = #tpu.dot_dimension_numbers<[1], [0], [0], [1], [0, 0, 1, 1], [], []>} : vector<64x128xf32>, vector<128x256xf32>, vector<64x256xf32> -> vector<64x256xf32>
    %c0_20 = arith.constant 0 : index
    %c0_21 = arith.constant 0 : index
    %41 = vector.load %arg10[%c0_20, %c0_21] : memref<1x256xf32, #tpu.memory_space<vmem>>, vector<1x256xf32>
    %42 = vector.broadcast %41 : vector<1x256xf32> to vector<64x256xf32>
    %43 = arith.addf %40, %42 : vector<64x256xf32>
    %44 = vector.extract_strided_slice %43 {offsets = [0, 0], sizes = [64, 128], strides = [1, 1]} : vector<64x256xf32> to vector<64x128xf32>
    %45 = vector.extract_strided_slice %43 {offsets = [0, 128], sizes = [64, 128], strides = [1, 1]} : vector<64x256xf32> to vector<64x128xf32>
    %c0_22 = arith.constant 0 : index
    %c0_23 = arith.constant 0 : index
    %46 = vector.load %arg11[%c0_22, %c0_23] : memref<128x128xf32, #tpu.memory_space<vmem>>, vector<128x128xf32>
    %cst_24 = arith.constant dense<0.000000e+00> : vector<64x128xf32>
    %47 = tpu.matmul %24, %46, %cst_24 {dimension_numbers = #tpu.dot_dimension_numbers<[1], [0], [0], [1], [0, 0, 1, 1], [], []>} : vector<64x128xf32>, vector<128x128xf32>, vector<64x128xf32> -> vector<64x128xf32>
    %48 = arith.addf %45, %47 : vector<64x128xf32>
    %49 = arith.negf %48 : vector<64x128xf32>
    %50 = math.exp %49 : vector<64x128xf32>
    %cst_25 = arith.constant 1.000000e+00 : f32
    %51 = vector.broadcast %cst_25 : f32 to vector<64x128xf32>
    %52 = arith.addf %51, %50 : vector<64x128xf32>
    %53 = arith.divf %51, %52 : vector<64x128xf32>
    %54 = arith.mulf %53, %10 : vector<64x128xf32>
    %cst_26 = arith.constant 1.000000e+00 : f32
    %55 = vector.broadcast %cst_26 : f32 to vector<64x128xf32>
    %56 = arith.subf %55, %53 : vector<64x128xf32>
    %57 = arith.mulf %56, %24 : vector<64x128xf32>
    %58 = arith.addf %54, %57 : vector<64x128xf32>
    %cst_27 = arith.constant 0.000000e+00 : f32
    %59 = vector.broadcast %cst_27 : f32 to vector<64x128xf32>
    %c0_28 = arith.constant 0 : index
    %c0_29 = arith.constant 0 : index
    %60 = vector.load %arg15[%c0_28, %c0_29] : memref<1x128xf32, #tpu.memory_space<vmem>>, vector<1x128xf32>
    %61 = vector.broadcast %60 : vector<1x128xf32> to vector<64x128xf32>
    %62 = arith.addf %59, %61 : vector<64x128xf32>
    %63 = vector.extract_strided_slice %44 {offsets = [0, 0], sizes = [64, 32], strides = [1, 1]} : vector<64x128xf32> to vector<64x32xf32>
    %c0_30 = arith.constant 0 : index
    %c0_31 = arith.constant 0 : index
    %64 = vector.load %arg21[%c0_30, %c0_31] : memref<128x256xf32, #tpu.memory_space<vmem>>, vector<128x32xf32>
    %c0_32 = arith.constant 0 : index
    %c128 = arith.constant 128 : index
    %65 = vector.load %arg21[%c0_32, %c128] : memref<128x256xf32, #tpu.memory_space<vmem>>, vector<128x32xf32>
    %cst_33 = arith.constant dense<0.000000e+00> : vector<64x128xf32>
    %66 = tpu.matmul %63, %64, %cst_33 {dimension_numbers = #tpu.dot_dimension_numbers<[1], [1], [0], [0], [0, 0, 1, 0], [], []>} : vector<64x32xf32>, vector<128x32xf32>, vector<64x128xf32> -> vector<64x128xf32>
    %cst_34 = arith.constant 0.176776692 : f32
    %67 = vector.broadcast %cst_34 : f32 to vector<64x128xf32>
    %68 = arith.mulf %66, %67 : vector<64x128xf32>
    %cst_35 = arith.constant dense<0xFF800000> : vector<64xf32>
    %69 = vector.multi_reduction <maximumf>, %68, %cst_35 [1] : vector<64x128xf32> to vector<64xf32>
    %70 = vector.shape_cast %69 : vector<64xf32> to vector<64x1xf32>
    %71 = vector.broadcast %70 : vector<64x1xf32> to vector<64x128xf32>
    %72 = arith.subf %68, %71 : vector<64x128xf32>
    %73 = math.exp %72 : vector<64x128xf32>
    %cst_36 = arith.constant dense<0.000000e+00> : vector<64x32xf32>
    %74 = tpu.matmul %73, %65, %cst_36 {dimension_numbers = #tpu.dot_dimension_numbers<[1], [0], [0], [1], [0, 0, 1, 1], [], []>} : vector<64x128xf32>, vector<128x32xf32>, vector<64x32xf32> -> vector<64x32xf32>
    %cst_37 = arith.constant dense<0.000000e+00> : vector<64xf32>
    %75 = vector.multi_reduction <add>, %73, %cst_37 [1] : vector<64x128xf32> to vector<64xf32>
    %76 = vector.shape_cast %75 : vector<64xf32> to vector<64x1xf32>
    %77 = tpu.reciprocal %76 {approx = true} : vector<64x1xf32> -> vector<64x1xf32>
    %78 = vector.broadcast %77 : vector<64x1xf32> to vector<64x32xf32>
    %79 = arith.mulf %74, %78 : vector<64x32xf32>
    %c0_38 = arith.constant 0 : index
    %c0_39 = arith.constant 0 : index
    %80 = vector.load %arg14[%c0_38, %c0_39] : memref<128x128xf32, #tpu.memory_space<vmem>>, vector<32x128xf32>
    %cst_40 = arith.constant dense<0.000000e+00> : vector<64x128xf32>
    %81 = tpu.matmul %79, %80, %cst_40 {dimension_numbers = #tpu.dot_dimension_numbers<[1], [0], [0], [1], [0, 0, 1, 1], [], []>} : vector<64x32xf32>, vector<32x128xf32>, vector<64x128xf32> -> vector<64x128xf32>
    %82 = arith.addf %62, %81 : vector<64x128xf32>
    %83 = vector.extract_strided_slice %44 {offsets = [0, 32], sizes = [64, 32], strides = [1, 1]} : vector<64x128xf32> to vector<64x32xf32>
    %c0_41 = arith.constant 0 : index
    %c32 = arith.constant 32 : index
    %84 = vector.load %arg21[%c0_41, %c32] : memref<128x256xf32, #tpu.memory_space<vmem>>, vector<128x32xf32>
    %c0_42 = arith.constant 0 : index
    %c160 = arith.constant 160 : index
    %85 = vector.load %arg21[%c0_42, %c160] : memref<128x256xf32, #tpu.memory_space<vmem>>, vector<128x32xf32>
    %cst_43 = arith.constant dense<0.000000e+00> : vector<64x128xf32>
    %86 = tpu.matmul %83, %84, %cst_43 {dimension_numbers = #tpu.dot_dimension_numbers<[1], [1], [0], [0], [0, 0, 1, 0], [], []>} : vector<64x32xf32>, vector<128x32xf32>, vector<64x128xf32> -> vector<64x128xf32>
    %cst_44 = arith.constant 0.176776692 : f32
    %87 = vector.broadcast %cst_44 : f32 to vector<64x128xf32>
    %88 = arith.mulf %86, %87 : vector<64x128xf32>
    %cst_45 = arith.constant dense<0xFF800000> : vector<64xf32>
    %89 = vector.multi_reduction <maximumf>, %88, %cst_45 [1] : vector<64x128xf32> to vector<64xf32>
    %90 = vector.shape_cast %89 : vector<64xf32> to vector<64x1xf32>
    %91 = vector.broadcast %90 : vector<64x1xf32> to vector<64x128xf32>
    %92 = arith.subf %88, %91 : vector<64x128xf32>
    %93 = math.exp %92 : vector<64x128xf32>
    %cst_46 = arith.constant dense<0.000000e+00> : vector<64x32xf32>
    %94 = tpu.matmul %93, %85, %cst_46 {dimension_numbers = #tpu.dot_dimension_numbers<[1], [0], [0], [1], [0, 0, 1, 1], [], []>} : vector<64x128xf32>, vector<128x32xf32>, vector<64x32xf32> -> vector<64x32xf32>
    %cst_47 = arith.constant dense<0.000000e+00> : vector<64xf32>
    %95 = vector.multi_reduction <add>, %93, %cst_47 [1] : vector<64x128xf32> to vector<64xf32>
    %96 = vector.shape_cast %95 : vector<64xf32> to vector<64x1xf32>
    %97 = tpu.reciprocal %96 {approx = true} : vector<64x1xf32> -> vector<64x1xf32>
    %98 = vector.broadcast %97 : vector<64x1xf32> to vector<64x32xf32>
    %99 = arith.mulf %94, %98 : vector<64x32xf32>
    %c32_48 = arith.constant 32 : index
    %c0_49 = arith.constant 0 : index
    %100 = vector.load %arg14[%c32_48, %c0_49] : memref<128x128xf32, #tpu.memory_space<vmem>>, vector<32x128xf32>
    %cst_50 = arith.constant dense<0.000000e+00> : vector<64x128xf32>
    %101 = tpu.matmul %99, %100, %cst_50 {dimension_numbers = #tpu.dot_dimension_numbers<[1], [0], [0], [1], [0, 0, 1, 1], [], []>} : vector<64x32xf32>, vector<32x128xf32>, vector<64x128xf32> -> vector<64x128xf32>
    %102 = arith.addf %82, %101 : vector<64x128xf32>
    %103 = vector.extract_strided_slice %44 {offsets = [0, 64], sizes = [64, 32], strides = [1, 1]} : vector<64x128xf32> to vector<64x32xf32>
    %c0_51 = arith.constant 0 : index
    %c64 = arith.constant 64 : index
    %104 = vector.load %arg21[%c0_51, %c64] : memref<128x256xf32, #tpu.memory_space<vmem>>, vector<128x32xf32>
    %c0_52 = arith.constant 0 : index
    %c192 = arith.constant 192 : index
    %105 = vector.load %arg21[%c0_52, %c192] : memref<128x256xf32, #tpu.memory_space<vmem>>, vector<128x32xf32>
    %cst_53 = arith.constant dense<0.000000e+00> : vector<64x128xf32>
    %106 = tpu.matmul %103, %104, %cst_53 {dimension_numbers = #tpu.dot_dimension_numbers<[1], [1], [0], [0], [0, 0, 1, 0], [], []>} : vector<64x32xf32>, vector<128x32xf32>, vector<64x128xf32> -> vector<64x128xf32>
    %cst_54 = arith.constant 0.176776692 : f32
    %107 = vector.broadcast %cst_54 : f32 to vector<64x128xf32>
    %108 = arith.mulf %106, %107 : vector<64x128xf32>
    %cst_55 = arith.constant dense<0xFF800000> : vector<64xf32>
    %109 = vector.multi_reduction <maximumf>, %108, %cst_55 [1] : vector<64x128xf32> to vector<64xf32>
    %110 = vector.shape_cast %109 : vector<64xf32> to vector<64x1xf32>
    %111 = vector.broadcast %110 : vector<64x1xf32> to vector<64x128xf32>
    %112 = arith.subf %108, %111 : vector<64x128xf32>
    %113 = math.exp %112 : vector<64x128xf32>
    %cst_56 = arith.constant dense<0.000000e+00> : vector<64x32xf32>
    %114 = tpu.matmul %113, %105, %cst_56 {dimension_numbers = #tpu.dot_dimension_numbers<[1], [0], [0], [1], [0, 0, 1, 1], [], []>} : vector<64x128xf32>, vector<128x32xf32>, vector<64x32xf32> -> vector<64x32xf32>
    %cst_57 = arith.constant dense<0.000000e+00> : vector<64xf32>
    %115 = vector.multi_reduction <add>, %113, %cst_57 [1] : vector<64x128xf32> to vector<64xf32>
    %116 = vector.shape_cast %115 : vector<64xf32> to vector<64x1xf32>
    %117 = tpu.reciprocal %116 {approx = true} : vector<64x1xf32> -> vector<64x1xf32>
    %118 = vector.broadcast %117 : vector<64x1xf32> to vector<64x32xf32>
    %119 = arith.mulf %114, %118 : vector<64x32xf32>
    %c64_58 = arith.constant 64 : index
    %c0_59 = arith.constant 0 : index
    %120 = vector.load %arg14[%c64_58, %c0_59] : memref<128x128xf32, #tpu.memory_space<vmem>>, vector<32x128xf32>
    %cst_60 = arith.constant dense<0.000000e+00> : vector<64x128xf32>
    %121 = tpu.matmul %119, %120, %cst_60 {dimension_numbers = #tpu.dot_dimension_numbers<[1], [0], [0], [1], [0, 0, 1, 1], [], []>} : vector<64x32xf32>, vector<32x128xf32>, vector<64x128xf32> -> vector<64x128xf32>
    %122 = arith.addf %102, %121 : vector<64x128xf32>
    %123 = vector.extract_strided_slice %44 {offsets = [0, 96], sizes = [64, 32], strides = [1, 1]} : vector<64x128xf32> to vector<64x32xf32>
    %c0_61 = arith.constant 0 : index
    %c96 = arith.constant 96 : index
    %124 = vector.load %arg21[%c0_61, %c96] : memref<128x256xf32, #tpu.memory_space<vmem>>, vector<128x32xf32>
    %c0_62 = arith.constant 0 : index
    %c224 = arith.constant 224 : index
    %125 = vector.load %arg21[%c0_62, %c224] : memref<128x256xf32, #tpu.memory_space<vmem>>, vector<128x32xf32>
    %cst_63 = arith.constant dense<0.000000e+00> : vector<64x128xf32>
    %126 = tpu.matmul %123, %124, %cst_63 {dimension_numbers = #tpu.dot_dimension_numbers<[1], [1], [0], [0], [0, 0, 1, 0], [], []>} : vector<64x32xf32>, vector<128x32xf32>, vector<64x128xf32> -> vector<64x128xf32>
    %cst_64 = arith.constant 0.176776692 : f32
    %127 = vector.broadcast %cst_64 : f32 to vector<64x128xf32>
    %128 = arith.mulf %126, %127 : vector<64x128xf32>
    %cst_65 = arith.constant dense<0xFF800000> : vector<64xf32>
    %129 = vector.multi_reduction <maximumf>, %128, %cst_65 [1] : vector<64x128xf32> to vector<64xf32>
    %130 = vector.shape_cast %129 : vector<64xf32> to vector<64x1xf32>
    %131 = vector.broadcast %130 : vector<64x1xf32> to vector<64x128xf32>
    %132 = arith.subf %128, %131 : vector<64x128xf32>
    %133 = math.exp %132 : vector<64x128xf32>
    %cst_66 = arith.constant dense<0.000000e+00> : vector<64x32xf32>
    %134 = tpu.matmul %133, %125, %cst_66 {dimension_numbers = #tpu.dot_dimension_numbers<[1], [0], [0], [1], [0, 0, 1, 1], [], []>} : vector<64x128xf32>, vector<128x32xf32>, vector<64x32xf32> -> vector<64x32xf32>
    %cst_67 = arith.constant dense<0.000000e+00> : vector<64xf32>
    %135 = vector.multi_reduction <add>, %133, %cst_67 [1] : vector<64x128xf32> to vector<64xf32>
    %136 = vector.shape_cast %135 : vector<64xf32> to vector<64x1xf32>
    %137 = tpu.reciprocal %136 {approx = true} : vector<64x1xf32> -> vector<64x1xf32>
    %138 = vector.broadcast %137 : vector<64x1xf32> to vector<64x32xf32>
    %139 = arith.mulf %134, %138 : vector<64x32xf32>
    %c96_68 = arith.constant 96 : index
    %c0_69 = arith.constant 0 : index
    %140 = vector.load %arg14[%c96_68, %c0_69] : memref<128x128xf32, #tpu.memory_space<vmem>>, vector<32x128xf32>
    %cst_70 = arith.constant dense<0.000000e+00> : vector<64x128xf32>
    %141 = tpu.matmul %139, %140, %cst_70 {dimension_numbers = #tpu.dot_dimension_numbers<[1], [0], [0], [1], [0, 0, 1, 1], [], []>} : vector<64x32xf32>, vector<32x128xf32>, vector<64x128xf32> -> vector<64x128xf32>
    %142 = arith.addf %122, %141 : vector<64x128xf32>
    %c0_71 = arith.constant 0 : index
    %c0_72 = arith.constant 0 : index
    %143 = vector.load %arg16[%c0_71, %c0_72] : memref<128x128xf32, #tpu.memory_space<vmem>>, vector<128x128xf32>
    %cst_73 = arith.constant dense<0.000000e+00> : vector<64x128xf32>
    %144 = tpu.matmul %38, %143, %cst_73 {dimension_numbers = #tpu.dot_dimension_numbers<[1], [0], [0], [1], [0, 0, 1, 1], [], []>} : vector<64x128xf32>, vector<128x128xf32>, vector<64x128xf32> -> vector<64x128xf32>
    %c0_74 = arith.constant 0 : index
    %c0_75 = arith.constant 0 : index
    %145 = vector.load %arg17[%c0_74, %c0_75] : memref<128x128xf32, #tpu.memory_space<vmem>>, vector<128x128xf32>
    %cst_76 = arith.constant dense<0.000000e+00> : vector<64x128xf32>
    %146 = tpu.matmul %58, %145, %cst_76 {dimension_numbers = #tpu.dot_dimension_numbers<[1], [0], [0], [1], [0, 0, 1, 1], [], []>} : vector<64x128xf32>, vector<128x128xf32>, vector<64x128xf32> -> vector<64x128xf32>
    %147 = arith.addf %144, %146 : vector<64x128xf32>
    %c0_77 = arith.constant 0 : index
    %c0_78 = arith.constant 0 : index
    %148 = vector.load %arg18[%c0_77, %c0_78] : memref<1x128xf32, #tpu.memory_space<vmem>>, vector<1x128xf32>
    %149 = vector.broadcast %148 : vector<1x128xf32> to vector<64x128xf32>
    %150 = arith.addf %147, %149 : vector<64x128xf32>
    %cst_79 = arith.constant 1.000000e-01 : f32
    %151 = vector.broadcast %cst_79 : f32 to vector<64x128xf32>
    %152 = arith.mulf %151, %142 : vector<64x128xf32>
    %153 = arith.addf %150, %152 : vector<64x128xf32>
    %c0_80 = arith.constant 0 : index
    %c0_81 = arith.constant 0 : index
    %c0_82 = arith.constant 0 : index
    %154 = vector.load %arg19[%c0_80, %c0_81, %c0_82] : memref<1x64x128xf32, #tpu.memory_space<vmem>>, vector<1x64x128xf32>
    %155 = vector.shape_cast %154 : vector<1x64x128xf32> to vector<64x128xf32>
    %156 = vector.shape_cast %153 : vector<64x128xf32> to vector<1x64x128xf32>
    tpu.vector_store %arg19[%c0_80, %c0_81, %c0_82], %156 {strides = array<i32>} : memref<1x64x128xf32, #tpu.memory_space<vmem>>, vector<1x64x128xf32>,
    return
  }
  func.func @transform_0(%arg0: i32, %arg1: i32, %arg2: memref<1xf32, #tpu.memory_space<smem>>) -> (i32, i32, i32) {
    %c0_i32 = arith.constant 0 : i32
    %c0_i32_0 = arith.constant 0 : i32
    return %arg0, %arg1, %c0_i32 : i32, i32, i32
  }
  func.func @transform_1(%arg0: i32, %arg1: i32, %arg2: memref<1xf32, #tpu.memory_space<smem>>) -> (i32, i32, i32) {
    %c0_i32 = arith.constant 0 : i32
    %c0_i32_0 = arith.constant 0 : i32
    %c0_i32_1 = arith.constant 0 : i32
    return %arg0, %c0_i32, %c0_i32_0 : i32, i32, i32
  }
  func.func @transform_2(%arg0: i32, %arg1: i32, %arg2: memref<1xf32, #tpu.memory_space<smem>>) -> (i32, i32) {
    %c0_i32 = arith.constant 0 : i32
    %c0_i32_0 = arith.constant 0 : i32
    %c0_i32_1 = arith.constant 0 : i32
    return %c0_i32, %c0_i32_0 : i32, i32
  }
  func.func @transform_3(%arg0: i32, %arg1: i32, %arg2: memref<1xf32, #tpu.memory_space<smem>>) -> (i32, i32) {
    %c0_i32 = arith.constant 0 : i32
    %c0_i32_0 = arith.constant 0 : i32
    %c0_i32_1 = arith.constant 0 : i32
    return %c0_i32, %c0_i32_0 : i32, i32
  }
  func.func @transform_4(%arg0: i32, %arg1: i32, %arg2: memref<1xf32, #tpu.memory_space<smem>>) -> (i32, i32) {
    %c0_i32 = arith.constant 0 : i32
    %c0_i32_0 = arith.constant 0 : i32
    %c0_i32_1 = arith.constant 0 : i32
    return %c0_i32, %c0_i32_0 : i32, i32
  }
  func.func @transform_5(%arg0: i32, %arg1: i32, %arg2: memref<1xf32, #tpu.memory_space<smem>>) -> (i32, i32) {
    %c0_i32 = arith.constant 0 : i32
    %c0_i32_0 = arith.constant 0 : i32
    %c0_i32_1 = arith.constant 0 : i32
    return %c0_i32, %c0_i32_0 : i32, i32
  }
  func.func @transform_6(%arg0: i32, %arg1: i32, %arg2: memref<1xf32, #tpu.memory_space<smem>>) -> (i32, i32) {
    %c0_i32 = arith.constant 0 : i32
    %c0_i32_0 = arith.constant 0 : i32
    %c0_i32_1 = arith.constant 0 : i32
    return %c0_i32, %c0_i32_0 : i32, i32
  }
  func.func @transform_7(%arg0: i32, %arg1: i32, %arg2: memref<1xf32, #tpu.memory_space<smem>>) -> (i32, i32) {
    %c0_i32 = arith.constant 0 : i32
    %c0_i32_0 = arith.constant 0 : i32
    %c0_i32_1 = arith.constant 0 : i32
    return %c0_i32, %c0_i32_0 : i32, i32
  }
  func.func @transform_8(%arg0: i32, %arg1: i32, %arg2: memref<1xf32, #tpu.memory_space<smem>>) -> (i32, i32) {
    %c0_i32 = arith.constant 0 : i32
    %c0_i32_0 = arith.constant 0 : i32
    %c0_i32_1 = arith.constant 0 : i32
    return %c0_i32, %c0_i32_0 : i32, i32
  }
  func.func @transform_9(%arg0: i32, %arg1: i32, %arg2: memref<1xf32, #tpu.memory_space<smem>>) -> (i32, i32) {
    %c0_i32 = arith.constant 0 : i32
    %c0_i32_0 = arith.constant 0 : i32
    %c0_i32_1 = arith.constant 0 : i32
    return %c0_i32, %c0_i32_0 : i32, i32
  }
  func.func @transform_10(%arg0: i32, %arg1: i32, %arg2: memref<1xf32, #tpu.memory_space<smem>>) -> (i32, i32) {
    %c0_i32 = arith.constant 0 : i32
    %c0_i32_0 = arith.constant 0 : i32
    %c0_i32_1 = arith.constant 0 : i32
    return %c0_i32, %c0_i32_0 : i32, i32
  }
  func.func @transform_11(%arg0: i32, %arg1: i32, %arg2: memref<1xf32, #tpu.memory_space<smem>>) -> (i32, i32) {
    %c0_i32 = arith.constant 0 : i32
    %c0_i32_0 = arith.constant 0 : i32
    %c0_i32_1 = arith.constant 0 : i32
    return %c0_i32, %c0_i32_0 : i32, i32
  }
  func.func @transform_12(%arg0: i32, %arg1: i32, %arg2: memref<1xf32, #tpu.memory_space<smem>>) -> (i32, i32) {
    %c0_i32 = arith.constant 0 : i32
    %c0_i32_0 = arith.constant 0 : i32
    %c0_i32_1 = arith.constant 0 : i32
    return %c0_i32, %c0_i32_0 : i32, i32
  }
  func.func @transform_13(%arg0: i32, %arg1: i32, %arg2: memref<1xf32, #tpu.memory_space<smem>>) -> (i32, i32) {
    %c0_i32 = arith.constant 0 : i32
    %c0_i32_0 = arith.constant 0 : i32
    %c0_i32_1 = arith.constant 0 : i32
    return %c0_i32, %c0_i32_0 : i32, i32
  }
  func.func @transform_14(%arg0: i32, %arg1: i32, %arg2: memref<1xf32, #tpu.memory_space<smem>>) -> (i32, i32) {
    %c0_i32 = arith.constant 0 : i32
    %c0_i32_0 = arith.constant 0 : i32
    %c0_i32_1 = arith.constant 0 : i32
    return %c0_i32, %c0_i32_0 : i32, i32
  }
  func.func @transform_15(%arg0: i32, %arg1: i32, %arg2: memref<1xf32, #tpu.memory_space<smem>>) -> (i32, i32) {
    %c0_i32 = arith.constant 0 : i32
    %c0_i32_0 = arith.constant 0 : i32
    %c0_i32_1 = arith.constant 0 : i32
    return %c0_i32, %c0_i32_0 : i32, i32
  }
  func.func @transform_16(%arg0: i32, %arg1: i32, %arg2: memref<1xf32, #tpu.memory_space<smem>>) -> (i32, i32, i32) {
    %c0_i32 = arith.constant 0 : i32
    %c0_i32_0 = arith.constant 0 : i32
    return %arg0, %arg1, %c0_i32 : i32, i32, i32
  }
}

</mosaic_0001>

<bundles_post_ra>
// kernel: tpu_custom_call.1
= control target key start
LH: loop header
LB: loop body
LE: loop exit
PB: predicated region body
PF: predicated region fallthrough
CT: control target
= control target key end

     0   :  { %s10105_s0 = inlined_call_operand.<no memory space> [shape: f32[1], index: 0, kind: input, shape index: {}]   ;;  %s10106_s1 = inlined_call_operand.hbm [shape: f32[2,128,64], index: 1, kind: input, shape index: {}]   ;;  %s10107_s2 = inlined_call_operand.hbm [shape: f32[2,128,64], index: 2, kind: input, shape index: {}]   ;;  %s10108_s3 = inlined_call_operand.hbm [shape: f32[64,128], index: 3, kind: input, shape index: {}]   ;;  %s10109_s4 = inlined_call_operand.hbm [shape: f32[1,128], index: 4, kind: input, shape index: {}]   ;;  %s10110_s5 = inlined_call_operand.hbm [shape: f32[64,128], index: 5, kind: input, shape index: {}]   ;;  %s10111_s6 = inlined_call_operand.hbm [shape: f32[1,128], index: 6, kind: input, shape index: {}]   ;;  %s10112_s7 = inlined_call_operand.hbm [shape: f32[128,256], index: 7, kind: input, shape index: {}]   ;;  %s10113_s8 = inlined_call_operand.hbm [shape: f32[1,256], index: 8, kind: input, shape index: {}]   ;;  %s10114_s9 = inlined_call_operand.hbm [shape: f32[128,128], index: 9, kind: input, shape index: {}]   ;;  %s10115_s10 = inlined_call_operand.hbm [shape: f32[128,256], index: 10, kind: input, shape index: {}]   ;;  %s10116_s11 = inlined_call_operand.hbm [shape: f32[1,256], index: 11, kind: input, shape index: {}]   ;;  %s10117_s12 = inlined_call_operand.hbm [shape: f32[128,128], index: 12, kind: input, shape index: {}]   ;;  %s10118_s13 = inlined_call_operand.hbm [shape: f32[1,128], index: 13, kind: input, shape index: {}]   ;;  %s10119_s14 = inlined_call_operand.hbm [shape: f32[128,128], index: 14, kind: input, shape index: {}]   ;;  %s10120_s15 = inlined_call_operand.hbm [shape: f32[128,128], index: 15, kind: input, shape index: {}]   ;;  %s10121_s16 = inlined_call_operand.hbm [shape: f32[1,128], index: 16, kind: input, shape index: {}]   ;;  %s10122_s17 = inlined_call_operand.hbm [shape: f32[2,128,128], index: 17, kind: output, shape index: {}]  }
   0x1   :  { %10173 = sst [smem:[#allocation68_spill]] %s10105_s0 }
   0x2   :  { %10174 = sst [smem:[#allocation69_spill]] %s10106_s1  ;;  %s10187_s26 = sld [smem:[#allocation68_spill]] }
   0x3   :  { %10175 = sst [smem:[#allocation70_spill]] %s10107_s2 }
   0x4   :  { %10176 = sst [smem:[#allocation71_spill]] %s10108_s3 }
   0x5   :  { %10177 = sst [smem:[#allocation72_spill]] %s10109_s4 }
   0x6   :  { %10178 = sst [smem:[#allocation73_spill]] %s10110_s5 }
   0x7   :  { %10179 = sst [smem:[#allocation74_spill]] %s10111_s6 }
   0x8   :  { %10180 = sst [smem:[#allocation75_spill]] %s10112_s7 }
   0x9   :  { %10181 = sst [smem:[#allocation76_spill]] %s10113_s8 }
   0xa   :  { %10182 = sst [smem:[#allocation77_spill]] %s10114_s9 }
   0xb   :  { %10183 = sst [smem:[#allocation78_spill]] %s10115_s10 }
   0xc   :  { %10184 = sst [smem:[#allocation79_spill]] %s10116_s11 }
   0xd   :  { %10185 = sst [smem:[#allocation80_spill]] %s10117_s12 }
   0xe   :  { %10186 = sst [smem:[#allocation81_spill]] %s10122_s17 }
   0xf   :  { %22 = sst [smem:[#allocation5]] %s10187_s26 }
  0x10   :  { %23 = vsyncpa [#allocation7], 0 }
  0x11   :  { %25 = vsyncpa [#allocation7 + $0x1], 0 }
  0x12   :  { %26 = vsyncpa [#allocation10], 0 }
  0x13   :  { %28 = vsyncpa [#allocation10 + $0x1], 0 }
  0x14   :  { %29 = vsyncpa [#allocation13], 0 }
  0x15   :  { %30 = vsyncpa [#allocation16], 0 }
  0x16   :  { %31 = vsyncpa [#allocation19], 0 }
  0x17   :  { %32 = vsyncpa [#allocation22], 0 }
  0x18   :  { %33 = vsyncpa [#allocation25], 0 }
  0x19   :  { %34 = vsyncpa [#allocation28], 0 }
  0x1a   :  { %35 = vsyncpa [#allocation31], 0 }
  0x1b   :  { %36 = vsyncpa [#allocation8], 0 }
  0x1c   :  { %38 = vsyncpa [#allocation8 + $0x1], 0  ;;  %s8421_s27 = smov 0   ;;  %s8423_s28 = smov 0  }
  0x1d   :  { %s8425_s29 = smov 0   ;;  %s8427_s0 = smov 0  }
  0x1e   :  { %s8429_s30 = smov 0   ;;  %s8431_s18 = smov 0  }
  0x1f   :  { %s8433_s19 = smov 0   ;;  %s8435_s1 = smov 0  }
  0x20   :  { %s8437_s20 = smov 0   ;;  %s8439_s21 = smov 0  }
  0x21   :  { %s8441_s22 = smov 0  }
  0x22 LB: > { %10188 = sst [smem:[#allocation44_spill]] %s8258_s27  ;;  %s8477_s23 = sadd.s32 4294967295, %s8298_s22   ;;  %s8298_s22 = sphi %s8441_s22, %s44_s22   ;;  %s8294_s21 = sphi %s8439_s21, %s10303_s21   ;;  %s8290_s20 = sphi %s8437_s20, %s10305_s20   ;;  %s8286_s1 = sphi %s8435_s1, %s10300_s1   ;;  %s8282_s19 = sphi %s8433_s19, %s10299_s19   ;;  %s8278_s18 = sphi %s8431_s18, %s10302_s18   ;;  %s8274_s30 = sphi %s8429_s30, %s10298_s30   ;;  %s8270_s0 = sphi %s8427_s0, %s10297_s0   ;;  %s8266_s29 = sphi %s8425_s29, %s10301_s29   ;;  %s8262_s28 = sphi %s8423_s28, %s10296_s28   ;;  %s8258_s27 = sphi %s8421_s27, %s10295_s27  }
  0x23   : > { %10189 = sst [smem:[#allocation45_spill]] %s8262_s28  ;;  %p4963_p0 = scmp.ge.s32.totalorder %s8298_s22, 1 }
  0x24   : > { %10190 = sst [smem:[#allocation46_spill]] %s8266_s29  ;;  %p10136_p1 = scmp.eq.s32.totalorder %s8477_s23, 0 }
  0x25   : > { %10191 = sst [smem:[#allocation47_spill]] %s8270_s0  ;;  %p437_p2 = scmp.lt.s32.totalorder %s8298_s22, 5 }
  0x26   : > { %10192 = sst [smem:[#allocation48_spill]] %s8274_s30  ;;  %s8300_s25 = smov [#allocation11]  }
  0x27   : > { %10193 = sst [smem:[#allocation49_spill]] %s8278_s18  ;;  %p8482_p3 = pnand %p4963_p0, %p437_p2 }
  0x28   : > { %10194 = sst [smem:[#allocation50_spill]] %s8282_s19  ;;  %s449_s26 = sshll.u32 %s8300_s25, 4  ;;  %s8486_s26 = int_to_ptr.vmem [resolvable:$true] %s449_s26 }
  0x29   : > { %10195 = sst [smem:[#allocation51_spill]] %s8286_s1  ;;  %p7023_p4 = pneg %p8482_p3 }
  0x2a   : > { %10196 = sst [smem:[#allocation52_spill]] %s8290_s20  ;;  %s8301_s1 = smov [#allocation12]  }
  0x2b   : > { %10197 = sst [smem:[#allocation53_spill]] %s8294_s21  ;;  %p8492_p5 = pnand %p7023_p4, %p10136_p1 }
  0x2c   : > { %10198 = sst [smem:[#allocation54_spill]] %s8477_s23  ;;  %s463_s19 = sshll.u32 %s8301_s1, 4  ;;  %s8496_s19 = int_to_ptr.vmem [resolvable:$true] %s463_s19 }
  0x2d   : > { %s10199_s24 = scalar_select %p8482_p3, 1, 0 }
  0x2e   : > { %s8302_s2 = smov [#allocation15]   ;;  %s10202_s3 = sld [smem:[#allocation71_spill]] }
  0x2f   : > { %10200 = sst [smem:[#allocation55_spill]] %s10199_s24  ;;  %s8498_s27 = sshll.u32 %s8302_s2, 4  ;;  %s488_s27 = int_to_ptr.vmem [resolvable:$true] %s8498_s27 }
  0x30   : > { %p8508_p7 = pneg %p8492_p5 }
  0x34   : > { %s7688_s25 = scalar_lea.hbm %s10202_s3, 1024 }
  0x35   : > { %p7689_p6 = scmp.ne.s32.totalorder %s10202_s3, %s7688_s25  ;;  %p7695_p10 = scmp.lt.u32.totalorder %s7688_s25, %s10202_s3 }
  0x37   : > { %p7691_p8 = pnand %p8508_p7, %p7689_p6 }
  0x39   : > { %p7692_p9 = pneg %p7691_p8 }
  0x3b   : > { %p7697_p11 = pnand %p7695_p10, %p7692_p9 }
  0x3d   : > { %7700 = shalt.err (!%p7697_p11)
}
  0x3e   : > { %s7701_s28 = scalar_lea.vmem %s8486_s26, 1024  ;;  %p7709_p2 = scmp.lt.s32.totalorder %s8486_s26, %s8486_s26 }
  0x3f   : > { %p7702_p12 = scmp.ne.s32.totalorder %s8486_s26, %s7701_s28  ;;  %p7710_p4 = scmp.lt.s32.totalorder %s7701_s28, %s7701_s28 }
  0x41   : > { %p7704_p13 = pnand %p7702_p12, %p8508_p7  ;;  %p7711_p6 = por %p7710_p4, %p7709_p2 }
  0x43   : > { %p7705_p0 = pneg %p7704_p13 }
  0x45   : > { %p7712_p8 = pnand %p7711_p6, %p7705_p0 }
  0x47   : > { %7715 = shalt.err (!%p7712_p8)
}
  0x48   : > { %s10138_s29 = smov 128   ;;  %s10142_s0 = smov 8  }
  0x49   : > { %7026 = dma.hbm_to_vmem [thread:$0]  (!%p8492_p5), %s10202_s3, 1024, %s8486_s26, [#allocation10], %s10138_s29, %s10138_s29, %s10142_s0  }
  0x4a   : > { %s10204_s4 = sld [smem:[#allocation72_spill]] }
  0x50   : > { %s7716_s28 = scalar_lea.hbm %s10204_s4, 16 }
  0x51   : > { %p7717_p9 = scmp.ne.s32.totalorder %s10204_s4, %s7716_s28  ;;  %p7723_p12 = scmp.lt.u32.totalorder %s7716_s28, %s10204_s4 }
  0x53   : > { %p7719_p10 = pnand %p7717_p9, %p8508_p7 }
  0x55   : > { %p7720_p11 = pneg %p7719_p10 }
  0x57   : > { %p7725_p13 = pnand %p7723_p12, %p7720_p11 }
  0x59   : > { %7728 = shalt.err (!%p7725_p13)
}
  0x5a   : > { %s7729_s26 = scalar_lea.vmem %s8496_s19, 16  ;;  %s7736_s30 = scalar_lea.vmem %s8496_s19, 32 }
  0x5b   : > { %p7730_p0 = scmp.ne.s32.totalorder %s8496_s19, %s7729_s26  ;;  %p7737_p6 = scmp.lt.s32.totalorder %s8496_s19, %s8496_s19 }
  0x5c   : > { %p7738_p8 = scmp.lt.s32.totalorder %s7736_s30, %s7729_s26 }
  0x5d   : > { %p7732_p2 = pnand %p7730_p0, %p8508_p7 }
  0x5e   : > { %p7739_p9 = por %p7738_p8, %p7737_p6 }
  0x5f   : > { %p7733_p4 = pneg %p7732_p2 }
  0x61   : > { %p7740_p10 = pnand %p7739_p9, %p7733_p4 }
  0x63   : > { %7743 = shalt.err (!%p7740_p10)
}
  0x64   : > { %7029 = dma.hbm_to_vmem [thread:$0]  (!%p8492_p5), %s10204_s4, 16, %s8496_s19, [#allocation13]  }
  0x65   : > { %s10205_s6 = sld [smem:[#allocation74_spill]] }
  0x6b   : > { %s7744_s25 = scalar_lea.hbm %s10205_s6, 16 }
  0x6c   : > { %p7745_p11 = scmp.ne.s32.totalorder %s10205_s6, %s7744_s25  ;;  %p7751_p0 = scmp.lt.u32.totalorder %s7744_s25, %s10205_s6 }
  0x6e   : > { %p7747_p12 = pnand %p7745_p11, %p8508_p7 }
  0x70   : > { %p7748_p13 = pneg %p7747_p12 }
  0x72   : > { %p7753_p2 = pnand %p7751_p0, %p7748_p13 }
  0x74   : > { %7756 = shalt.err (!%p7753_p2)
}
  0x75   : > { %s7757_s30 = scalar_lea.vmem %s488_s27, 16  ;;  %s7764_s19 = scalar_lea.vmem %s488_s27, 32 }
  0x76   : > { %p7758_p4 = scmp.ne.s32.totalorder %s488_s27, %s7757_s30  ;;  %p7765_p9 = scmp.lt.s32.totalorder %s488_s27, %s488_s27 }
  0x77   : > { %p7766_p10 = scmp.lt.s32.totalorder %s7764_s19, %s7757_s30 }
  0x78   : > { %p7760_p6 = pnand %p7758_p4, %p8508_p7 }
  0x79   : > { %p7767_p1 = por %p7766_p10, %p7765_p9 }
  0x7a   : > { %p7761_p8 = pneg %p7760_p6 }
  0x7c   : > { %p7768_p3 = pnand %p7767_p1, %p7761_p8 }
  0x7e   : > { %7771 = shalt.err (!%p7768_p3)
}
  0x7f   : > { %7035 = dma.hbm_to_vmem [thread:$0]  (!%p8492_p5), %s10205_s6, 16, %s488_s27, [#allocation16]  }
  0x80   : > { %s8305_s21 = smov [#allocation18]   ;;  %s10206_s8 = sld [smem:[#allocation76_spill]] }
  0x81   : > { %s511_s24 = sshll.u32 %s8305_s21, 4  ;;  %s512_s24 = int_to_ptr.vmem [resolvable:$true] %s511_s24 }
  0x86   : > { %s7772_s2 = scalar_lea.hbm %s10206_s8, 32 }
  0x87   : > { %p7773_p11 = scmp.ne.s32.totalorder %s10206_s8, %s7772_s2  ;;  %p7779_p12 = scmp.lt.u32.totalorder %s7772_s2, %s10206_s8 }
  0x89   : > { %p7775_p1 = pnand %p7773_p11, %p8508_p7 }
  0x8b   : > { %p7776_p3 = pneg %p7775_p1 }
  0x8d   : > { %p7781_p13 = pnand %p7779_p12, %p7776_p3 }
  0x8f   : > { %7784 = shalt.err (!%p7781_p13)
}
  0x90   : > { %s7785_s27 = scalar_lea.vmem %s512_s24, 32  ;;  %p7793_p6 = scmp.lt.s32.totalorder %s512_s24, %s512_s24 }
  0x91   : > { %p7786_p0 = scmp.ne.s32.totalorder %s512_s24, %s7785_s27  ;;  %p7794_p8 = scmp.lt.s32.totalorder %s7785_s27, %s7785_s27 }
  0x93   : > { %p7788_p2 = pnand %p7786_p0, %p8508_p7  ;;  %p7795_p9 = por %p7794_p8, %p7793_p6 }
  0x95   : > { %p7789_p4 = pneg %p7788_p2 }
  0x97   : > { %p7796_p10 = pnand %p7795_p9, %p7789_p4 }
  0x99   : > { %7799 = shalt.err (!%p7796_p10)
}
  0x9a   : > { %7041 = dma.hbm_to_vmem [thread:$0]  (!%p8492_p5), %s10206_s8, 32, %s512_s24, [#allocation19]  }
  0x9b   : > { %s8306_s21 = smov [#allocation21]   ;;  %s8307_s1 = smov [#allocation24]  }
  0x9c   : > { %s534_s25 = sshll.u32 %s8306_s21, 4  ;;  %s558_s2 = sshll.u32 %s8307_s1, 4  ;;  %s535_s25 = int_to_ptr.vmem [resolvable:$true] %s534_s25  ;;  %s8593_s2 = int_to_ptr.vmem [resolvable:$true] %s558_s2 }
  0x9d   : > { %s10207_s10 = sld [smem:[#allocation78_spill]] }
  0xa3   : > { %s7800_s30 = scalar_lea.hbm %s10207_s10, 4096 }
  0xa4   : > { %p7801_p11 = scmp.ne.s32.totalorder %s10207_s10, %s7800_s30  ;;  %p7807_p12 = scmp.lt.u32.totalorder %s7800_s30, %s10207_s10 }
  0xa6   : > { %p7803_p1 = pnand %p7801_p11, %p8508_p7 }
  0xa8   : > { %p7804_p3 = pneg %p7803_p1 }
  0xaa   : > { %p7809_p13 = pnand %p7807_p12, %p7804_p3 }
  0xac   : > { %7812 = shalt.err (!%p7809_p13)
}
  0xad   : > { %s7813_s20 = scalar_lea.vmem %s535_s25, 4096  ;;  %p7821_p6 = scmp.lt.s32.totalorder %s535_s25, %s535_s25 }
  0xae   : > { %p7814_p0 = scmp.ne.s32.totalorder %s535_s25, %s7813_s20  ;;  %p7822_p8 = scmp.lt.s32.totalorder %s7813_s20, %s7813_s20 }
  0xb0   : > { %p7816_p2 = pnand %p7814_p0, %p8508_p7  ;;  %p7823_p9 = por %p7822_p8, %p7821_p6 }
  0xb2   : > { %p7817_p4 = pneg %p7816_p2 }
  0xb4   : > { %p7824_p10 = pnand %p7823_p9, %p7817_p4 }
  0xb6   : > { %7827 = shalt.err (!%p7824_p10)
}
  0xb7   : > { %s10140_s21 = smov 256   ;;  %s10141_s1 = smov 16  }
  0xb8   : > { %7047 = dma.hbm_to_vmem [thread:$0]  (!%p8492_p5), %s10207_s10, 4096, %s535_s25, [#allocation22], %s10140_s21, %s10140_s21, %s10141_s1  }
  0xb9   : > { %s10208_s12 = sld [smem:[#allocation80_spill]] }
  0xbf   : > { %s7828_s27 = scalar_lea.hbm %s10208_s12, 2048 }
  0xc0   : > { %p7829_p11 = scmp.ne.s32.totalorder %s10208_s12, %s7828_s27  ;;  %p7835_p12 = scmp.lt.u32.totalorder %s7828_s27, %s10208_s12 }
  0xc2   : > { %p7831_p1 = pnand %p7829_p11, %p8508_p7 }
  0xc4   : > { %p7832_p3 = pneg %p7831_p1 }
  0xc6   : > { %p7837_p13 = pnand %p7835_p12, %p7832_p3 }
  0xc8   : > { %7840 = shalt.err (!%p7837_p13)
}
  0xc9   : > { %s7841_s25 = scalar_lea.vmem %s8593_s2, 2048  ;;  %p7849_p6 = scmp.lt.s32.totalorder %s8593_s2, %s8593_s2 }
  0xca   : > { %p7842_p0 = scmp.ne.s32.totalorder %s8593_s2, %s7841_s25  ;;  %p7850_p8 = scmp.lt.s32.totalorder %s7841_s25, %s7841_s25 }
  0xcc   : > { %p7844_p2 = pnand %p7842_p0, %p8508_p7  ;;  %p7851_p9 = por %p7850_p8, %p7849_p6 }
  0xce   : > { %p7845_p4 = pneg %p7844_p2 }
  0xd0   : > { %p7852_p10 = pnand %p7851_p9, %p7845_p4 }
  0xd2   : > { %7855 = shalt.err (!%p7852_p10)
}
  0xd3   : > { %s10209_s29 = smov 128   ;;  %s8310_s30 = smov [#allocation27]  }
  0xd4   : > { %7053 = dma.hbm_to_vmem [thread:$0]  (!%p8492_p5), %s10208_s12, 2048, %s8593_s2, [#allocation25], %s10209_s29, %s10209_s29, %s10142_s0  }
  0xd5   : > { %s582_s19 = sshll.u32 %s8310_s30, 4  ;;  %s8311_s27 = smov [#allocation14]   ;;  %s583_s19 = int_to_ptr.vmem [resolvable:$true] %s582_s19 }
  0xd6   : > { %s473_s18 = sshll.u32 %s8311_s27, 4  ;;  %s7856_s25 = scalar_lea.hbm %s10119_s14, 2048  ;;  %s8642_s18 = int_to_ptr.vmem [resolvable:$true] %s473_s18 }
  0xd7   : > { %p7857_p11 = scmp.ne.s32.totalorder %s10119_s14, %s7856_s25  ;;  %p7863_p12 = scmp.lt.u32.totalorder %s7856_s25, %s10119_s14 }
  0xd9   : > { %p7859_p1 = pnand %p7857_p11, %p8508_p7 }
  0xdb   : > { %p7860_p3 = pneg %p7859_p1 }
  0xdd   : > { %p7865_p13 = pnand %p7863_p12, %p7860_p3 }
  0xdf   : > { %7868 = shalt.err (!%p7865_p13)
}
  0xe0   : > { %s7869_s26 = scalar_lea.vmem %s583_s19, 2048  ;;  %p7877_p6 = scmp.lt.s32.totalorder %s583_s19, %s583_s19 }
  0xe1   : > { %p7870_p0 = scmp.ne.s32.totalorder %s583_s19, %s7869_s26  ;;  %p7878_p8 = scmp.lt.s32.totalorder %s7869_s26, %s7869_s26 }
  0xe3   : > { %p7872_p2 = pnand %p7870_p0, %p8508_p7  ;;  %p7879_p9 = por %p7878_p8, %p7877_p6 }
  0xe5   : > { %p7873_p4 = pneg %p7872_p2 }
  0xe7   : > { %p7880_p10 = pnand %p7879_p9, %p7873_p4 }
  0xe9   : > { %7883 = shalt.err (!%p7880_p10)
}
  0xea   : > { %7059 = dma.hbm_to_vmem [thread:$0]  (!%p8492_p5), %s10119_s14, 2048, %s583_s19, [#allocation28], %s10209_s29, %s10209_s29, %s10142_s0  }
  0xeb   : > { %s10210_s5 = sld [smem:[#allocation73_spill]] }
  0xf1   : > { %s7884_s24 = scalar_lea.hbm %s10210_s5, 1024 }
  0xf2   : > { %p7885_p11 = scmp.ne.s32.totalorder %s10210_s5, %s7884_s24  ;;  %p7891_p12 = scmp.lt.u32.totalorder %s7884_s24, %s10210_s5 }
  0xf4   : > { %p7887_p1 = pnand %p7885_p11, %p8508_p7 }
  0xf6   : > { %p7888_p3 = pneg %p7887_p1 }
  0xf8   : > { %p7893_p13 = pnand %p7891_p12, %p7888_p3 }
  0xfa   : > { %7896 = shalt.err (!%p7893_p13)
}
  0xfb   : > { %s7897_s19 = scalar_lea.vmem %s8642_s18, 1024  ;;  %p7905_p6 = scmp.lt.s32.totalorder %s8642_s18, %s8642_s18 }
  0xfc   : > { %p7898_p0 = scmp.ne.s32.totalorder %s8642_s18, %s7897_s19  ;;  %p7906_p8 = scmp.lt.s32.totalorder %s7897_s19, %s7897_s19 }
  0xfe   : > { %p7900_p2 = pnand %p7898_p0, %p8508_p7  ;;  %p7907_p9 = por %p7906_p8, %p7905_p6 }
 0x100   : > { %p7901_p4 = pneg %p7900_p2 }
 0x102   : > { %p7908_p10 = pnand %p7907_p9, %p7901_p4 }
 0x104   : > { %7911 = shalt.err (!%p7908_p10)
}
 0x105   : > { %7032 = dma.hbm_to_vmem [thread:$0]  (!%p8492_p5), %s10210_s5, 1024, %s8642_s18, [#allocation13], %s10209_s29, %s10209_s29, %s10142_s0  }
 0x106   : > { %s8312_s1 = smov [#allocation17]   ;;  %s8313_s27 = smov [#allocation20]  }
 0x107   : > { %s497_s30 = sshll.u32 %s8312_s1, 4  ;;  %s521_s24 = sshll.u32 %s8313_s27, 4  ;;  %s498_s30 = int_to_ptr.vmem [resolvable:$true] %s497_s30  ;;  %s8691_s24 = int_to_ptr.vmem [resolvable:$true] %s521_s24 }
 0x108   : > { %s10211_s7 = sld [smem:[#allocation75_spill]] }
 0x10e   : > { %s7912_s28 = scalar_lea.hbm %s10211_s7, 4096 }
 0x10f   : > { %p7913_p11 = scmp.ne.s32.totalorder %s10211_s7, %s7912_s28  ;;  %p7919_p12 = scmp.lt.u32.totalorder %s7912_s28, %s10211_s7 }
 0x111   : > { %p7915_p1 = pnand %p7913_p11, %p8508_p7 }
 0x113   : > { %p7916_p3 = pneg %p7915_p1 }
 0x115   : > { %p7921_p13 = pnand %p7919_p12, %p7916_p3 }
 0x117   : > { %7924 = shalt.err (!%p7921_p13)
}
 0x118   : > { %s7925_s21 = scalar_lea.vmem %s498_s30, 4096  ;;  %p7933_p6 = scmp.lt.s32.totalorder %s498_s30, %s498_s30 }
 0x119   : > { %p7926_p0 = scmp.ne.s32.totalorder %s498_s30, %s7925_s21  ;;  %p7934_p8 = scmp.lt.s32.totalorder %s7925_s21, %s7925_s21 }
 0x11b   : > { %p7928_p2 = pnand %p7926_p0, %p8508_p7  ;;  %p7935_p9 = por %p7934_p8, %p7933_p6 }
 0x11d   : > { %p7929_p4 = pneg %p7928_p2 }
 0x11f   : > { %p7936_p10 = pnand %p7935_p9, %p7929_p4 }
 0x121   : > { %7939 = shalt.err (!%p7936_p10)
}
 0x122   : > { %s10212_s1 = smov 16   ;;  %s10213_s27 = smov 256  }
 0x123   : > { %7038 = dma.hbm_to_vmem [thread:$0]  (!%p8492_p5), %s10211_s7, 4096, %s498_s30, [#allocation16], %s10213_s27, %s10213_s27, %s10212_s1  }
 0x124   : > { %s10214_s9 = sld [smem:[#allocation77_spill]] }
 0x12a   : > { %s7940_s19 = scalar_lea.hbm %s10214_s9, 2048 }
 0x12b   : > { %p7941_p11 = scmp.ne.s32.totalorder %s10214_s9, %s7940_s19  ;;  %p7947_p12 = scmp.lt.u32.totalorder %s7940_s19, %s10214_s9 }
 0x12d   : > { %p7943_p1 = pnand %p7941_p11, %p8508_p7 }
 0x12f   : > { %p7944_p3 = pneg %p7943_p1 }
 0x131   : > { %p7949_p13 = pnand %p7947_p12, %p7944_p3 }
 0x133   : > { %7952 = shalt.err (!%p7949_p13)
}
 0x134   : > { %s7953_s30 = scalar_lea.vmem %s8691_s24, 2048  ;;  %p7961_p6 = scmp.lt.s32.totalorder %s8691_s24, %s8691_s24 }
 0x135   : > { %p7954_p0 = scmp.ne.s32.totalorder %s8691_s24, %s7953_s30  ;;  %p7962_p8 = scmp.lt.s32.totalorder %s7953_s30, %s7953_s30 }
 0x137   : > { %p7956_p2 = pnand %p7954_p0, %p8508_p7  ;;  %p7963_p9 = por %p7962_p8, %p7961_p6 }
 0x139   : > { %p7957_p4 = pneg %p7956_p2 }
 0x13b   : > { %p7964_p10 = pnand %p7963_p9, %p7957_p4 }
 0x13d   : > { %7967 = shalt.err (!%p7964_p10)
}
 0x13e   : > { %s10215_s0 = smov 8   ;;  %s8314_s20 = smov [#allocation23]  }
 0x13f   : > { %7044 = dma.hbm_to_vmem [thread:$0]  (!%p8492_p5), %s10214_s9, 2048, %s8691_s24, [#allocation19], %s10209_s29, %s10209_s29, %s10215_s0  }
 0x140   : > { %s548_s25 = sshll.u32 %s8314_s20, 4  ;;  %s8315_s28 = smov [#allocation26]   ;;  %s549_s25 = int_to_ptr.vmem [resolvable:$true] %s548_s25 }
 0x141   : > { %s572_s2 = sshll.u32 %s8315_s28, 4  ;;  %s10216_s11 = sld [smem:[#allocation79_spill]]  ;;  %s8740_s2 = int_to_ptr.vmem [resolvable:$true] %s572_s2 }
 0x147   : > { %s7968_s18 = scalar_lea.hbm %s10216_s11, 32 }
 0x148   : > { %p7969_p11 = scmp.ne.s32.totalorder %s10216_s11, %s7968_s18  ;;  %p7975_p12 = scmp.lt.u32.totalorder %s7968_s18, %s10216_s11 }
 0x14a   : > { %p7971_p1 = pnand %p7969_p11, %p8508_p7 }
 0x14c   : > { %p7972_p3 = pneg %p7971_p1 }
 0x14e   : > { %p7977_p13 = pnand %p7975_p12, %p7972_p3 }
 0x150   : > { %7980 = shalt.err (!%p7977_p13)
}
 0x151   : > { %s7981_s27 = scalar_lea.vmem %s549_s25, 32  ;;  %p7989_p6 = scmp.lt.s32.totalorder %s549_s25, %s549_s25 }
 0x152   : > { %p7982_p0 = scmp.ne.s32.totalorder %s549_s25, %s7981_s27  ;;  %p7990_p8 = scmp.lt.s32.totalorder %s7981_s27, %s7981_s27 }
 0x154   : > { %p7984_p2 = pnand %p7982_p0, %p8508_p7  ;;  %p7991_p9 = por %p7990_p8, %p7989_p6 }
 0x156   : > { %p7985_p4 = pneg %p7984_p2 }
 0x158   : > { %p7992_p10 = pnand %p7991_p9, %p7985_p4 }
 0x15a   : > { %7995 = shalt.err (!%p7992_p10)
}
 0x15b   : > { %7050 = dma.hbm_to_vmem [thread:$0]  (!%p8492_p5), %s10216_s11, 32, %s549_s25, [#allocation22]  }
 0x15c   : > { %s7996_s18 = scalar_lea.hbm %s10118_s13, 16 }
 0x15d   : > { %p7997_p11 = scmp.ne.s32.totalorder %s10118_s13, %s7996_s18  ;;  %p8003_p12 = scmp.lt.u32.totalorder %s7996_s18, %s10118_s13 }
 0x15f   : > { %p7999_p1 = pnand %p7997_p11, %p8508_p7 }
 0x161   : > { %p8000_p3 = pneg %p7999_p1 }
 0x163   : > { %p8005_p13 = pnand %p8003_p12, %p8000_p3 }
 0x165   : > { %8008 = shalt.err (!%p8005_p13)
}
 0x166   : > { %s8009_s25 = scalar_lea.vmem %s8740_s2, 16  ;;  %s8016_s27 = scalar_lea.vmem %s8740_s2, 32 }
 0x167   : > { %p8010_p0 = scmp.ne.s32.totalorder %s8740_s2, %s8009_s25  ;;  %p8017_p6 = scmp.lt.s32.totalorder %s8740_s2, %s8740_s2 }
 0x168   : > { %p8018_p8 = scmp.lt.s32.totalorder %s8016_s27, %s8009_s25 }
 0x169   : > { %p8012_p2 = pnand %p8010_p0, %p8508_p7 }
 0x16a   : > { %p8019_p9 = por %p8018_p8, %p8017_p6 }
 0x16b   : > { %p8013_p4 = pneg %p8012_p2 }
 0x16d   : > { %p8020_p10 = pnand %p8019_p9, %p8013_p4 }
 0x16f   : > { %8023 = shalt.err (!%p8020_p10)
}
 0x170   : > { %7056 = dma.hbm_to_vmem [thread:$0]  (!%p8492_p5), %s10118_s13, 16, %s8740_s2, [#allocation25]  }
 0x171   : > { %s8316_s19 = smov [#allocation29]   ;;  %s8317_s18 = smov [#allocation30]  }
 0x172   : > { %s595_s26 = sshll.u32 %s8316_s19, 4  ;;  %s609_s21 = sshll.u32 %s8317_s18, 4  ;;  %s596_s26 = int_to_ptr.vmem [resolvable:$true] %s595_s26  ;;  %s8784_s21 = int_to_ptr.vmem [resolvable:$true] %s609_s21 }
 0x173   : > { %s8024_s24 = scalar_lea.hbm %s10120_s15, 2048 }
 0x174   : > { %p8025_p11 = scmp.ne.s32.totalorder %s10120_s15, %s8024_s24  ;;  %p8031_p12 = scmp.lt.u32.totalorder %s8024_s24, %s10120_s15 }
 0x176   : > { %p8027_p1 = pnand %p8025_p11, %p8508_p7 }
 0x178   : > { %p8028_p3 = pneg %p8027_p1 }
 0x17a   : > { %p8033_p13 = pnand %p8031_p12, %p8028_p3 }
 0x17c   : > { %8036 = shalt.err (!%p8033_p13)
}
 0x17d   : > { %s8037_s28 = scalar_lea.vmem %s596_s26, 2048  ;;  %p8045_p6 = scmp.lt.s32.totalorder %s596_s26, %s596_s26 }
 0x17e   : > { %p8038_p0 = scmp.ne.s32.totalorder %s596_s26, %s8037_s28  ;;  %p8046_p8 = scmp.lt.s32.totalorder %s8037_s28, %s8037_s28 }
 0x180   : > { %p8040_p2 = pnand %p8038_p0, %p8508_p7  ;;  %p8047_p9 = por %p8046_p8, %p8045_p6 }
 0x182   : > { %p8041_p4 = pneg %p8040_p2 }
 0x184   : > { %p8048_p10 = pnand %p8047_p9, %p8041_p4 }
 0x186   : > { %8051 = shalt.err (!%p8048_p10)
}
 0x187   : > { %7062 = dma.hbm_to_vmem [thread:$0]  (!%p8492_p5), %s10120_s15, 2048, %s596_s26, [#allocation28], %s10209_s29, %s10209_s29, %s10215_s0  }
 0x188   : > { %s8052_s24 = scalar_lea.hbm %s10121_s16, 16 }
 0x189   : > { %p8053_p11 = scmp.ne.s32.totalorder %s10121_s16, %s8052_s24  ;;  %p8059_p12 = scmp.lt.u32.totalorder %s8052_s24, %s10121_s16 }
 0x18b   : > { %p8055_p1 = pnand %p8053_p11, %p8508_p7 }
 0x18d   : > { %p8056_p3 = pneg %p8055_p1 }
 0x18f   : > { %p8061_p13 = pnand %p8059_p12, %p8056_p3 }
 0x191   : > { %8064 = shalt.err (!%p8061_p13)
}
 0x192   : > { %s8065_s26 = scalar_lea.vmem %s8784_s21, 16  ;;  %s8072_s28 = scalar_lea.vmem %s8784_s21, 32 }
 0x193   : > { %p8066_p0 = scmp.ne.s32.totalorder %s8784_s21, %s8065_s26  ;;  %p8073_p6 = scmp.lt.s32.totalorder %s8784_s21, %s8784_s21 }
 0x194   : > { %p8074_p8 = scmp.lt.s32.totalorder %s8072_s28, %s8065_s26 }
 0x195   : > { %p8068_p2 = pnand %p8066_p0, %p8508_p7 }
 0x196   : > { %p8075_p9 = por %p8074_p8, %p8073_p6 }
 0x197   : > { %p8069_p4 = pneg %p8068_p2 }
 0x199   : > { %p8076_p10 = pnand %p8075_p9, %p8069_p4 }
 0x19b   : > { %8079 = shalt.err (!%p8076_p10)
}
 0x19c   : > { %s10217_s30 = sld [smem:[#allocation52_spill]]  ;;  %s10218_s1 = sld [smem:[#allocation53_spill]] }
 0x19d   : > { %s10219_s24 = sld [smem:[#allocation49_spill]]  ;;  %s10220_s23 = sld [smem:[#allocation48_spill]] }
 0x19e   : > { %s10221_s25 = sld [smem:[#allocation47_spill]]  ;;  %s10222_s27 = sld [smem:[#allocation54_spill]] }
 0x19f   : > { %7065 = dma.hbm_to_vmem [thread:$0]  (!%p8492_p5), %s10121_s16, 16, %s8784_s21, [#allocation31]  }
 0x1a0   : > { %s4962_s17 = sadd.s32 4294967294, %s8298_s22   ;;  %p10145_p1 = scmp.eq.s32.totalorder %s8298_s22, 0 }
 0x1a1   : > { %p430_p6 = scmp.eq.s32.totalorder %s4962_s17, 3  ;;  %s10229_s12 = sld [smem:[#allocation69_spill]] }
 0x1a2   : > { %s53_s20 = sadd.s32 1, %s10217_s30  ;;  %s56_s2 = sadd.s32 1, %s10218_s1 }
 0x1a3   : > { %p54_p7 = scmp.ge.s32.totalorder %s53_s20, 2  ;;  %s65_s26 = sadd.s32 1, %s10219_s24 }
 0x1a4   : > { %p72_p11 = scmp.ne.s32.totalorder %s10219_s24, %s10220_s23  ;;  %p78_p12 = scmp.ne.s32.totalorder %s10220_s23, %s10221_s25 }
 0x1a5   : > { %s10305_s20 = smov (%p54_p7, %s53_s20), 0  ;;  %s10307_s2 = smov (!%p54_p7, %s56_s2), %s10218_s1 }
 0x1a6   : > { %s61_s28 = ssub.s32 %s10217_s30, %s10305_s20  ;;  %p58_p3 = scmp.ge.s32.totalorder %s10307_s2, 2 }
 0x1a7   : > { %p8847_p5 = por %p10145_p1, %p72_p11  ;;  %p424_p13 = scmp.eq.s32.totalorder %s10222_s27, 3 }
 0x1a8   : > { %s10309_s2 = smov (%p58_p3, %s10307_s2), 0  ;;  %p10224_p0 = scmp.eq.s32.totalorder %s10222_s27, 0 }
 0x1a9   : > { %p8860_p4 = por %p424_p13, %p72_p11  ;;  %s8866_s23 = ssub.s32 %s10218_s1, %s10309_s2 }
 0x1aa   : > { %p8856_p2 = por %p10224_p0, %p78_p12  ;;  %s62_s25 = sor.u32 %s61_s28, %s8866_s23 }
 0x1ab   : > { %s10226_s18 = scalar_select %p8860_p4, 1, 0 }
 0x1ac   : > { %p63_p9 = scmp.eq.s32.totalorder %s62_s25, 0  ;;  %p8870_p10 = por %p430_p6, %p78_p12 }
 0x1ad   : > { %p10144_p7 = scmp.lt.s32.totalorder %s8298_s22, 4  ;;  %s620_s4 = sand.u32 1, %s10219_s24  }
 0x1ae   : > { %s10227_s3 = scalar_select %p8870_p10, 1, 0 }
 0x1af   : > { %s10311_s24 = smov (!%p63_p9, %s10219_s24), %s65_s26  ;;  %s4979_s5 = sshll.u32 %s620_s4, 6 }
 0x1b0   : > { %s4980_s6 = sshll.u32 %s10217_s30, 3  ;;  %s4981_s7 = sshll.u32 %s10218_s1, 4 }
 0x1b1   : > { %s624_s8 = scalar_lea.vmem [#allocation6], %s4979_s5  ;;  %s630_s10 = sadd.s32 %s4981_s7, %s4980_s6 }
 0x1b2   : > { %s633_s9 = sshll.u32 %s624_s8, 4  ;;  %s4982_s17 = sshll.u32 %s630_s10, 7  ;;  %s8881_s9 = int_to_ptr.vmem [resolvable:$true] %s633_s9 }
 0x1b3   : > { %p8887_p11 = pnand %p10144_p7, %p8847_p5  ;;  %s8894_s26 = scalar_lea.hbm %s10229_s12, %s4982_s17 }
 0x1b4   : > { %s8896_s5 = scalar_lea.sflag [#allocation7], %s620_s4  ;;  %s8080_s6 = scalar_lea.hbm %s8894_s26, 1024 }
 0x1b5   : > { %p8081_p3 = scmp.ne.s32.totalorder %s8894_s26, %s8080_s6  ;;  %p8082_p12 = pneg %p8887_p11 }
 0x1b6   : > { %s8085_s10 = scalar_lea.hbm %s10229_s12, 4096  ;;  %p8086_p0 = scmp.lt.u32.totalorder %s8894_s26, %s10229_s12 }
 0x1b7   : > { %p8083_p5 = pnand %p8082_p12, %p8081_p3  ;;  %p8087_p6 = scmp.lt.u32.totalorder %s8085_s10, %s8080_s6 }
 0x1b8   : > { %p8089_p7 = scmp.lt.u32.totalorder %s8080_s6, %s8894_s26 }
 0x1b9   : > { %p8084_p13 = pneg %p8083_p5  ;;  %p8088_p9 = por %p8087_p6, %p8086_p0 }
 0x1bb   : > { %p8090_p1 = por %p8089_p7, %p8088_p9 }
 0x1bd   : > { %p8091_p8 = pnand %p8090_p1, %p8084_p13 }
 0x1bf   : > { %8094 = shalt.err (!%p8091_p8)
}
 0x1c0   : > { %s8095_s4 = scalar_lea.vmem %s8881_s9, 1024  ;;  %s8318_s21 = smov [#allocation6]  }
 0x1c1   : > { %p8096_p3 = scmp.ne.s32.totalorder %s8881_s9, %s8095_s4  ;;  %s8100_s17 = sshll.u32 %s8318_s21, 4  ;;  %s8101_s17 = int_to_ptr.vmem [resolvable:$false] %s8100_s17 }
 0x1c2   : > { %s8102_s25 = scalar_lea.vmem %s8101_s17, 2048  ;;  %p8103_p4 = scmp.lt.s32.totalorder %s8881_s9, %s8101_s17 }
 0x1c3   : > { %p8098_p5 = pnand %p8096_p3, %p8082_p12  ;;  %p8104_p0 = scmp.lt.s32.totalorder %s8102_s25, %s8095_s4 }
 0x1c5   : > { %p8099_p10 = pneg %p8098_p5  ;;  %p8105_p6 = por %p8104_p0, %p8103_p4 }
 0x1c7   : > { %p8106_p7 = pnand %p8105_p6, %p8099_p10 }
 0x1c9   : > { %8109 = shalt.err (!%p8106_p7)
}
 0x1ca   : > { %s10230_s6 = sld [smem:[#allocation46_spill]]  ;;  %s10231_s7 = sld [smem:[#allocation45_spill]] }
 0x1cb   : > { %s10232_s8 = sld [smem:[#allocation44_spill]]  ;;  %p10233_p4 = scmp.eq.s32.totalorder %s8866_s23, 0 }
 0x1cc   : > { %7069 = dma.hbm_to_vmem [thread:$0]  (!%p8887_p11), %s8894_s26, 1024, %s8881_s9, %s8896_s5, %s10209_s29, %s10209_s29, %s10215_s0  }
 0x1cd   : > { %p10234_p8 = scmp.eq.s32.totalorder %s8298_s22, 0  ;;  %s643_s11 = sand.u32 1, %s8298_s22  }
 0x1ce   : > { %p10235_p13 = scmp.eq.s32.totalorder %s10222_s27, 0  ;;  %s5176_s17 = sshll.u32 %s10218_s1, 11 }
 0x1cf   : > { %s10237_s9 = sld [smem:[#allocation70_spill]]  ;;  %p10238_p11 = scmp.lt.s32.totalorder %s8298_s22, 4 }
 0x1d0   : > { %s91_s28 = sadd.s32 1, %s10230_s6  ;;  %p98_p1 = scmp.ne.s32.totalorder %s10230_s6, %s10231_s7 }
 0x1d1   : > { %s8933_s10 = scalar_select %p10233_p4, %s10230_s6, %s91_s28  }
 0x1d2   : > { %p100_p10 = por %p98_p1, %p10234_p8  ;;  %p104_p12 = scmp.ne.s32.totalorder %s10231_s7, %s10232_s8 }
 0x1d3   : > { %s645_s30 = sand.u32 1, %s10230_s6   ;;  %s8961_s1 = scalar_lea.sflag [#allocation10], %s643_s11 }
 0x1d4   : > { %p8943_p9 = por %p104_p12, %p10235_p13  ;;  %s4983_s21 = sshll.u32 %s645_s30, 7 }
 0x1d5   : > { %s8951_s26 = scalar_lea.hbm %s10237_s9, %s5176_s17  ;;  %s647_s23 = scalar_lea.vmem [#allocation9], %s4983_s21 }
 0x1d6   : > { %s10236_s4 = scalar_select %p8943_p9, 1, 0 }
 0x1d7   : > { %s654_s5 = sshll.u32 %s647_s23, 4  ;;  %p8955_p3 = pnand %p10238_p11, %p100_p10  ;;  %s8959_s5 = int_to_ptr.vmem [resolvable:$true] %s654_s5 }
 0x1d8   : > { %s8110_s12 = scalar_lea.hbm %s8951_s26, 2048  ;;  %s8115_s8 = scalar_lea.hbm %s10237_s9, 4096 }
 0x1d9   : > { %p8111_p5 = scmp.ne.s32.totalorder %s8951_s26, %s8110_s12  ;;  %p8112_p0 = pneg %p8955_p3 }
 0x1da   : > { %p8116_p1 = scmp.lt.u32.totalorder %s8951_s26, %s10237_s9  ;;  %p8117_p4 = scmp.lt.u32.totalorder %s8115_s8, %s8110_s12 }
 0x1db   : > { %p8113_p6 = pnand %p8112_p0, %p8111_p5  ;;  %p8119_p10 = scmp.lt.u32.totalorder %s8110_s12, %s8951_s26 }
 0x1dc   : > { %p8118_p8 = por %p8117_p4, %p8116_p1 }
 0x1dd   : > { %p8114_p7 = pneg %p8113_p6 }
 0x1de   : > { %p8120_p12 = por %p8119_p10, %p8118_p8 }
 0x1e0   : > { %p8121_p13 = pnand %p8120_p12, %p8114_p7 }
 0x1e2   : > { %8124 = shalt.err (!%p8121_p13)
}
 0x1e3   : > { %s8125_s11 = scalar_lea.vmem %s8959_s5, 2048  ;;  %s8319_s21 = smov [#allocation9]  }
 0x1e4   : > { %p8126_p11 = scmp.ne.s32.totalorder %s8959_s5, %s8125_s11  ;;  %s8130_s17 = sshll.u32 %s8319_s21, 4  ;;  %s8131_s17 = int_to_ptr.vmem [resolvable:$false] %s8130_s17 }
 0x1e5   : > { %s8132_s25 = scalar_lea.vmem %s8131_s17, 4096  ;;  %p8133_p9 = scmp.lt.s32.totalorder %s8959_s5, %s8131_s17 }
 0x1e6   : > { %p8128_p5 = pnand %p8126_p11, %p8112_p0  ;;  %p8134_p1 = scmp.lt.s32.totalorder %s8132_s25, %s8125_s11 }
 0x1e8   : > { %p8129_p6 = pneg %p8128_p5  ;;  %p8135_p4 = por %p8134_p1, %p8133_p9 }
 0x1ea   : > { %p8136_p8 = pnand %p8135_p4, %p8129_p6 }
 0x1ec   : > { %8139 = shalt.err (!%p8136_p8)
}
 0x1ed   : > { %7072 = dma.hbm_to_vmem [thread:$0]  (!%p8955_p3), %s8951_s26, 2048, %s8959_s5, %s8961_s1, %s10209_s29, %s10209_s29, %s10215_s0  }
 0x1ee   : > { %s10240_s23 = sld [smem:[#allocation55_spill]] }
 0x1f4   : > { %p10241_p0 = scmp.ne.s32.totalorder %s10240_s23, 0 }
 0x1f6   : > { %666 = sbr.rel (%p10241_p0) target bundleno = 4259 (0x10a3), region = 84 }
 0x1fd   : > { %s10242_s12 = sld [smem:[#allocation48_spill]] }
 0x203   : > { %s8995_s6 = sand.u32 1, %s10242_s12  }
 0x204   : > { %s4987_s7 = sshll.u32 %s8995_s6, 6  ;;  %s669_s8 = scalar_lea.sflag [#allocation7], %s8995_s6 }
 0x205   : > { %s8999_s28 = scalar_lea.vmem [#allocation6], %s4987_s7 }
 0x206   : > { %8213 = dma.done.wait (%p8856_p2), %s669_s8, 1024  }
 0x207   : > { %8215 = vsyncadd (%p8856_p2), %s669_s8, 4294966272  ;;  %s10243_s27 = sld [smem:[#allocation54_spill]]  ;;  %s10244_s29 = sld [smem:[#allocation45_spill]] }
 0x208   : > { %p10245_p9 = scmp.ne.s32.totalorder %s10236_s4, 0 }
 0x20d   : > { %s677_s0 = sand.u32 1, %s10243_s27   ;;  %s679_s26 = sand.u32 1, %s10244_s29  }
 0x20e   : > { %s4988_s5 = sshll.u32 %s679_s26, 7  ;;  %s678_s1 = scalar_lea.sflag [#allocation10], %s677_s0 }
 0x20f   : > { %s9007_s30 = scalar_lea.vmem [#allocation9], %s4988_s5 }
 0x210   : > { %8217 = dma.done.wait (%p10245_p9), %s678_s1, 2048  }
 0x211   : > { %8219 = vsyncadd (%p10245_p9), %s678_s1, 4294965248  ;;  %p10246_p3 = scmp.eq.s32.totalorder %s10243_s27, 0 }
 0x213   : > { %8221 = dma.done.wait (%p10246_p3), [#allocation10], 1024   ;;  %p10247_p7 = pmov %p10246_p3 }
 0x214   : > { %p10248_p2 = pmov %p10246_p3 }
 0x215   : > { %8223 = vsyncadd (%p10247_p7), [#allocation10], 4294966272 }
 0x216   : > { %8225 = dma.done.wait (%p10248_p2), [#allocation13], 1040   ;;  %p10249_p10 = pmov %p10248_p2 }
 0x217   : > { %p10250_p12 = pmov %p10248_p2 }
 0x218   : > { %8227 = vsyncadd (%p10249_p10), [#allocation13], 4294966256 }
 0x219   : > { %8229 = dma.done.wait (%p10250_p12), [#allocation16], 4112   ;;  %p10251_p13 = pmov %p10248_p2 }
 0x21a   : > { %p10252_p11 = pmov %p10248_p2 }
 0x21b   : > { %8231 = vsyncadd (%p10251_p13), [#allocation16], 4294963184 }
 0x21c   : > { %8233 = dma.done.wait (%p10252_p11), [#allocation19], 2080   ;;  %p10253_p5 = pmov %p10248_p2 }
 0x21d   : > { %p10254_p6 = pmov %p10248_p2 }
 0x21e   : > { %8235 = vsyncadd (%p10253_p5), [#allocation19], 4294965216 }
 0x21f   : > { %8237 = dma.done.wait (%p10254_p6), [#allocation22], 4128   ;;  %p10255_p1 = pmov %p10248_p2 }
 0x221   : > { %8239 = vsyncadd (%p10255_p1), [#allocation22], 4294963168  ;;  %p10256_p4 = pmov %p10255_p1 }
 0x222   : > { %p10257_p8 = pmov %p10255_p1 }
 0x223   : > { %8241 = dma.done.wait (%p10256_p4), [#allocation25], 2064  }
 0x224   : > { %8243 = vsyncadd (%p10257_p8), [#allocation25], 4294965232  ;;  %p10258_p0 = pmov %p10255_p1 }
 0x226   : > { %8245 = dma.done.wait (%p10258_p0), [#allocation28], 4096   ;;  %p10259_p9 = pmov %p10258_p0 }
 0x227   : > { %p10260_p3 = pmov %p10258_p0 }
 0x228   : > { %8247 = vsyncadd (%p10259_p9), [#allocation28], 4294963200 }
 0x229   : > { %8249 = dma.done.wait (%p10260_p3), [#allocation31], 16   ;;  %p10261_p7 = pmov %p10258_p0 }
 0x22a   : > { %s9045_s19 = scalar_lea.vmem [#allocation32], %s4987_s7  ;;  %s10262_s4 = sld [smem:[#allocation50_spill]] }
 0x22b   : > { %8251 = vsyncadd (%p10261_p7), [#allocation31], 4294967280 }
 0x230   : > { %p5004_p2 = scmp.ne.s32.totalorder %s10262_s4, 0 }
 0x231   : > { %v813_v0 = vld [vmem:[#allocation14] sm:$0xff] (!%p5004_p2)  ;;  %v814_v1 = vld [vmem:[#allocation14 + $0x8] sm:$0xff] (!%p5004_p2)  ;;  %v815_v2 = vld [vmem:[#allocation14 + $0x10] sm:$0xff] (!%p5004_p2)  ;;  %vm828_vm0 = vcmask (!%p5004_p2), 523264  }
 0x232   : > { %796 = sbr.rel (%p5004_p2) target bundleno = 1059 (0x423), region = 152  ;;  %v6297_v3 = vpack.c.bf16 (!%p5004_p2), %v814_v1, %v813_v0  ;;  %v816_v4 = vld [vmem:[#allocation14 + $0x18] sm:$0xff] (!%p5004_p2)  ;;  %v817_v6 = vld [vmem:[#allocation14 + $0x20] sm:$0xff] (!%p5004_p2)  ;;  %v818_v7 = vld [vmem:[#allocation14 + $0x28] sm:$0xff] (!%p5004_p2) }
 0x233   : > { %v6301_v5 = vpack.c.bf16 (!%p5004_p2), %v816_v4, %v815_v2  ;;  %v797_v8 = vld [vmem:[%s9007_s30] sm:$0xff] (!%p5004_p2)  ;;  %v6305_v9 = vpack.c.bf16 (!%p5004_p2), %v818_v7, %v817_v6  ;;  %v819_v10 = vld [vmem:[#allocation14 + $0x30] sm:$0xff] (!%p5004_p2)  ;;  %v798_v28 = vld [vmem:[%s9007_s30 + $0x8] sm:$0xff] (!%p5004_p2) }
 0x234   : > { %6298 = vmatprep.subr.bf16.mxu0 (!%p5004_p2), %v6297_v3  ;;  %5593 = vmatprep.mubr.msk.f32.mxu0 (!%p5004_p2), %vm828_vm0, %v797_v8  ;;  %v820_v11 = vld [vmem:[#allocation14 + $0x38] sm:$0xff] (!%p5004_p2)  ;;  %v1039_v12 = vld [vmem:[#allocation21 + $0x8] sm:$0xff] (!%p5004_p2)  ;;  %v1038_v14 = vld [vmem:[#allocation21] sm:$0xff] (!%p5004_p2) }
 0x235   : > { %6300 = vmatpush3.bf16.msra.mxu0 (!%p5004_p2), %v6297_v3  ;;  %v1041_v13 = vld [vmem:[#allocation21 + $0x18] sm:$0xff] (!%p5004_p2)  ;;  %v6309_v15 = vpack.c.bf16 (!%p5004_p2), %v820_v11, %v819_v10  ;;  %v1040_v17 = vld [vmem:[#allocation21 + $0x10] sm:$0xff] (!%p5004_p2)  ;;  %v1043_v18 = vld [vmem:[#allocation21 + $0x28] sm:$0xff] (!%p5004_p2) }
 0x236   : > { %6302 = vmatprep.subr.bf16.mxu0 (!%p5004_p2), %v6301_v5  ;;  %v6313_v16 = vpack.c.bf16 (!%p5004_p2), %v1041_v13, %v1039_v12  ;;  %v1045_v19 = vld [vmem:[#allocation21 + $0x38] sm:$0xff] (!%p5004_p2)  ;;  %v6315_v20 = vpack.c.bf16 (!%p5004_p2), %v1040_v17, %v1038_v14  ;;  %v1042_v22 = vld [vmem:[#allocation21 + $0x20] sm:$0xff] (!%p5004_p2)  ;;  %v1044_v23 = vld [vmem:[#allocation21 + $0x30] sm:$0xff] (!%p5004_p2)  ;;  %v8320_v12 = vmov (!%p5004_p2), 0.0  }
 0x237   : > { %v6317_v21 = vpack.c.bf16 (!%p5004_p2), %v1045_v19, %v1043_v18  ;;  %v1047_v24 = vld [vmem:[#allocation21 + $0x48] sm:$0xff] (!%p5004_p2)  ;;  %v1049_v25 = vld [vmem:[#allocation21 + $0x58] sm:$0xff] (!%p5004_p2)  ;;  %v6319_v26 = vpack.c.bf16 (!%p5004_p2), %v1044_v23, %v1042_v22  ;;  %v1046_v29 = vld [vmem:[#allocation21 + $0x40] sm:$0xff] (!%p5004_p2)  ;;  %1182 = vmatprep.mubr.f32.mxu1 (!%p5004_p2), %v8320_v12 }
 0x238   : > { %6905 = vmatprep.subr.bf16.mxu1 (!%p5004_p2), %v6313_v16  ;;  %v6321_v27 = vpack.c.bf16 (!%p5004_p2), %v1049_v25, %v1047_v24  ;;  %v1048_v30 = vld [vmem:[#allocation21 + $0x50] sm:$0xff] (!%p5004_p2)  ;;  %v1051_v32 = vld [vmem:[#allocation21 + $0x68] sm:$0xff] (!%p5004_p2)  ;;  %v1053_v33 = vld [vmem:[#allocation21 + $0x78] sm:$0xff] (!%p5004_p2) }
 0x239   : > { %6304 = vmatpush3.bf16.msra.mxu0 %v6301_v5  ;;  %6913 = vmatpush1.bf16.msra.mxu1 %v6315_v20  ;;  %v799_v31 = vld [vmem:[%s9007_s30 + $0x10] sm:$0xff]  ;;  %v6323_v34 = vpack.c.bf16 %v1048_v30, %v1046_v29  ;;  %v800_v35 = vld [vmem:[%s9007_s30 + $0x18] sm:$0xff]  ;;  %v6325_v36 = vpack.c.bf16 %v1053_v33, %v1051_v32  ;;  %v1050_v37 = vld [vmem:[#allocation21 + $0x60] sm:$0xff] }
 0x23a   : > { %6306 = vmatprep.subr.bf16.mxu0 %v6305_v9  ;;  %6906 = vmatprep.subr.bf16.mxu1 %v6317_v21  ;;  %v1052_v38 = vld [vmem:[#allocation21 + $0x70] sm:$0xff]  ;;  %v801_v39 = vld [vmem:[%s9007_s30 + $0x20] sm:$0xff]  ;;  %v1055_v40 = vld [vmem:[#allocation21 + $0x88] sm:$0xff] }
 0x23b   : > { %v1057_v41 = vld [vmem:[#allocation21 + $0x98] sm:$0xff]  ;;  %v6327_v42 = vpack.c.bf16 %v1052_v38, %v1050_v37  ;;  %v802_v43 = vld [vmem:[%s9007_s30 + $0x28] sm:$0xff]  ;;  %v1056_v46 = vld [vmem:[#allocation21 + $0x90] sm:$0xff] }
 0x23c   : > { %v6329_v44 = vpack.c.bf16 %v1057_v41, %v1055_v40  ;;  %v1054_v45 = vld [vmem:[#allocation21 + $0x80] sm:$0xff]  ;;  %v803_v47 = vld [vmem:[%s9007_s30 + $0x30] sm:$0xff]  ;;  %v1061_v49 = vld [vmem:[#allocation21 + $0xb8] sm:$0xff] }
 0x23d   : > { %6308 = vmatpush3.bf16.msra.mxu0 %v6305_v9  ;;  %6914 = vmatpush1.bf16.msra.mxu1 %v6319_v26  ;;  %v1059_v48 = vld [vmem:[#allocation21 + $0xa8] sm:$0xff]  ;;  %v6331_v50 = vpack.c.bf16 %v1056_v46, %v1054_v45  ;;  %v804_v51 = vld [vmem:[%s9007_s30 + $0x38] sm:$0xff]  ;;  %v1058_v53 = vld [vmem:[#allocation21 + $0xa0] sm:$0xff]  ;;  %v1072_v46 = vlaneseq }
 0x23e   : > { %6310 = vmatprep.subr.bf16.mxu0 %v6309_v15  ;;  %6907 = vmatprep.subr.bf16.mxu1 %v6321_v27  ;;  %v6333_v52 = vpack.c.bf16 %v1061_v49, %v1059_v48  ;;  %v1060_v54 = vld [vmem:[#allocation21 + $0xb0] sm:$0xff]  ;;  %v805_v55 = vld [vmem:[%s9007_s30 + $0x40] sm:$0xff]  ;;  %v1063_v56 = vld [vmem:[#allocation21 + $0xc8] sm:$0xff] }
 0x23f   : > { %v1065_v57 = vld [vmem:[#allocation21 + $0xd8] sm:$0xff]  ;;  %v6335_v58 = vpack.c.bf16 %v1060_v54, %v1058_v53  ;;  %v806_v59 = vld [vmem:[%s9007_s30 + $0x48] sm:$0xff]  ;;  %v1064_v62 = vld [vmem:[#allocation21 + $0xd0] sm:$0xff] }
 0x240   : > { %v6337_v60 = vpack.c.bf16 %v1065_v57, %v1063_v56  ;;  %v1062_v61 = vld [vmem:[#allocation21 + $0xc0] sm:$0xff]  ;;  %v807_v63 = vld [vmem:[%s9007_s30 + $0x50] sm:$0xff]  ;;  %v808_v1 = vld [vmem:[%s9007_s30 + $0x58] sm:$0xff] }
 0x241   : > { %6312 = vmatpush3.bf16.msra.mxu0 %v6309_v15  ;;  %6915 = vmatpush1.bf16.msra.mxu1 %v6323_v34  ;;  %v6339_v0 = vpack.c.bf16 %v1064_v62, %v1062_v61  ;;  %v809_v2 = vld [vmem:[%s9007_s30 + $0x60] sm:$0xff]  ;;  %v810_v3 = vld [vmem:[%s9007_s30 + $0x68] sm:$0xff]  ;;  %v811_v4 = vld [vmem:[%s9007_s30 + $0x70] sm:$0xff] }
 0x242   : > { %6314 = vmatprep.subr.bf16.mxu0 %v6313_v16  ;;  %6908 = vmatprep.subr.bf16.mxu1 %v6325_v36  ;;  %v812_v5 = vld [vmem:[%s9007_s30 + $0x78] sm:$0xff]  ;;  %v1067_v6 = vld [vmem:[#allocation21 + $0xe8] sm:$0xff]  ;;  %v1066_v9 = vld [vmem:[#allocation21 + $0xe0] sm:$0xff] }
 0x243   : > { %v1069_v7 = vld [vmem:[#allocation21 + $0xf8] sm:$0xff]  ;;  %v1068_v10 = vld [vmem:[#allocation21 + $0xf0] sm:$0xff]  ;;  %v1070_v49 = vld [vmem:[#allocation23] sm:$0x3] }
 0x244   : > { %5594 = vmatmul.mubr.msk.f32.vlgmr.msra.gmra.mrb[0].mxu0 %vm828_vm0, %v798_v28  ;;  %v6341_v8 = vpack.c.bf16 %v1069_v7, %v1067_v6  ;;  %v6343_v11 = vpack.c.bf16 %v1068_v10, %v1066_v9  ;;  %v9082_v13 = vld [vmem:[#allocation15] ss:$0 sm:$0xff] }
 0x245   : > { %5596 = vmatprep.mubr.msk.f32.mxu0 %vm828_vm0, %v799_v31  ;;  %6316 = vmatpush1.bf16.msra.mxu0 %v6315_v20 }
 0x246   : > { %6318 = vmatprep.subr.bf16.mxu0 %v6317_v21  ;;  %6916 = vmatpush1.bf16.msra.mxu1 %v6327_v42 }
 0x247   : > { %6909 = vmatprep.subr.bf16.mxu1 %v6329_v44 }
 0x248   : > { %5597 = vmatmul.mubr.msk.f32.gmra.mrb[2].mxu0 %vm828_vm0, %v800_v35 }
 0x249   : > { %5599 = vmatprep.mubr.msk.f32.mxu0 %vm828_vm0, %v801_v39  ;;  %6320 = vmatpush1.bf16.msra.mxu0 %v6319_v26 }
 0x24a   : > { %6322 = vmatprep.subr.bf16.mxu0 %v6321_v27  ;;  %6917 = vmatpush1.bf16.msra.mxu1 %v6331_v50 }
 0x24b   : > { %6910 = vmatprep.subr.bf16.mxu1 %v6333_v52 }
 0x24c   : > { %5600 = vmatmul.mubr.msk.f32.gmra.mrb[4].mxu0 %vm828_vm0, %v802_v43 }
 0x24d   : > { %5602 = vmatprep.mubr.msk.f32.mxu0 %vm828_vm0, %v803_v47  ;;  %6324 = vmatpush1.bf16.msra.mxu0 %v6323_v34  ;;  %v1073_v47 = vshrl.u32 %v1072_v46, 7 }
 0x24e   : > { %6326 = vmatprep.subr.bf16.mxu0 %v6325_v36  ;;  %6918 = vmatpush1.bf16.msra.mxu1 %v6335_v58 }
 0x24f   : > { %6911 = vmatprep.subr.bf16.mxu1 %v6337_v60  ;;  %v1074_v48 = vsub.s32 0, %v1073_v47 }
 0x250   : > { %5603 = vmatmul.mubr.msk.f32.gmra.mrb[6].mxu0 %vm828_vm0, %v804_v51 }
 0x251   : > { %5605 = vmatprep.mubr.msk.f32.mxu0 %vm828_vm0, %v805_v55  ;;  %6328 = vmatpush1.bf16.msra.mxu0 %v6327_v42  ;;  %v9114_v51 = vrot.slane %v1070_v49, %v1074_v48 }
 0x252   : > { %6330 = vmatprep.subr.bf16.mxu0 %v6329_v44  ;;  %6919 = vmatpush1.bf16.msra.mxu1 %v6339_v0 }
 0x253   : > { %6912 = vmatprep.subr.bf16.mxu1 %v6341_v8 }
 0x254   : > { %5606 = vmatmul.mubr.msk.f32.gmra.mrb[8].mxu0 %vm828_vm0, %v806_v59 }
 0x255   : > { %5608 = vmatprep.mubr.msk.f32.mxu0 %vm828_vm0, %v807_v63  ;;  %6332 = vmatpush1.bf16.msra.mxu0 %v6331_v50  ;;  %v1078_v50 = vsub.s32 1, %v1073_v47 }
 0x256   : > { %6334 = vmatprep.subr.bf16.mxu0 %v6333_v52  ;;  %6920 = vmatpush1.bf16.msra.mxu1 %v6343_v11 }
 0x257   : > { %v9116_v52 = vrot.slane %v1070_v49, %v1078_v50 }
 0x258   : > { %5609 = vmatmul.mubr.msk.f32.gmra.mrb[10].mxu0 %vm828_vm0, %v808_v1 }
 0x259   : > { %5611 = vmatprep.mubr.msk.f32.mxu0 %vm828_vm0, %v809_v2  ;;  %6336 = vmatpush1.bf16.msra.mxu0 %v6335_v58 }
 0x25a   : > { %6338 = vmatprep.subr.bf16.mxu0 %v6337_v60 }
 0x25c   : > { %5612 = vmatmul.mubr.msk.f32.gmra.mrb[12].mxu0 %vm828_vm0, %v810_v3 }
 0x25d   : > { %5614 = vmatprep.mubr.msk.f32.mxu0 %vm828_vm0, %v811_v4  ;;  %6340 = vmatpush1.bf16.msra.mxu0 %v6339_v0 }
 0x25e   : > { %6342 = vmatprep.subr.bf16.mxu0 %v6341_v8 }
 0x260   : > { %5615 = vmatmul.mubr.msk.f32.gmra.mrb[14].mxu0 %vm828_vm0, %v812_v5 }
 0x261   : > { %6344 = vmatpush1.bf16.msra.mxu0 %v6343_v11  ;;  %1146 = vmatprep.mubr.f32.mxu0 %v8320_v12 }
 0x317   : > { %v5595_v14 = vpop.f32.mrb[0].mxu0 }
 0x318   : > { %v949_v15 = vadd.f32 %v5595_v14, %v9082_v13  ;;  %v943_v16 = vpop.f32.mrb[1].mxu0 }
 0x319   : > { %v944_v17 = vadd.f32 %v9082_v13, %v943_v16 }
 0x31a   : > { %1023 = vst [vmem:[#allocation2 + $0x8] sm:$0xff] %v949_v15 }
 0x31b   : > { %1022 = vst [vmem:[#allocation2] sm:$0xff] %v944_v17  ;;  %v5598_v18 = vpop.f32.mrb[2].mxu0  ;;  %1147 = vmatmul.mubr.f32.vlgmr.msra.gmra.mrb[16].mxu0 %v944_v17 }
 0x31c   : > { %v959_v19 = vadd.f32 %v5598_v18, %v9082_v13  ;;  %v953_v20 = vpop.f32.mrb[3].mxu0  ;;  %1152 = vmatprep.mubr.f32.mxu0 %v8320_v12 }
 0x31d   : > { %v954_v21 = vadd.f32 %v9082_v13, %v953_v20 }
 0x31e   : > { %1025 = vst [vmem:[#allocation2 + $0x18] sm:$0xff] %v959_v19 }
 0x31f   : > { %1024 = vst [vmem:[#allocation2 + $0x10] sm:$0xff] %v954_v21  ;;  %v5601_v22 = vpop.f32.mrb[4].mxu0  ;;  %1153 = vmatmul.mubr.f32.gmra.mrb[18].mxu0 %v949_v15 }
 0x320   : > { %v969_v23 = vadd.f32 %v5601_v22, %v9082_v13  ;;  %v963_v24 = vpop.f32.mrb[5].mxu0  ;;  %1158 = vmatprep.mubr.f32.mxu0 %v8320_v12 }
 0x321   : > { %v964_v25 = vadd.f32 %v9082_v13, %v963_v24 }
 0x322   : > { %1027 = vst [vmem:[#allocation2 + $0x28] sm:$0xff] %v969_v23 }
 0x323   : > { %1026 = vst [vmem:[#allocation2 + $0x20] sm:$0xff] %v964_v25  ;;  %v5604_v26 = vpop.f32.mrb[6].mxu0  ;;  %1159 = vmatmul.mubr.f32.gmra.mrb[20].mxu0 %v954_v21 }
 0x324   : > { %v979_v27 = vadd.f32 %v5604_v26, %v9082_v13  ;;  %v973_v28 = vpop.f32.mrb[7].mxu0  ;;  %1164 = vmatprep.mubr.f32.mxu0 %v8320_v12 }
 0x325   : > { %v974_v29 = vadd.f32 %v9082_v13, %v973_v28 }
 0x326   : > { %1029 = vst [vmem:[#allocation2 + $0x38] sm:$0xff] %v979_v27 }
 0x327   : > { %1028 = vst [vmem:[#allocation2 + $0x30] sm:$0xff] %v974_v29  ;;  %1165 = vmatmul.mubr.f32.gmra.mrb[22].mxu0 %v959_v19  ;;  %1183 = vmatmul.mubr.f32.vlgmr.msra.gmra.mrb[0].mxu1 %v974_v29  ;;  %v5607_v30 = vpop.f32.mrb[8].mxu0 }
 0x328   : > { %v989_v31 = vadd.f32 %v5607_v30, %v9082_v13  ;;  %1170 = vmatprep.mubr.f32.mxu0 %v8320_v12  ;;  %1188 = vmatprep.mubr.f32.mxu1 %v8320_v12  ;;  %v983_v32 = vpop.f32.mrb[9].mxu0 }
 0x329   : > { %v984_v33 = vadd.f32 %v9082_v13, %v983_v32 }
 0x32a   : > { %1031 = vst [vmem:[#allocation2 + $0x48] sm:$0xff] %v989_v31 }
 0x32b   : > { %1030 = vst [vmem:[#allocation2 + $0x40] sm:$0xff] %v984_v33  ;;  %1171 = vmatmul.mubr.f32.gmra.mrb[24].mxu0 %v964_v25  ;;  %1189 = vmatmul.mubr.f32.gmra.mrb[2].mxu1 %v979_v27  ;;  %v5610_v34 = vpop.f32.mrb[10].mxu0 }
 0x32c   : > { %1176 = vmatprep.mubr.f32.mxu0 %v8320_v12  ;;  %1194 = vmatprep.mubr.f32.mxu1 %v8320_v12  ;;  %v999_v35 = vadd.f32 %v5610_v34, %v9082_v13  ;;  %v993_v36 = vpop.f32.mrb[11].mxu0 }
 0x32d   : > { %v994_v37 = vadd.f32 %v9082_v13, %v993_v36 }
 0x32e   : > { %1033 = vst [vmem:[#allocation2 + $0x58] sm:$0xff] %v999_v35 }
 0x32f   : > { %1177 = vmatmul.mubr.f32.gmra.mrb[26].mxu0 %v969_v23  ;;  %1195 = vmatmul.mubr.f32.gmra.mrb[4].mxu1 %v984_v33  ;;  %1032 = vst [vmem:[#allocation2 + $0x50] sm:$0xff] %v994_v37  ;;  %v5613_v38 = vpop.f32.mrb[12].mxu0 }
 0x330   : > { %1200 = vmatprep.mubr.f32.mxu1 %v8320_v12  ;;  %v1009_v39 = vadd.f32 %v5613_v38, %v9082_v13  ;;  %v1003_v40 = vpop.f32.mrb[13].mxu0 }
 0x331   : > { %v1004_v41 = vadd.f32 %v9082_v13, %v1003_v40 }
 0x332   : > { %1035 = vst [vmem:[#allocation2 + $0x68] sm:$0xff] %v1009_v39 }
 0x333   : > { %1201 = vmatmul.mubr.f32.gmra.mrb[6].mxu1 %v989_v31  ;;  %1034 = vst [vmem:[#allocation2 + $0x60] sm:$0xff] %v1004_v41  ;;  %v5616_v42 = vpop.f32.mrb[14].mxu0 }
 0x334   : > { %1206 = vmatprep.mubr.f32.mxu1 %v8320_v12  ;;  %v1019_v43 = vadd.f32 %v5616_v42, %v9082_v13  ;;  %v1013_v44 = vpop.f32.mrb[15].mxu0 }
 0x335   : > { %v1014_v45 = vadd.f32 %v9082_v13, %v1013_v44 }
 0x336   : > { %1037 = vst [vmem:[#allocation2 + $0x78] sm:$0xff] %v1019_v43 }
 0x337   : > { %1207 = vmatmul.mubr.f32.gmra.mrb[8].mxu1 %v994_v37  ;;  %1036 = vst [vmem:[#allocation2 + $0x70] sm:$0xff] %v1014_v45 }
 0x338   : > { %1212 = vmatprep.mubr.f32.mxu1 %v8320_v12 }
 0x33b   : > { %1213 = vmatmul.mubr.f32.gmra.mrb[10].mxu1 %v999_v35 }
 0x33c   : > { %1218 = vmatprep.mubr.f32.mxu1 %v8320_v12 }
 0x33f   : > { %1219 = vmatmul.mubr.f32.gmra.mrb[12].mxu1 %v1004_v41 }
 0x340   : > { %1224 = vmatprep.mubr.f32.mxu1 %v8320_v12 }
 0x343   : > { %1225 = vmatmul.mubr.f32.gmra.mrb[14].mxu1 %v1009_v39 }
 0x344   : > { %1230 = vmatprep.mubr.f32.mxu1 %v8320_v12 }
 0x347   : > { %1231 = vmatmul.mubr.f32.gmra.mrb[16].mxu1 %v1014_v45 }
 0x348   : > { %1236 = vmatprep.mubr.f32.mxu1 %v8320_v12 }
 0x34b   : > { %1237 = vmatmul.mubr.f32.gmra.mrb[18].mxu1 %v1019_v43 }
 0x3ee   : > { %v1148_v53 = vpop.f32.mrb[16].mxu0 }
 0x3ef   : > { %v1149_v54 = vadd.f32 %v1148_v53, %v9114_v51  ;;  %v1150_v55 = vpop.f32.mrb[17].mxu0 }
 0x3f0   : > { %v1151_v56 = vadd.f32 %v1150_v55, %v9116_v52 }
 0x3f1   : > { %1243 = vst [vmem:[#allocation3] sm:$0xff] %v1149_v54 }
 0x3f2   : > { %1244 = vst [vmem:[#allocation3 + $0x8] sm:$0xff] %v1151_v56  ;;  %v1154_v57 = vpop.f32.mrb[18].mxu0 }
 0x3f3   : > { %v1155_v58 = vadd.f32 %v1154_v57, %v9114_v51  ;;  %v1156_v59 = vpop.f32.mrb[19].mxu0 }
 0x3f4   : > { %v1157_v60 = vadd.f32 %v1156_v59, %v9116_v52 }
 0x3f5   : > { %1245 = vst [vmem:[#allocation3 + $0x10] sm:$0xff] %v1155_v58 }
 0x3f6   : > { %1246 = vst [vmem:[#allocation3 + $0x18] sm:$0xff] %v1157_v60  ;;  %v1160_v61 = vpop.f32.mrb[20].mxu0 }
 0x3f7   : > { %v1161_v62 = vadd.f32 %v1160_v61, %v9114_v51  ;;  %v1162_v63 = vpop.f32.mrb[21].mxu0 }
 0x3f8   : > { %v1163_v0 = vadd.f32 %v1162_v63, %v9116_v52 }
 0x3f9   : > { %1247 = vst [vmem:[#allocation3 + $0x20] sm:$0xff] %v1161_v62 }
 0x3fa   : > { %1248 = vst [vmem:[#allocation3 + $0x28] sm:$0xff] %v1163_v0  ;;  %v1166_v1 = vpop.f32.mrb[22].mxu0  ;;  %v1184_v2 = vpop.f32.mrb[0].mxu1 }
 0x3fb   : > { %v1167_v3 = vadd.f32 %v1166_v1, %v9114_v51  ;;  %v1185_v4 = vadd.f32 %v1184_v2, %v9114_v51  ;;  %v1168_v5 = vpop.f32.mrb[23].mxu0  ;;  %v1186_v6 = vpop.f32.mrb[1].mxu1 }
 0x3fc   : > { %v1169_v7 = vadd.f32 %v1168_v5, %v9116_v52  ;;  %v1187_v8 = vadd.f32 %v1186_v6, %v9116_v52 }
 0x3fd   : > { %1249 = vst [vmem:[#allocation3 + $0x30] sm:$0xff] %v1167_v3  ;;  %1255 = vst [vmem:[#allocation3 + $0x60] sm:$0xff] %v1185_v4 }
 0x3fe   : > { %1250 = vst [vmem:[#allocation3 + $0x38] sm:$0xff] %v1169_v7  ;;  %1256 = vst [vmem:[#allocation3 + $0x68] sm:$0xff] %v1187_v8  ;;  %v1172_v9 = vpop.f32.mrb[24].mxu0  ;;  %v1190_v10 = vpop.f32.mrb[2].mxu1 }
 0x3ff   : > { %v1173_v11 = vadd.f32 %v1172_v9, %v9114_v51  ;;  %v1191_v12 = vadd.f32 %v1190_v10, %v9114_v51  ;;  %v1174_v13 = vpop.f32.mrb[25].mxu0  ;;  %v1192_v14 = vpop.f32.mrb[3].mxu1 }
 0x400   : > { %v1175_v15 = vadd.f32 %v1174_v13, %v9116_v52  ;;  %v1193_v16 = vadd.f32 %v1192_v14, %v9116_v52 }
 0x401   : > { %1251 = vst [vmem:[#allocation3 + $0x40] sm:$0xff] %v1173_v11  ;;  %1257 = vst [vmem:[#allocation3 + $0x70] sm:$0xff] %v1191_v12 }
 0x402   : > { %1252 = vst [vmem:[#allocation3 + $0x48] sm:$0xff] %v1175_v15  ;;  %1258 = vst [vmem:[#allocation3 + $0x78] sm:$0xff] %v1193_v16  ;;  %v1178_v17 = vpop.f32.mrb[26].mxu0  ;;  %v1196_v18 = vpop.f32.mrb[4].mxu1 }
 0x403   : > { %v1179_v19 = vadd.f32 %v1178_v17, %v9114_v51  ;;  %v1197_v20 = vadd.f32 %v1196_v18, %v9114_v51  ;;  %v1180_v21 = vpop.f32.mrb[27].mxu0  ;;  %v1198_v22 = vpop.f32.mrb[5].mxu1 }
 0x404   : > { %v1181_v23 = vadd.f32 %v1180_v21, %v9116_v52  ;;  %v1199_v24 = vadd.f32 %v1198_v22, %v9116_v52 }
 0x405   : > { %1253 = vst [vmem:[#allocation3 + $0x50] sm:$0xff] %v1179_v19  ;;  %1259 = vst [vmem:[#allocation3 + $0x80] sm:$0xff] %v1197_v20 }
 0x406   : > { %1254 = vst [vmem:[#allocation3 + $0x58] sm:$0xff] %v1181_v23  ;;  %1260 = vst [vmem:[#allocation3 + $0x88] sm:$0xff] %v1199_v24  ;;  %v1202_v25 = vpop.f32.mrb[6].mxu1 }
 0x407   : > { %v1203_v26 = vadd.f32 %v1202_v25, %v9114_v51  ;;  %v1204_v27 = vpop.f32.mrb[7].mxu1 }
 0x408   : > { %v1205_v28 = vadd.f32 %v1204_v27, %v9116_v52 }
 0x409   : > { %1261 = vst [vmem:[#allocation3 + $0x90] sm:$0xff] %v1203_v26 }
 0x40a   : > { %1262 = vst [vmem:[#allocation3 + $0x98] sm:$0xff] %v1205_v28  ;;  %v1208_v29 = vpop.f32.mrb[8].mxu1 }
 0x40b   : > { %v1209_v30 = vadd.f32 %v1208_v29, %v9114_v51  ;;  %v1210_v31 = vpop.f32.mrb[9].mxu1 }
 0x40c   : > { %v1211_v32 = vadd.f32 %v1210_v31, %v9116_v52 }
 0x40d   : > { %1263 = vst [vmem:[#allocation3 + $0xa0] sm:$0xff] %v1209_v30 }
 0x40e   : > { %1264 = vst [vmem:[#allocation3 + $0xa8] sm:$0xff] %v1211_v32  ;;  %v1214_v33 = vpop.f32.mrb[10].mxu1 }
 0x40f   : > { %v1215_v34 = vadd.f32 %v1214_v33, %v9114_v51  ;;  %v1216_v35 = vpop.f32.mrb[11].mxu1 }
 0x410   : > { %v1217_v36 = vadd.f32 %v1216_v35, %v9116_v52 }
 0x411   : > { %1265 = vst [vmem:[#allocation3 + $0xb0] sm:$0xff] %v1215_v34 }
 0x412   : > { %1266 = vst [vmem:[#allocation3 + $0xb8] sm:$0xff] %v1217_v36  ;;  %v1220_v37 = vpop.f32.mrb[12].mxu1 }
 0x413   : > { %v1221_v38 = vadd.f32 %v1220_v37, %v9114_v51  ;;  %v1222_v39 = vpop.f32.mrb[13].mxu1 }
 0x414   : > { %v1223_v40 = vadd.f32 %v1222_v39, %v9116_v52 }
 0x415   : > { %1267 = vst [vmem:[#allocation3 + $0xc0] sm:$0xff] %v1221_v38 }
 0x416   : > { %1268 = vst [vmem:[#allocation3 + $0xc8] sm:$0xff] %v1223_v40  ;;  %v1226_v41 = vpop.f32.mrb[14].mxu1 }
 0x417   : > { %v1227_v42 = vadd.f32 %v1226_v41, %v9114_v51  ;;  %v1228_v43 = vpop.f32.mrb[15].mxu1 }
 0x418   : > { %v1229_v44 = vadd.f32 %v1228_v43, %v9116_v52 }
 0x419   : > { %1269 = vst [vmem:[#allocation3 + $0xd0] sm:$0xff] %v1227_v42 }
 0x41a   : > { %1270 = vst [vmem:[#allocation3 + $0xd8] sm:$0xff] %v1229_v44  ;;  %v1232_v45 = vpop.f32.mrb[16].mxu1 }
 0x41b   : > { %v1233_v46 = vadd.f32 %v1232_v45, %v9114_v51  ;;  %v1234_v47 = vpop.f32.mrb[17].mxu1 }
 0x41c   : > { %v1235_v48 = vadd.f32 %v1234_v47, %v9116_v52 }
 0x41d   : > { %1271 = vst [vmem:[#allocation3 + $0xe0] sm:$0xff] %v1233_v46 }
 0x41e   : > { %1272 = vst [vmem:[#allocation3 + $0xe8] sm:$0xff] %v1235_v48  ;;  %v1238_v49 = vpop.f32.mrb[18].mxu1 }
 0x41f   : > { %v1239_v50 = vadd.f32 %v1238_v49, %v9114_v51  ;;  %v1240_v53 = vpop.f32.mrb[19].mxu1 }
 0x420   : > { %v1241_v54 = vadd.f32 %v1240_v53, %v9116_v52 }
 0x421   : > { %1273 = vst [vmem:[#allocation3 + $0xf0] sm:$0xff] %v1239_v50 }
 0x422   : > { %1274 = vst [vmem:[#allocation3 + $0xf8] sm:$0xff] %v1241_v54 }
 0x423 PF: > { %v1299_v55 = vld [vmem:[#allocation11] sm:$0xff]  ;;  %v1300_v56 = vld [vmem:[#allocation11 + $0x8] sm:$0xff]  ;;  %v1301_v57 = vld [vmem:[#allocation11 + $0x10] sm:$0xff]  ;;  %vm1314_vm1 = vcmask 523264   ;;  %s8321_s11 = smov 96   ;;  %vm2173_vm2 = vcmask 261120  }
 0x424   : > { %v6345_v58 = vpack.c.bf16 %v1300_v56, %v1299_v55  ;;  %v1302_v59 = vld [vmem:[#allocation11 + $0x18] sm:$0xff]  ;;  %v1303_v61 = vld [vmem:[#allocation11 + $0x20] sm:$0xff]  ;;  %v1304_v62 = vld [vmem:[#allocation11 + $0x28] sm:$0xff]  ;;  %s8323_s21 = smov 64   ;;  %s8324_s17 = smov 32  }
 0x425   : > { %v6349_v60 = vpack.c.bf16 %v1302_v59, %v1301_v57  ;;  %v1275_v63 = vld [vmem:[%s8999_s28] sm:$0xff]  ;;  %v6353_v51 = vpack.c.bf16 %v1304_v62, %v1303_v61  ;;  %v1305_v52 = vld [vmem:[#allocation11 + $0x30] sm:$0xff]  ;;  %v1284_v1 = vld [vmem:[#allocation2 + $0x8] sm:$0xff]  ;;  %s9910_s25 = sld [smem:[#allocation5]]  ;;  %s10289_s23 = sld [smem:[#allocation50_spill]] }
 0x426   : > { %6346 = vmatprep.subr.bf16.mxu1 %v6345_v58  ;;  %5633 = vmatprep.mubr.msk.f32.mxu1 %vm1314_vm1, %v1275_v63  ;;  %v1283_v0 = vld [vmem:[#allocation2] sm:$0xff]  ;;  %v1306_v2 = vld [vmem:[#allocation11 + $0x38] sm:$0xff]  ;;  %v1285_v4 = vld [vmem:[#allocation2 + $0x10] sm:$0xff]  ;;  %s10290_s12 = sld [smem:[#allocation51_spill]]  ;;  %s4715_s29 = sshll.u32 %s9045_s19, 4  ;;  %s10040_s29 = int_to_ptr.vmem [resolvable:$true] %s4715_s29 }
 0x427   : > { %6348 = vmatpush3.bf16.msra.mxu1 %v6345_v58  ;;  %v6361_v3 = vpack.c.bf16 %v1284_v1, %v1283_v0  ;;  %v1286_v5 = vld [vmem:[#allocation2 + $0x18] sm:$0xff]  ;;  %v6357_v7 = vpack.c.bf16 %v1306_v2, %v1305_v52  ;;  %v1287_v8 = vld [vmem:[#allocation2 + $0x20] sm:$0xff]  ;;  %v1288_v9 = vld [vmem:[#allocation2 + $0x28] sm:$0xff]  ;;  %s10291_s5 = sld [smem:[#allocation81_spill]]  ;;  %s4700_s30 = scalar_lea.sflag [#allocation8], %s8995_s6 }
 0x428   : > { %6350 = vmatprep.subr.bf16.mxu1 %v6349_v60  ;;  %v6365_v6 = vpack.c.bf16 %v1286_v5, %v1285_v4  ;;  %v6369_v10 = vpack.c.bf16 %v1288_v9, %v1287_v8  ;;  %v1289_v11 = vld [vmem:[#allocation2 + $0x30] sm:$0xff]  ;;  %v1290_v12 = vld [vmem:[#allocation2 + $0x38] sm:$0xff]  ;;  %v1276_v13 = vld [vmem:[%s8999_s28 + $0x8] sm:$0xff]  ;;  %s8140_s4 = scalar_lea.vmem %s10040_s29, 1024  ;;  %p10292_p12 = scmp.ne.s32.totalorder %s10226_s18, 0 }
 0x429   : > { %6394 = vmatprep.subr.bf16.mxu0 %v6361_v3  ;;  %v6373_v14 = vpack.c.bf16 %v1290_v12, %v1289_v11  ;;  %v1277_v15 = vld [vmem:[%s8999_s28 + $0x10] sm:$0xff]  ;;  %v1291_v16 = vld [vmem:[#allocation2 + $0x40] sm:$0xff]  ;;  %v1292_v17 = vld [vmem:[#allocation2 + $0x48] sm:$0xff]  ;;  %p8141_p10 = scmp.ne.s32.totalorder %s10040_s29, %s8140_s4 }
 0x42a   : > { %6396 = vmatpush3.bf16.msra.mxu0 %v6361_v3  ;;  %v1278_v18 = vld [vmem:[%s8999_s28 + $0x18] sm:$0xff]  ;;  %v6377_v19 = vpack.c.bf16 %v1292_v17, %v1291_v16  ;;  %v1279_v20 = vld [vmem:[%s8999_s28 + $0x20] sm:$0xff]  ;;  %v1293_v21 = vld [vmem:[#allocation2 + $0x50] sm:$0xff] }
 0x42b   : > { %6352 = vmatpush3.bf16.msra.mxu1 %v6349_v60  ;;  %6398 = vmatprep.subr.bf16.mxu0 %v6365_v6  ;;  %v1294_v22 = vld [vmem:[#allocation2 + $0x58] sm:$0xff]  ;;  %v1280_v23 = vld [vmem:[%s8999_s28 + $0x28] sm:$0xff]  ;;  %v1281_v25 = vld [vmem:[%s8999_s28 + $0x30] sm:$0xff]  ;;  %s5171_s7 = sshll.u32 %s10289_s23, 3  ;;  %p8142_p13 = pnand %p8141_p10, %p10292_p12 }
 0x42c   : > { %6354 = vmatprep.subr.bf16.mxu1 %v6353_v51  ;;  %v6381_v24 = vpack.c.bf16 %v1294_v22, %v1293_v21  ;;  %v1295_v26 = vld [vmem:[#allocation2 + $0x60] sm:$0xff]  ;;  %v1296_v27 = vld [vmem:[#allocation2 + $0x68] sm:$0xff]  ;;  %v1282_v28 = vld [vmem:[%s8999_s28 + $0x38] sm:$0xff]  ;;  %s5172_s8 = sshll.u32 %s10290_s12, 4 }
 0x42d   : > { %v6385_v29 = vpack.c.bf16 %v1296_v27, %v1295_v26  ;;  %v1297_v30 = vld [vmem:[#allocation2 + $0x70] sm:$0xff]  ;;  %v1298_v31 = vld [vmem:[#allocation2 + $0x78] sm:$0xff]  ;;  %v5022_v33 = vld [vmem:[#allocation12] ss:$0 sm:$0xff]  ;;  %s4712_s28 = sadd.s32 %s5172_s8, %s5171_s7  ;;  %p8143_p11 = pneg %p8142_p13 }
 0x42e   : > { %6400 = vmatpush3.bf16.msra.mxu0 %v6365_v6  ;;  %v6389_v32 = vpack.c.bf16 %v1298_v31, %v1297_v30  ;;  %v9211_v2 = vld [vmem:[#allocation3 + $0x20] sm:$0xff]  ;;  %v9217_v5 = vld [vmem:[#allocation3 + $0x10] sm:$0xff]  ;;  %vm9279_vm3 = vmpackc.low %vm2173_vm2, %vm2173_vm2  ;;  %s5173_s27 = sshll.u32 %s4712_s28, 7 }
 0x42f   : > { %6356 = vmatpush3.bf16.msra.mxu1 %v6353_v51  ;;  %6402 = vmatprep.subr.bf16.mxu0 %v6369_v10  ;;  %v9215_v4 = vld [vmem:[#allocation3] sm:$0xff]  ;;  %v9223_v8 = vld [vmem:[#allocation3 + $0x50] sm:$0xff]  ;;  %s10038_s1 = scalar_lea.hbm %s10291_s5, %s5173_s27 }
 0x430   : > { %6358 = vmatprep.subr.bf16.mxu1 %v6357_v7  ;;  %v7220_v9 = vpack.i.bf16 %v9217_v5, %v9215_v4  ;;  %v1770_v11 = vld [vmem:[#allocation17 + $0x18] sm:$0xff]  ;;  %v9236_v17 = vld [vmem:[#allocation3 + $0x70] sm:$0xff] }
 0x431   : > { %v9227_v12 = vld [vmem:[#allocation3 + $0x80] sm:$0xff]  ;;  %v9260_v27 = vld [vmem:[#allocation3 + $0xf0] sm:$0xff] }
 0x432   : > { %6404 = vmatpush3.bf16.msra.mxu0 %v6369_v10  ;;  %v9234_v16 = vld [vmem:[#allocation3 + $0x60] sm:$0xff] }
 0x433   : > { %6360 = vmatpush3.bf16.msra.mxu1 %v6357_v7  ;;  %6406 = vmatprep.subr.bf16.mxu0 %v6373_v14  ;;  %v9221_v7 = vld [vmem:[#allocation3 + $0x40] sm:$0xff]  ;;  %v7235_v21 = vpack.i.bf16 %v9236_v17, %v9234_v16 }
 0x434   : > { %6362 = vmatprep.subr.bf16.mxu1 %v6361_v3  ;;  %v9248_v22 = vld [vmem:[#allocation3 + $0xa0] sm:$0xff] }
 0x435   : > { %v9258_v26 = vld [vmem:[#allocation3 + $0xe0] sm:$0xff] }
 0x436   : > { %5634 = vmatmul.mubr.msk.f32.vlgmr.msra.gmra.mrb[0].mxu1 %vm1314_vm1, %v1276_v13  ;;  %6408 = vmatpush3.bf16.msra.mxu0 %v6373_v14  ;;  %v9229_v13 = vld [vmem:[#allocation3 + $0x90] sm:$0xff] }
 0x437   : > { %5636 = vmatprep.mubr.msk.f32.mxu1 %vm1314_vm1, %v1277_v15  ;;  %6410 = vmatprep.subr.bf16.mxu0 %v6377_v19  ;;  %v7230_v15 = vpack.i.bf16 %v9223_v8, %v9221_v7 }
 0x43a   : > { %5637 = vmatmul.mubr.msk.f32.gmra.mrb[2].mxu1 %vm1314_vm1, %v1278_v18  ;;  %6412 = vmatpush3.bf16.msra.mxu0 %v6377_v19  ;;  %v7240_v18 = vpack.i.bf16 %v9229_v13, %v9227_v12 }
 0x43b   : > { %5639 = vmatprep.mubr.msk.f32.mxu1 %vm1314_vm1, %v1279_v20  ;;  %6414 = vmatprep.subr.bf16.mxu0 %v6381_v24  ;;  %v9243_v20 = vld [vmem:[#allocation3 + $0xd0] sm:$0xff] }
 0x43c   : > { %6364 = vmatpush3.bf16.xpose.msra.mxu1 %v6361_v3  ;;  %v9213_v3 = vld [vmem:[#allocation3 + $0x30] sm:$0xff] }
 0x43d   : > { %6366 = vmatprep.subr.bf16.mxu1 %v6365_v6 }
 0x43e   : > { %5640 = vmatmul.mubr.msk.f32.gmra.mrb[4].mxu1 %vm1314_vm1, %v1280_v23  ;;  %6416 = vmatpush3.bf16.msra.mxu0 %v6381_v24  ;;  %v9250_v23 = vld [vmem:[#allocation3 + $0xb0] sm:$0xff] }
 0x43f   : > { %5642 = vmatprep.mubr.msk.f32.mxu1 %vm1314_vm1, %v1281_v25  ;;  %6418 = vmatprep.subr.bf16.mxu0 %v6385_v29  ;;  %v7245_v25 = vpack.i.bf16 %v9250_v23, %v9248_v22 }
 0x442   : > { %5643 = vmatmul.mubr.msk.f32.gmra.mrb[6].mxu1 %vm1314_vm1, %v1282_v28  ;;  %6420 = vmatpush3.bf16.msra.mxu0 %v6385_v29  ;;  %v7255_v28 = vpack.i.bf16 %v9260_v27, %v9258_v26 }
 0x443   : > { %6422 = vmatprep.subr.bf16.mxu0 %v6389_v32 }
 0x444   : > { %6368 = vmatpush3.bf16.xpose.msra.mxu1 %v6365_v6  ;;  %v7225_v6 = vpack.i.bf16 %v9213_v3, %v9211_v2 }
 0x445   : > { %6370 = vmatprep.subr.bf16.mxu1 %v6369_v10 }
 0x446   : > { %6424 = vmatpush3.bf16.msra.mxu0 %v6389_v32 }
 0x44c   : > { %6372 = vmatpush3.bf16.xpose.msra.mxu1 %v6369_v10  ;;  %v1768_v10 = vld [vmem:[#allocation17 + $0x8] sm:$0xff] }
 0x44d   : > { %6374 = vmatprep.subr.bf16.mxu1 %v6373_v14 }
 0x454   : > { %6376 = vmatpush3.bf16.xpose.msra.mxu1 %v6373_v14  ;;  %v6425_v14 = vpack.c.bf16 %v1770_v11, %v1768_v10 }
 0x455   : > { %6378 = vmatprep.subr.bf16.mxu1 %v6377_v19 }
 0x456   : > { %6426 = vmatprep.subr.bf16.mxu0 %v6425_v14  ;;  %v1773_v14 = vld [vmem:[#allocation17 + $0x30] sm:$0xff] }
 0x45c   : > { %6380 = vmatpush3.bf16.xpose.msra.mxu1 %v6377_v19  ;;  %v9241_v19 = vld [vmem:[#allocation3 + $0xc0] sm:$0xff] }
 0x45d   : > { %6382 = vmatprep.subr.bf16.mxu1 %v6381_v24 }
 0x464   : > { %6384 = vmatpush3.bf16.xpose.msra.mxu1 %v6381_v24  ;;  %v7250_v24 = vpack.i.bf16 %v9243_v20, %v9241_v19 }
 0x465   : > { %6386 = vmatprep.subr.bf16.mxu1 %v6385_v29 }
 0x46c   : > { %6388 = vmatpush3.bf16.xpose.msra.mxu1 %v6385_v29 }
 0x46d   : > { %6390 = vmatprep.subr.bf16.mxu1 %v6389_v32 }
 0x474   : > { %6392 = vmatpush3.bf16.xpose.msra.mxu1 %v6389_v32 }
 0x509   : > { %v5635_v34 = vpop.f32.mrb[0].mxu1 }
 0x50a   : > { %v1405_v35 = vpop.f32.mrb[1].mxu1  ;;  %v9168_v37 = vadd.f32 %v5635_v34, %v5022_v33 }
 0x50b   : > { %v9166_v36 = vadd.f32 %v5022_v33, %v1405_v35 }
 0x50c   : > { %10263 = vst [vmem:[#allocation56_spill] sm:$0xff] %v9168_v37 }
 0x50d   : > { %v5638_v38 = vpop.f32.mrb[2].mxu1  ;;  %5677 = vmatprep.mubr.f32.mxu1 %v9166_v36 }
 0x50e   : > { %v9171_v39 = vadd.f32 %v5638_v38, %v5022_v33  ;;  %v1415_v40 = vpop.f32.mrb[3].mxu1  ;;  %5678 = vmatmul.mubr.f32.vlgmr.msra.gmra.mrb[8].mxu1 %v9168_v37 }
 0x50f   : > { %v9174_v41 = vadd.f32 %v5022_v33, %v1415_v40 }
 0x510   : > { %10264 = vst [vmem:[#allocation57_spill] sm:$0xff] %v9171_v39 }
 0x511   : > { %10265 = vst [vmem:[#allocation58_spill] sm:$0xff] %v9174_v41  ;;  %v5641_v42 = vpop.f32.mrb[4].mxu1  ;;  %5680 = vmatprep.mubr.f32.mxu1 %v9174_v41 }
 0x512   : > { %v9177_v43 = vadd.f32 %v5641_v42, %v5022_v33  ;;  %v1425_v44 = vpop.f32.mrb[5].mxu1  ;;  %5681 = vmatmul.mubr.f32.gmra.mrb[10].mxu1 %v9171_v39 }
 0x513   : > { %v9180_v45 = vadd.f32 %v5022_v33, %v1425_v44 }
 0x514   : > { %10266 = vst [vmem:[#allocation59_spill] sm:$0xff] %v9177_v43 }
 0x515   : > { %10267 = vst [vmem:[#allocation60_spill] sm:$0xff] %v9180_v45  ;;  %v5644_v46 = vpop.f32.mrb[6].mxu1  ;;  %5683 = vmatprep.mubr.f32.mxu1 %v9180_v45 }
 0x516   : > { %v9183_v47 = vadd.f32 %v5644_v46, %v5022_v33  ;;  %v1435_v48 = vpop.f32.mrb[7].mxu1  ;;  %5684 = vmatmul.mubr.f32.gmra.mrb[12].mxu1 %v9177_v43 }
 0x517   : > { %v9186_v49 = vadd.f32 %v5022_v33, %v1435_v48 }
 0x518   : > { %10268 = vst [vmem:[#allocation61_spill] sm:$0xff] %v9183_v47 }
 0x519   : > { %10269 = vst [vmem:[#allocation62_spill] sm:$0xff] %v9186_v49  ;;  %5686 = vmatprep.mubr.f32.mxu1 %v9186_v49 }
 0x51a   : > { %5687 = vmatmul.mubr.f32.gmra.mrb[14].mxu1 %v9183_v47 }
 0x5e1   : > { %v5679_v50 = vpop.f32.mrb[8].mxu1 }
 0x5e2   : > { %v1510_v53 = vpop.f32.mrb[9].mxu1  ;;  %v9190_v57 = vmul.f32 0.088388346, %v5679_v50 }
 0x5e3   : > { %v1549_v54 = vmul.f32 0.088388346, %v1510_v53 }
 0x5e5   : > { %1557 = vmax.xlane.f32.xlu0 %v1549_v54  ;;  %v5682_v55 = vpop.f32.mrb[10].mxu1 }
 0x5e6   : > { %v1520_v56 = vpop.f32.mrb[11].mxu1  ;;  %v9194_v59 = vmul.f32 0.088388346, %v5682_v55 }
 0x5e7   : > { %v9192_v58 = vmul.f32 0.088388346, %v1520_v56 }
 0x5e9   : > { %1559 = vmax.xlane.f32.xlu0 %v9190_v57  ;;  %1561 = vmax.xlane.f32.xlu1 %v9192_v58  ;;  %v5685_v60 = vpop.f32.mrb[12].mxu1 }
 0x5ea   : > { %v1530_v61 = vpop.f32.mrb[13].mxu1  ;;  %v9200_v63 = vmul.f32 0.088388346, %v5685_v60  ;;  %v1769_v60 = vld [vmem:[#allocation17 + $0x10] sm:$0xff] }
 0x5eb   : > { %v9198_v62 = vmul.f32 0.088388346, %v1530_v61 }
 0x5ed   : > { %1563 = vmax.xlane.f32.xlu1 %v9194_v59  ;;  %1565 = vmax.xlane.f32.xlu0 %v9198_v62  ;;  %v5688_v51 = vpop.f32.mrb[14].mxu1 }
 0x5ee   : > { %v1540_v52 = vpop.f32.mrb[15].mxu1  ;;  %v9206_v1 = vmul.f32 0.088388346, %v5688_v51 }
 0x5ef   : > { %v9204_v0 = vmul.f32 0.088388346, %v1540_v52 }
 0x5f1   : > { %1567 = vmax.xlane.f32.xlu1 %v9200_v63  ;;  %1569 = vmax.xlane.f32.xlu0 %v9204_v0 }
 0x5f5   : > { %1571 = vmax.xlane.f32.xlu1 %v9206_v1 }
 0x606   : > { %7226 = vrot.lane.b32.xlu1 %v7225_v6, %s8321_s11  ;;  %v1772_v6 = vld [vmem:[#allocation17 + $0x28] sm:$0xff] }
 0x607   : > { %7221 = vrot.lane.b32.xlu0 %v7220_v9, %s8321_s11 }
 0x60a   : > { %7231 = vrot.lane.b32.xlu1 %v7230_v15, %s8321_s11 }
 0x60b   : > { %7241 = vrot.lane.b32.xlu0 %v7240_v18, %s8321_s11  ;;  %v1776_v18 = vld [vmem:[#allocation17 + $0x48] sm:$0xff] }
 0x60e   : > { %7236 = vrot.lane.b32.xlu1 %v7235_v21, %s8321_s11  ;;  %v1778_v21 = vld [vmem:[#allocation17 + $0x58] sm:$0xff] }
 0x60f   : > { %7251 = vrot.lane.b32.xlu0 %v7250_v24, %s8321_s11 }
 0x612   : > { %7246 = vrot.lane.b32.xlu1 %v7245_v25, %s8321_s11 }
 0x616   : > { %7256 = vrot.lane.b32.xlu1 %v7255_v28, %s8321_s11  ;;  %v6433_v28 = vpack.c.bf16 %v1778_v21, %v1776_v18  ;;  %v1795_v21 = vld [vmem:[#allocation17 + $0xe0] sm:$0xff] }
 0x672   : > { %v1558_v29 = vpop.xlane.xlu0 %1557 }
 0x673   : > { %v1573_v30 = vsub.f32 %v1549_v54, %v1558_v29  ;;  %v1777_v29 = vld [vmem:[#allocation17 + $0x50] sm:$0xff] }
 0x675   : > { %v1581_v31 = vmul.f32 1.442695, %v1573_v30 }
 0x676   : > { %v1560_v32 = vpop.xlane.xlu0 %1559  ;;  %v1562_v33 = vpop.xlane.xlu1 %1561 }
 0x677   : > { %7460 = vpow2.f32 %v1581_v31  ;;  %v1574_v34 = vsub.f32 %v9190_v57, %v1560_v32  ;;  %v1575_v35 = vsub.f32 %v9192_v58, %v1562_v33  ;;  %v1767_v58 = vld [vmem:[#allocation17] sm:$0xff]  ;;  %v1780_v31 = vld [vmem:[#allocation17 + $0x68] sm:$0xff]  ;;  %v1782_v32 = vld [vmem:[#allocation17 + $0x78] sm:$0xff] }
 0x678   : > { %v6427_v10 = vpack.c.bf16 %v1769_v60, %v1767_v58  ;;  %v1790_v58 = vld [vmem:[#allocation17 + $0xb8] sm:$0xff] }
 0x679   : > { %v1583_v38 = vmul.f32 1.442695, %v1574_v34  ;;  %v1585_v40 = vmul.f32 1.442695, %v1575_v35  ;;  %v6437_v35 = vpack.c.bf16 %v1782_v32, %v1780_v31  ;;  %v4439_v32 = vld [vmem:[#allocation29 + $0x28] sm:$0xff] }
 0x67a   : > { %v1564_v42 = vpop.xlane.xlu1 %1563  ;;  %v1566_v44 = vpop.xlane.xlu0 %1565 }
 0x67b   : > { %7462 = vpow2.f32 %v1583_v38  ;;  %v1576_v46 = vsub.f32 %v9194_v59, %v1564_v42  ;;  %v1577_v48 = vsub.f32 %v9198_v62, %v1566_v44  ;;  %v1774_v59 = vld [vmem:[#allocation17 + $0x38] sm:$0xff]  ;;  %v1779_v38 = vld [vmem:[#allocation17 + $0x60] sm:$0xff]  ;;  %v1784_v44 = vld [vmem:[#allocation17 + $0x88] sm:$0xff] }
 0x67c   : > { %7464 = vpow2.f32 %v1585_v40  ;;  %v6429_v11 = vpack.c.bf16 %v1774_v59, %v1772_v6  ;;  %v1781_v40 = vld [vmem:[#allocation17 + $0x70] sm:$0xff]  ;;  %v1792_v6 = vld [vmem:[#allocation17 + $0xc8] sm:$0xff]  ;;  %v1794_v59 = vld [vmem:[#allocation17 + $0xd8] sm:$0xff] }
 0x67d   : > { %v1587_v50 = vmul.f32 1.442695, %v1576_v46  ;;  %v1589_v53 = vmul.f32 1.442695, %v1577_v48  ;;  %v1786_v46 = vld [vmem:[#allocation17 + $0x98] sm:$0xff] }
 0x67e   : > { %v1568_v54 = vpop.xlane.xlu1 %1567  ;;  %v1570_v55 = vpop.xlane.xlu0 %1569 }
 0x67f   : > { %7466 = vpow2.f32 %v1587_v50  ;;  %v1578_v56 = vsub.f32 %v9200_v63, %v1568_v54  ;;  %v1579_v57 = vsub.f32 %v9204_v0, %v1570_v55  ;;  %v1771_v63 = vld [vmem:[#allocation17 + $0x20] sm:$0xff]  ;;  %v6439_v50 = vpack.c.bf16 %v1781_v40, %v1779_v38  ;;  %v1785_v55 = vld [vmem:[#allocation17 + $0x90] sm:$0xff] }
 0x680   : > { %7468 = vpow2.f32 %v1589_v53  ;;  %v6431_v25 = vpack.c.bf16 %v1773_v14, %v1771_v63  ;;  %v6441_v53 = vpack.c.bf16 %v1786_v46, %v1784_v44  ;;  %v1783_v54 = vld [vmem:[#allocation17 + $0x80] sm:$0xff]  ;;  %v1793_v63 = vld [vmem:[#allocation17 + $0xd0] sm:$0xff]  ;;  %v1796_v14 = vld [vmem:[#allocation17 + $0xe8] sm:$0xff] }
 0x681   : > { %v7461_v61 = vpop.eup %7460  ;;  %v1591_v51 = vmul.f32 1.442695, %v1578_v56  ;;  %v1593_v52 = vmul.f32 1.442695, %v1579_v57  ;;  %v1788_v57 = vld [vmem:[#allocation17 + $0xa8] sm:$0xff]  ;;  %v6443_v60 = vpack.c.bf16 %v1785_v55, %v1783_v54  ;;  %v1930_v40 = vld [vmem:[#allocation20 + $0x30] sm:$0xff] }
 0x682   : > { %5721 = vmatprep.mubr.f32.mxu0 %v7461_v61  ;;  %v1572_v62 = vpop.xlane.xlu1 %1571  ;;  %1702 = vadd.xlane.f32.xlu0 %v7461_v61  ;;  %v6445_v61 = vpack.c.bf16 %v1790_v58, %v1788_v57  ;;  %v1929_v38 = vld [vmem:[#allocation20 + $0x28] sm:$0xff]  ;;  %v1932_v46 = vld [vmem:[#allocation20 + $0x40] sm:$0xff]  ;;  %v6513_v58 = vpack.c.bf16 %v9229_v13, %v9227_v12  ;;  %v6531_v12 = vpack.c.bf16 %v9260_v27, %v9258_v26  ;;  %v1801_v13 = vlaneseq }
 0x683   : > { %7470 = vpow2.f32 %v1591_v51  ;;  %v1580_v9 = vsub.f32 %v9206_v1, %v1572_v62  ;;  %v1775_v1 = vld [vmem:[#allocation17 + $0x40] sm:$0xff]  ;;  %v8322_v62 = vmov 0.0  }
 0x684   : > { %7472 = vpow2.f32 %v1593_v52  ;;  %v6435_v34 = vpack.c.bf16 %v1777_v29, %v1775_v1  ;;  %v1787_v51 = vld [vmem:[#allocation17 + $0xa0] sm:$0xff]  ;;  %v1789_v52 = vld [vmem:[#allocation17 + $0xb0] sm:$0xff]  ;;  %v6489_v29 = vpack.c.bf16 %v9217_v5, %v9215_v4  ;;  %v6495_v5 = vpack.c.bf16 %v9213_v3, %v9211_v2 }
 0x685   : > { %v7463_v0 = vpop.eup %7462  ;;  %v1595_v15 = vmul.f32 1.442695, %v1580_v9  ;;  %v6447_v9 = vpack.c.bf16 %v1789_v52, %v1787_v51  ;;  %v1925_v1 = vld [vmem:[#allocation20 + $0x8] sm:$0xff]  ;;  %v6501_v3 = vpack.c.bf16 %v9223_v8, %v9221_v7  ;;  %v1936_v55 = vld [vmem:[#allocation20 + $0x60] sm:$0xff]  ;;  %v6507_v8 = vpack.c.bf16 %v9236_v17, %v9234_v16  ;;  %v1938_v16 = vld [vmem:[#allocation20 + $0x70] sm:$0xff]  ;;  %v7222_v51 = vpop.permute.xlu0 %7221 }
 0x686   : > { %v7465_v24 = vpop.eup %7464  ;;  %5722 = vmatmul.mubr.f32.vlgmr.msra.gmra.mrb[0].mxu0 %v7463_v0  ;;  %1704 = vadd.xlane.f32.xlu1 %v7463_v0  ;;  %v1798_v0 = vld [vmem:[#allocation17 + $0xf8] sm:$0xff]  ;;  %v9342_v52 = vshrl.u32 %v1801_v13, 7  ;;  %v9354_v27 = vpop.permute.xlu1 %7226 }
 0x687   : > { %7474 = vpow2.f32 %v1595_v15  ;;  %6428 = vmatpush1.bf16.msra.mxu0 %v6427_v10  ;;  %1706 = vadd.xlane.f32.xlu0 %v7465_v24  ;;  %v6449_v10 = vpack.c.bf16 %v1794_v59, %v1792_v6  ;;  %v6453_v18 = vpack.c.bf16 %v1798_v0, %v1796_v14  ;;  %v1939_v17 = vld [vmem:[#allocation20 + $0x78] sm:$0xff] }
 0x688   : > { %5724 = vmatprep.mubr.f32.mxu0 %v7465_v24  ;;  %6430 = vmatprep.subr.bf16.mxu0 %v6429_v11  ;;  %v1791_v11 = vld [vmem:[#allocation17 + $0xc0] sm:$0xff]  ;;  %v1797_v24 = vld [vmem:[#allocation17 + $0xf0] sm:$0xff]  ;;  %v6485_v57 = vpack.c.bf16 %v1939_v17, %v1938_v16  ;;  %v1803_v16 = vsub.s32 0, %v9342_v52 }
 0x689   : > { %v7467_v30 = vpop.eup %7466  ;;  %v6451_v15 = vpack.c.bf16 %v1793_v63, %v1791_v11 }
 0x68a   : > { %v7469_v33 = vpop.eup %7468  ;;  %5725 = vmatmul.mubr.f32.gmra.mrb[2].mxu0 %v7467_v30  ;;  %1708 = vadd.xlane.f32.xlu1 %v7467_v30  ;;  %v1926_v30 = vld [vmem:[#allocation20 + $0x10] sm:$0xff]  ;;  %v9356_v59 = vpop.permute.xlu1 %7231 }
 0x68b   : > { %6432 = vmatpush1.bf16.msra.mxu0 %v6431_v25  ;;  %5727 = vmatprep.mubr.f32.mxu0 %v7469_v33  ;;  %v6455_v25 = vpack.c.bf16 %v1797_v24, %v1795_v21 }
 0x68c   : > { %6434 = vmatprep.subr.bf16.mxu0 %v6433_v28  ;;  %v1924_v28 = vld [vmem:[#allocation20] sm:$0xff] }
 0x68d   : > { %v7471_v42 = vpop.eup %7470  ;;  %v6457_v31 = vpack.c.bf16 %v1925_v1, %v1924_v28 }
 0x68e   : > { %v7473_v48 = vpop.eup %7472  ;;  %5728 = vmatmul.mubr.f32.gmra.mrb[4].mxu0 %v7471_v42  ;;  %1712 = vadd.xlane.f32.xlu0 %v7471_v42  ;;  %v1931_v42 = vld [vmem:[#allocation20 + $0x38] sm:$0xff] }
 0x68f   : > { %6436 = vmatpush1.bf16.msra.mxu0 %v6435_v34  ;;  %5730 = vmatprep.mubr.f32.mxu0 %v7473_v48  ;;  %v6469_v44 = vpack.c.bf16 %v1931_v42, %v1930_v40 }
 0x690   : > { %6438 = vmatprep.subr.bf16.mxu0 %v6437_v35  ;;  %v1928_v35 = vld [vmem:[#allocation20 + $0x20] sm:$0xff]  ;;  %6458 = vmatprep.subr.bf16.mxu1 %v6457_v31 }
 0x691   : > { %v7475_v56 = vpop.eup %7474  ;;  %6460 = vmatpush3.bf16.msra.mxu1 %v6457_v31  ;;  %v6465_v4 = vpack.c.bf16 %v1929_v38, %v1928_v35 }
 0x692   : > { %1716 = vadd.xlane.f32.xlu1 %v7475_v56  ;;  %1710 = vadd.xlane.f32.xlu0 %v7469_v33  ;;  %v1927_v33 = vld [vmem:[#allocation20 + $0x18] sm:$0xff] }
 0x693   : > { %6440 = vmatpush1.bf16.msra.mxu0 %v6439_v50  ;;  %v6461_v34 = vpack.c.bf16 %v1927_v33, %v1926_v30  ;;  %v1934_v50 = vld [vmem:[#allocation20 + $0x50] sm:$0xff] }
 0x694   : > { %5731 = vmatmul.mubr.f32.gmra.mrb[6].mxu0 %v7475_v56  ;;  %6442 = vmatprep.subr.bf16.mxu0 %v6441_v53  ;;  %v1935_v53 = vld [vmem:[#allocation20 + $0x58] sm:$0xff]  ;;  %v1937_v56 = vld [vmem:[#allocation20 + $0x68] sm:$0xff] }
 0x695   : > { %1875 = vmatprep.mubr.f32.mxu0 %v8322_v62  ;;  %6462 = vmatprep.subr.bf16.mxu1 %v6461_v34  ;;  %v6477_v54 = vpack.c.bf16 %v1935_v53, %v1934_v50  ;;  %v6481_v7 = vpack.c.bf16 %v1937_v56, %v1936_v55 }
 0x696   : > { %1714 = vadd.xlane.f32.xlu0 %v7473_v48  ;;  %6464 = vmatpush3.bf16.msra.mxu1 %v6461_v34  ;;  %v1933_v48 = vld [vmem:[#allocation20 + $0x48] sm:$0xff] }
 0x697   : > { %6444 = vmatpush1.bf16.msra.mxu0 %v6443_v60  ;;  %6466 = vmatprep.subr.bf16.mxu1 %v6465_v4  ;;  %v6473_v2 = vpack.c.bf16 %v1933_v48, %v1932_v46  ;;  %v6519_v60 = vpack.c.bf16 %v9250_v23, %v9248_v22  ;;  %v7224_v22 = vunpack.i.h.bf16 %v7222_v51  ;;  %v7223_v23 = vunpack.i.l.bf16 %v7222_v51 }
 0x698   : > { %6446 = vmatprep.subr.bf16.mxu0 %v6445_v61  ;;  %v6525_v61 = vpack.c.bf16 %v9243_v20, %v9241_v19  ;;  %v1799_v19 = vld [vmem:[#allocation18] sm:$0x3]  ;;  %v1807_v20 = vsub.s32 1, %v9342_v52 }
 0x699   : > { %v9344_v6 = vpack.c.bf16 %v7224_v22, %v7223_v23  ;;  %v1804_v17 = vrot.slane %v1799_v19, %v1803_v16 }
 0x69a   : > { %6468 = vmatpush3.bf16.msra.mxu1 %v6465_v4  ;;  %v9349_v26 = vrot.slane %v1799_v19, %v1807_v20 }
 0x69b   : > { %6448 = vmatpush1.bf16.msra.mxu0 %v6447_v9  ;;  %6470 = vmatprep.subr.bf16.mxu1 %v6469_v44  ;;  %v9360_v9 = vpop.permute.xlu1 %7236 }
 0x69c   : > { %6450 = vmatprep.subr.bf16.mxu0 %v6449_v10 }
 0x69e   : > { %6472 = vmatpush3.bf16.msra.mxu1 %v6469_v44 }
 0x69f   : > { %6452 = vmatpush1.bf16.msra.mxu0 %v6451_v15  ;;  %6474 = vmatprep.subr.bf16.mxu1 %v6473_v2  ;;  %v9364_v11 = vpop.permute.xlu1 %7246 }
 0x6a0   : > { %6454 = vmatprep.subr.bf16.mxu0 %v6453_v18 }
 0x6a2   : > { %6476 = vmatpush3.bf16.msra.mxu1 %v6473_v2 }
 0x6a3   : > { %6456 = vmatpush1.bf16.msra.mxu0 %v6455_v25  ;;  %6478 = vmatprep.subr.bf16.mxu1 %v6477_v54  ;;  %v9366_v14 = vpop.permute.xlu1 %7256 }
 0x6a4   : > { %6491 = vmatprep.subr.msk.bf16.mxu0 %vm9279_vm3, %v6489_v29 }
 0x6a6   : > { %1876 = vmatmul.mubr.f32.vlgmr.msra.gmra.mrb[8].mxu0 %v9166_v36  ;;  %6480 = vmatpush3.bf16.msra.mxu1 %v6477_v54 }
 0x6a7   : > { %1881 = vmatprep.mubr.f32.mxu0 %v8322_v62  ;;  %6482 = vmatprep.subr.bf16.mxu1 %v6481_v7 }
 0x6aa   : > { %1882 = vmatmul.mubr.f32.gmra.mrb[10].mxu0 %v9168_v37  ;;  %6484 = vmatpush3.bf16.msra.mxu1 %v6481_v7 }
 0x6ab   : > { %1887 = vmatprep.mubr.f32.mxu0 %v8322_v62  ;;  %6486 = vmatprep.subr.bf16.mxu1 %v6485_v57 }
 0x6ac   : > { %6494 = vmatpush3.bf16.xpose.msk.msra.mxu0 %vm9279_vm3, %v6489_v29 }
 0x6ad   : > { %6497 = vmatprep.subr.msk.bf16.mxu0 %vm9279_vm3, %v6495_v5 }
 0x6ae   : > { %1888 = vmatmul.mubr.f32.gmra.mrb[12].mxu0 %v9174_v41  ;;  %6488 = vmatpush3.bf16.msra.mxu1 %v6485_v57 }
 0x6af   : > { %1893 = vmatprep.mubr.f32.mxu0 %v8322_v62 }
 0x6b2   : > { %1894 = vmatmul.mubr.f32.gmra.mrb[14].mxu0 %v9171_v39 }
 0x6b3   : > { %1899 = vmatprep.mubr.f32.mxu0 %v8322_v62 }
 0x6b4   : > { %6500 = vmatpush3.bf16.xpose.msk.msra.mxu0 %vm9279_vm3, %v6495_v5 }
 0x6b5   : > { %6503 = vmatprep.subr.msk.bf16.mxu0 %vm9279_vm3, %v6501_v3 }
 0x6b6   : > { %1900 = vmatmul.mubr.f32.gmra.mrb[16].mxu0 %v9180_v45 }
 0x6b7   : > { %1905 = vmatprep.mubr.f32.mxu0 %v8322_v62 }
 0x6ba   : > { %1906 = vmatmul.mubr.f32.gmra.mrb[18].mxu0 %v9177_v43 }
 0x6bb   : > { %1911 = vmatprep.mubr.f32.mxu0 %v8322_v62 }
 0x6bc   : > { %6506 = vmatpush3.bf16.xpose.msk.msra.mxu0 %vm9279_vm3, %v6501_v3 }
 0x6bd   : > { %6509 = vmatprep.subr.msk.bf16.mxu0 %vm9279_vm3, %v6507_v8 }
 0x6be   : > { %1912 = vmatmul.mubr.f32.gmra.mrb[20].mxu0 %v9186_v49 }
 0x6bf   : > { %1917 = vmatprep.mubr.f32.mxu0 %v8322_v62  ;;  %v9358_v62 = vpop.permute.xlu0 %7241 }
 0x6c2   : > { %1918 = vmatmul.mubr.f32.gmra.mrb[22].mxu0 %v9183_v47 }
 0x6c3   : > { %v9362_v10 = vpop.permute.xlu0 %7251 }
 0x6c4   : > { %6512 = vmatpush3.bf16.xpose.msk.msra.mxu0 %vm9279_vm3, %v6507_v8 }
 0x6c5   : > { %6515 = vmatprep.subr.msk.bf16.mxu0 %vm9279_vm3, %v6513_v58 }
 0x6cc   : > { %6518 = vmatpush3.bf16.xpose.msk.msra.mxu0 %vm9279_vm3, %v6513_v58  ;;  %v7229_v58 = vunpack.i.h.bf16 %v9354_v27 }
 0x6cd   : > { %6521 = vmatprep.subr.msk.bf16.mxu0 %vm9279_vm3, %v6519_v60 }
 0x6d4   : > { %6524 = vmatpush3.bf16.xpose.msk.msra.mxu0 %vm9279_vm3, %v6519_v60  ;;  %v7228_v60 = vunpack.i.l.bf16 %v9354_v27  ;;  %v7234_v27 = vunpack.i.h.bf16 %v9356_v59 }
 0x6d5   : > { %6527 = vmatprep.subr.msk.bf16.mxu0 %vm9279_vm3, %v6525_v61 }
 0x6d6   : > { %v6583_v22 = vpack.c.bf16 %v7229_v58, %v7228_v60 }
 0x6dc   : > { %6530 = vmatpush3.bf16.xpose.msk.msra.mxu0 %vm9279_vm3, %v6525_v61 }
 0x6dd   : > { %6533 = vmatprep.subr.msk.bf16.mxu0 %vm9279_vm3, %v6531_v12 }
 0x6e4   : > { %6536 = vmatpush3.bf16.xpose.msk.msra.mxu0 %vm9279_vm3, %v6531_v12 }
 0x6e5   : > { %6579 = vmatprep.subr.msk.bf16.mxu0 %vm9279_vm3, %v9344_v6 }
 0x70f   : > { %v1703_v63 = vpop.xlane.xlu0 %1702 }
 0x710   : > { %7476 = vrcp.f32 %v1703_v63  ;;  %v7233_v63 = vunpack.i.l.bf16 %v9356_v59 }
 0x713   : > { %v1705_v15 = vpop.xlane.xlu1 %1704 }
 0x714   : > { %v1707_v0 = vpop.xlane.xlu0 %1706  ;;  %7478 = vrcp.f32 %v1705_v15 }
 0x715   : > { %7480 = vrcp.f32 %v1707_v0 }
 0x717   : > { %v1709_v21 = vpop.xlane.xlu1 %1708 }
 0x718   : > { %7482 = vrcp.f32 %v1709_v21  ;;  %v6589_v21 = vpack.c.bf16 %v7234_v27, %v7233_v63 }
 0x71a   : > { %v7477_v28 = vpop.eup %7476 }
 0x71b   : > { %v1713_v18 = vpop.xlane.xlu0 %1712 }
 0x71e   : > { %v7479_v29 = vpop.eup %7478 }
 0x71f   : > { %v1711_v24 = vpop.xlane.xlu0 %1710  ;;  %v1717_v33 = vpop.xlane.xlu1 %1716 }
 0x720   : > { %7484 = vrcp.f32 %v1711_v24  ;;  %v7481_v38 = vpop.eup %7480 }
 0x721   : > { %7486 = vrcp.f32 %v1713_v18 }
 0x722   : > { %v7483_v5 = vpop.eup %7482 }
 0x723   : > { %v1715_v30 = vpop.xlane.xlu0 %1714 }
 0x724   : > { %7488 = vrcp.f32 %v1715_v30 }
 0x725   : > { %7490 = vrcp.f32 %v1717_v33 }
 0x72a   : > { %v7485_v46 = vpop.eup %7484 }
 0x72b   : > { %v7487_v2 = vpop.eup %7486 }
 0x72e   : > { %v7489_v54 = vpop.eup %7488 }
 0x72f   : > { %v7491_v56 = vpop.eup %7490 }
 0x759   : > { %v5723_v25 = vpop.f32.mrb[0].mxu0 }
 0x75a   : > { %v1663_v1 = vpop.f32.mrb[1].mxu0  ;;  %v9370_v34 = vmul.f32 %v7479_v29, %v5723_v25  ;;  %v7238_v29 = vunpack.i.l.bf16 %v9360_v9 }
 0x75b   : > { %v9368_v31 = vmul.f32 %v7477_v28, %v1663_v1  ;;  %v7239_v1 = vunpack.i.h.bf16 %v9360_v9 }
 0x75d   : > { %v5726_v35 = vpop.f32.mrb[2].mxu0  ;;  %5765 = vmatprep.mubr.f32.mxu1 %v9368_v31 }
 0x75e   : > { %v1673_v4 = vpop.f32.mrb[3].mxu0  ;;  %5766 = vmatmul.mubr.f32.vlgmr.msra.gmra.mrb[16].mxu1 %v9370_v34  ;;  %v9376_v42 = vmul.f32 %v7483_v5, %v5726_v35 }
 0x75f   : > { %v9374_v40 = vmul.f32 %v7481_v38, %v1673_v4  ;;  %v6595_v4 = vpack.c.bf16 %v7239_v1, %v7238_v29 }
 0x760   : > { %10272 = vst [vmem:[#allocation63_spill] sm:$0xff] %v9376_v42 }
 0x761   : > { %v5729_v44 = vpop.f32.mrb[4].mxu0  ;;  %5768 = vmatprep.mubr.f32.mxu1 %v9374_v40 }
 0x762   : > { %v1683_v48 = vpop.f32.mrb[5].mxu0  ;;  %5769 = vmatmul.mubr.f32.gmra.mrb[18].mxu1 %v9376_v42  ;;  %v9382_v50 = vmul.f32 %v7487_v2, %v5729_v44  ;;  %v7243_v2 = vunpack.i.l.bf16 %v9358_v62 }
 0x763   : > { %v9380_v3 = vmul.f32 %v7485_v46, %v1683_v48  ;;  %v7244_v48 = vunpack.i.h.bf16 %v9358_v62  ;;  %v7249_v62 = vunpack.i.h.bf16 %v9364_v11 }
 0x764   : > { %10274 = vst [vmem:[#allocation65_spill] sm:$0xff] %v9382_v50 }
 0x765   : > { %10273 = vst [vmem:[#allocation64_spill] sm:$0xff] %v9380_v3  ;;  %5771 = vmatprep.mubr.f32.mxu1 %v9380_v3  ;;  %v6601_v16 = vpack.c.bf16 %v7244_v48, %v7243_v2 }
 0x766   : > { %5772 = vmatmul.mubr.f32.gmra.mrb[20].mxu1 %v9382_v50 }
 0x767   : > { %v5732_v53 = vpop.f32.mrb[6].mxu0 }
 0x768   : > { %v1693_v55 = vpop.f32.mrb[7].mxu0  ;;  %v9388_v8 = vmul.f32 %v7491_v56, %v5732_v53 }
 0x769   : > { %v9386_v7 = vmul.f32 %v7489_v54, %v1693_v55 }
 0x76a   : > { %10276 = vst [vmem:[#allocation67_spill] sm:$0xff] %v9388_v8 }
 0x76b   : > { %10275 = vst [vmem:[#allocation66_spill] sm:$0xff] %v9386_v7  ;;  %5774 = vmatprep.mubr.f32.mxu1 %v9386_v7 }
 0x76c   : > { %5775 = vmatmul.mubr.f32.gmra.mrb[22].mxu1 %v9388_v8 }
 0x779   : > { %v1877_v57 = vpop.f32.mrb[8].mxu0 }
 0x77a   : > { %v9395_v61 = vadd.f32 %v1877_v57, %v1804_v17  ;;  %v1879_v12 = vpop.f32.mrb[9].mxu0 }
 0x77b   : > { %v9398_v13 = vadd.f32 %v1879_v12, %v9349_v26  ;;  %v7248_v12 = vunpack.i.l.bf16 %v9364_v11  ;;  %v7259_v11 = vunpack.i.h.bf16 %v9366_v14 }
 0x77c   : > { %2677 = vrot.lane.b32.xlu0 %v9395_v61, %s8321_s11  ;;  %5809 = vmatprep.mubr.msk.f32.mxu0 %vm2173_vm2, %v9395_v61 }
 0x77d   : > { %v1883_v51 = vpop.f32.mrb[10].mxu0 }
 0x77e   : > { %v9404_v23 = vadd.f32 %v1883_v51, %v1804_v17  ;;  %v1885_v52 = vpop.f32.mrb[11].mxu0  ;;  %v6607_v51 = vpack.c.bf16 %v7249_v62, %v7248_v12 }
 0x77f   : > { %v9407_v19 = vadd.f32 %v1885_v52, %v9349_v26  ;;  %v7258_v52 = vunpack.i.l.bf16 %v9366_v14 }
 0x780   : > { %2679 = vrot.lane.b32.xlu1 %v9404_v23, %s8321_s11  ;;  %5810 = vmatmul.mubr.msk.f32.vlgmr.msra.gmra.mrb[24].mxu0 %vm2173_vm2, %v9404_v23 }
 0x781   : > { %v1889_v20 = vpop.f32.mrb[12].mxu0  ;;  %6582 = vmatpush3.bf16.xpose.msk.msra.mxu0 %vm9279_vm3, %v9344_v6 }
 0x782   : > { %v9418_v0 = vadd.f32 %v1889_v20, %v1804_v17  ;;  %v1891_v15 = vpop.f32.mrb[13].mxu0  ;;  %6585 = vmatprep.subr.msk.bf16.mxu0 %vm9279_vm3, %v6583_v22  ;;  %v6619_v20 = vpack.c.bf16 %v7259_v11, %v7258_v52 }
 0x783   : > { %v9423_v18 = vadd.f32 %v1891_v15, %v9349_v26 }
 0x784   : > { %2681 = vrot.lane.b32.xlu0 %v9418_v0, %s8321_s11  ;;  %5812 = vmatprep.mubr.msk.f32.mxu0 %vm2173_vm2, %v9418_v0 }
 0x785   : > { %v1895_v6 = vpop.f32.mrb[14].mxu0 }
 0x786   : > { %v9429_v24 = vadd.f32 %v1895_v6, %v1804_v17  ;;  %v1897_v59 = vpop.f32.mrb[15].mxu0 }
 0x787   : > { %v9432_v25 = vadd.f32 %v1897_v59, %v9349_v26 }
 0x788   : > { %2683 = vrot.lane.b32.xlu1 %v9429_v24, %s8321_s11  ;;  %5813 = vmatmul.mubr.msk.f32.gmra.mrb[26].mxu0 %vm2173_vm2, %v9429_v24 }
 0x789   : > { %v1901_v28 = vpop.f32.mrb[16].mxu0  ;;  %6588 = vmatpush3.bf16.xpose.msk.msra.mxu0 %vm9279_vm3, %v6583_v22 }
 0x78a   : > { %v9442_v30 = vadd.f32 %v1901_v28, %v1804_v17  ;;  %v1903_v33 = vpop.f32.mrb[17].mxu0  ;;  %6591 = vmatprep.subr.msk.bf16.mxu0 %vm9279_vm3, %v6589_v21 }
 0x78b   : > { %v1904_v35 = vadd.f32 %v1903_v33, %v9349_v26 }
 0x78c   : > { %5815 = vmatprep.mubr.msk.f32.mxu0 %vm2173_vm2, %v9442_v30 }
 0x78d   : > { %v1907_v38 = vpop.f32.mrb[18].mxu0 }
 0x78e   : > { %v9449_v5 = vadd.f32 %v1907_v38, %v1804_v17  ;;  %v1909_v44 = vpop.f32.mrb[19].mxu0 }
 0x78f   : > { %v1910_v46 = vadd.f32 %v1909_v44, %v9349_v26 }
 0x790   : > { %5816 = vmatmul.mubr.msk.f32.gmra.mrb[28].mxu0 %vm2173_vm2, %v9449_v5 }
 0x791   : > { %v1913_v9 = vpop.f32.mrb[20].mxu0  ;;  %6594 = vmatpush3.bf16.xpose.msk.msra.mxu0 %vm9279_vm3, %v6589_v21 }
 0x792   : > { %v9458_v53 = vadd.f32 %v1913_v9, %v1804_v17  ;;  %v1915_v54 = vpop.f32.mrb[21].mxu0  ;;  %6597 = vmatprep.subr.msk.bf16.mxu0 %vm9279_vm3, %v6595_v4 }
 0x793   : > { %v1916_v55 = vadd.f32 %v1915_v54, %v9349_v26  ;;  %v9518_v54 = vld [vmem:[#allocation3 + $0x8] sm:$0xff] }
 0x794   : > { %5818 = vmatprep.mubr.msk.f32.mxu0 %vm2173_vm2, %v9458_v53 }
 0x795   : > { %v1919_v56 = vpop.f32.mrb[22].mxu0 }
 0x796   : > { %v9465_v57 = vadd.f32 %v1919_v56, %v1804_v17  ;;  %v1921_v58 = vpop.f32.mrb[23].mxu0  ;;  %v7254_v17 = vunpack.i.h.bf16 %v9362_v10  ;;  %v9522_v56 = vld [vmem:[#allocation3 + $0x28] sm:$0xff] }
 0x797   : > { %v1922_v60 = vadd.f32 %v1921_v58, %v9349_v26  ;;  %v7253_v26 = vunpack.i.l.bf16 %v9362_v10  ;;  %v9532_v58 = vld [vmem:[#allocation3 + $0x58] sm:$0xff] }
 0x798   : > { %5819 = vmatmul.mubr.msk.f32.gmra.mrb[30].mxu0 %vm2173_vm2, %v9465_v57 }
 0x799   : > { %6600 = vmatpush3.bf16.xpose.msk.msra.mxu0 %vm9279_vm3, %v6595_v4  ;;  %v6613_v22 = vpack.c.bf16 %v7254_v17, %v7253_v26  ;;  %v9541_v17 = vld [vmem:[#allocation3 + $0x68] sm:$0xff]  ;;  %v9543_v26 = vld [vmem:[#allocation3 + $0x78] sm:$0xff] }
 0x79a   : > { %6603 = vmatprep.subr.msk.bf16.mxu0 %vm9279_vm3, %v6601_v16 }
 0x7a1   : > { %6606 = vmatpush3.bf16.xpose.msk.msra.mxu0 %vm9279_vm3, %v6601_v16  ;;  %v9530_v16 = vld [vmem:[#allocation3 + $0x48] sm:$0xff] }
 0x7a2   : > { %6609 = vmatprep.subr.msk.bf16.mxu0 %vm9279_vm3, %v6607_v51 }
 0x7a9   : > { %6612 = vmatpush3.bf16.xpose.msk.msra.mxu0 %vm9279_vm3, %v6607_v51  ;;  %v6545_v51 = vpack.c.bf16 %v9532_v58, %v9530_v16 }
 0x7aa   : > { %6615 = vmatprep.subr.msk.bf16.mxu0 %vm9279_vm3, %v6613_v22 }
 0x7b1   : > { %6618 = vmatpush3.bf16.xpose.msk.msra.mxu0 %vm9279_vm3, %v6613_v22  ;;  %v6549_v22 = vpack.c.bf16 %v9543_v26, %v9541_v17 }
 0x7b2   : > { %6621 = vmatprep.subr.msk.bf16.mxu0 %vm9279_vm3, %v6619_v20 }
 0x7b9   : > { %6624 = vmatpush3.bf16.xpose.msk.msra.mxu0 %vm9279_vm3, %v6619_v20 }
 0x7ee   : > { %v2678_v10 = vpop.permute.xlu0 %2677 }
 0x7ef   : > { %5917 = vmatprep.mubr.msk.f32.mxu0 %vm2173_vm2, %v2678_v10 }
 0x7f2   : > { %v2680_v27 = vpop.permute.xlu1 %2679 }
 0x7f3   : > { %5918 = vmatmul.mubr.msk.f32.vlgmr.msra.gmra.mrb[32].mxu0 %vm2173_vm2, %v2680_v27 }
 0x7f6   : > { %v2682_v14 = vpop.permute.xlu0 %2681 }
 0x7f7   : > { %5920 = vmatprep.mubr.msk.f32.mxu0 %vm2173_vm2, %v2682_v14 }
 0x7fa   : > { %v2684_v63 = vpop.permute.xlu1 %2683 }
 0x7fb   : > { %5921 = vmatmul.mubr.msk.f32.gmra.mrb[34].mxu0 %vm2173_vm2, %v2684_v63 }
 0x831   : > { %v5767_v15 = vpop.f32.mrb[16].mxu1 }
 0x832   : > { %v9499_v6 = vadd.f32 %v5767_v15, %v9407_v19  ;;  %v2006_v21 = vpop.f32.mrb[17].mxu1  ;;  %v9550_v15 = vld [vmem:[#allocation3 + $0x88] sm:$0xff] }
 0x833   : > { %v9502_v59 = vadd.f32 %v2006_v21, %v9398_v13  ;;  %v9552_v21 = vld [vmem:[#allocation3 + $0x98] sm:$0xff] }
 0x835   : > { %v5770_v28 = vpop.f32.mrb[18].mxu1 }
 0x836   : > { %v9505_v1 = vadd.f32 %v5770_v28, %v9432_v25  ;;  %v2016_v29 = vpop.f32.mrb[19].mxu1  ;;  %v9520_v25 = vld [vmem:[#allocation3 + $0x18] sm:$0xff] }
 0x837   : > { %v9508_v33 = vadd.f32 %v2016_v29, %v9423_v18  ;;  %v6537_v18 = vpack.c.bf16 %v9520_v25, %v9518_v54  ;;  %v6553_v29 = vpack.c.bf16 %v9552_v21, %v9550_v15 }
 0x839   : > { %v5773_v38 = vpop.f32.mrb[20].mxu1  ;;  %6538 = vmatprep.subr.bf16.mxu1 %v6537_v18 }
 0x83a   : > { %v9510_v4 = vadd.f32 %v5773_v38, %v1910_v46  ;;  %v2026_v44 = vpop.f32.mrb[21].mxu1  ;;  %v9526_v46 = vld [vmem:[#allocation3 + $0x38] sm:$0xff]  ;;  %6540 = vmatpush3.bf16.msra.mxu1 %v6537_v18  ;;  %v9557_v38 = vld [vmem:[#allocation3 + $0xa8] sm:$0xff] }
 0x83b   : > { %v9512_v9 = vadd.f32 %v2026_v44, %v1904_v35  ;;  %v6541_v35 = vpack.c.bf16 %v9526_v46, %v9522_v56  ;;  %v9559_v44 = vld [vmem:[#allocation3 + $0xb8] sm:$0xff] }
 0x83d   : > { %6542 = vmatprep.subr.bf16.mxu1 %v6541_v35 }
 0x83e   : > { %6544 = vmatpush3.bf16.msra.mxu1 %v6541_v35 }
 0x83f   : > { %v5776_v19 = vpop.f32.mrb[22].mxu1  ;;  %6546 = vmatprep.subr.bf16.mxu1 %v6545_v51 }
 0x840   : > { %v9514_v48 = vadd.f32 %v5776_v19, %v1922_v60  ;;  %v2036_v2 = vpop.f32.mrb[23].mxu1  ;;  %v6557_v19 = vpack.c.bf16 %v9559_v44, %v9557_v38 }
 0x841   : > { %v9516_v13 = vadd.f32 %v2036_v2, %v1916_v55 }
 0x842   : > { %6548 = vmatpush3.bf16.msra.mxu1 %v6545_v51 }
 0x843   : > { %6550 = vmatprep.subr.bf16.mxu1 %v6549_v22 }
 0x846   : > { %6552 = vmatpush3.bf16.msra.mxu1 %v6549_v22  ;;  %v9572_v22 = vld [vmem:[#allocation3 + $0xe8] sm:$0xff] }
 0x847   : > { %6554 = vmatprep.subr.bf16.mxu1 %v6553_v29 }
 0x84a   : > { %6556 = vmatpush3.bf16.msra.mxu1 %v6553_v29 }
 0x84b   : > { %6558 = vmatprep.subr.bf16.mxu1 %v6557_v19 }
 0x84e   : > { %6560 = vmatpush3.bf16.msra.mxu1 %v6557_v19 }
 0x853   : > { %v5811_v55 = vpop.f32.mrb[24].mxu0 }
 0x854   : > { %v9534_v60 = vmul.f32 0.17677669, %v5811_v55  ;;  %v2312_v62 = vpop.f32.mrb[25].mxu0  ;;  %v9565_v55 = vld [vmem:[#allocation3 + $0xc8] sm:$0xff] }
 0x855   : > { %v9536_v12 = vmul.f32 0.17677669, %v2312_v62  ;;  %v9567_v62 = vld [vmem:[#allocation3 + $0xd8] sm:$0xff] }
 0x856   : > { %2361 = vmax.xlane.f32.xlu1 %v9534_v60  ;;  %v6561_v51 = vpack.c.bf16 %v9567_v62, %v9565_v55 }
 0x857   : > { %2359 = vmax.xlane.f32.xlu0 %v9536_v12 }
 0x858   : > { %6562 = vmatprep.subr.bf16.mxu1 %v6561_v51 }
 0x859   : > { %6564 = vmatpush3.bf16.msra.mxu1 %v6561_v51 }
 0x85b   : > { %v5814_v11 = vpop.f32.mrb[26].mxu0 }
 0x85c   : > { %v2354_v52 = vmul.f32 0.17677669, %v5814_v11  ;;  %v2322_v20 = vpop.f32.mrb[27].mxu0  ;;  %v9574_v11 = vld [vmem:[#allocation3 + $0xf8] sm:$0xff] }
 0x85d   : > { %v2353_v10 = vmul.f32 0.17677669, %v2322_v20  ;;  %v6565_v20 = vpack.c.bf16 %v9574_v11, %v9572_v22 }
 0x85e   : > { %2365 = vmax.xlane.f32.xlu1 %v2354_v52 }
 0x85f   : > { %2363 = vmax.xlane.f32.xlu0 %v2353_v10  ;;  %6566 = vmatprep.subr.bf16.mxu1 %v6565_v20 }
 0x860   : > { %6568 = vmatpush3.bf16.msra.mxu1 %v6565_v20 }
 0x863   : > { %v5817_v27 = vpop.f32.mrb[28].mxu0 }
 0x864   : > { %v9548_v14 = vmul.f32 0.17677669, %v5817_v27  ;;  %v2332_v63 = vpop.f32.mrb[29].mxu0 }
 0x865   : > { %v2355_v28 = vmul.f32 0.17677669, %v2332_v63 }
 0x866   : > { %2369 = vmax.xlane.f32.xlu1 %v9548_v14 }
 0x867   : > { %2367 = vmax.xlane.f32.xlu0 %v2355_v28 }
 0x86b   : > { %v5820_v2 = vpop.f32.mrb[30].mxu0 }
 0x86c   : > { %v9563_v18 = vmul.f32 0.17677669, %v5820_v2  ;;  %v2342_v35 = vpop.f32.mrb[31].mxu0 }
 0x86d   : > { %v9584_v27 = vmul.f32 0.17677669, %v2342_v35 }
 0x86e   : > { %2373 = vmax.xlane.f32.xlu0 %v9563_v18 }
 0x877   : > { %2687 = vrot.lane.b32.xlu1 %v9449_v5, %s8321_s11 }
 0x87b   : > { %2689 = vrot.lane.b32.xlu1 %v9458_v53, %s8321_s11 }
 0x884   : > { %2685 = vrot.lane.b32.xlu0 %v9442_v30, %s8321_s11 }
 0x89f   : > { %2371 = vmax.xlane.f32.xlu1 %v9584_v27 }
 0x8b0   : > { %2691 = vrot.lane.b32.xlu1 %v9465_v57, %s8321_s11 }
 0x8c6   : > { %v9589_v63 = vpop.f32.mrb[32].mxu0 }
 0x8c7   : > { %v2839_v29 = vpop.f32.mrb[33].mxu0 }
 0x8ce   : > { %v9591_v19 = vpop.f32.mrb[34].mxu0 }
 0x8cf   : > { %v9593_v2 = vpop.f32.mrb[35].mxu0 }
 0x8e3   : > { %v2362_v51 = vpop.xlane.xlu1 %2361 }
 0x8e4   : > { %v2376_v20 = vsub.f32 %v9534_v60, %v2362_v51  ;;  %v2360_v47 = vpop.xlane.xlu0 %2359 }
 0x8e5   : > { %v2375_v8 = vsub.f32 %v9536_v12, %v2360_v47 }
 0x8e6   : > { %v2385_v35 = vmul.f32 1.442695, %v2376_v20 }
 0x8e7   : > { %v2383_v49 = vmul.f32 1.442695, %v2375_v8 }
 0x8e8   : > { %7492 = vpow2.f32 %v2385_v35  ;;  %v9664_v35 = vmul.f32 0.17677669, %v9591_v19  ;;  %v7659_v19 = vld [vmem:[#allocation3 + $0x70] sm:$0xff] }
 0x8e9   : > { %7494 = vpow2.f32 %v2383_v49 }
 0x8eb   : > { %v2366_v43 = vpop.xlane.xlu1 %2365 }
 0x8ec   : > { %v2378_v7 = vsub.f32 %v2354_v52, %v2366_v43  ;;  %v2364_v50 = vpop.xlane.xlu0 %2363  ;;  %v9606_v52 = vpack.i.bf16 %v9526_v46, %v9522_v56  ;;  %v9636_v56 = vpack.i.bf16 %v9559_v44, %v9557_v38  ;;  %v9642_v46 = vpack.i.bf16 %v9567_v62, %v9565_v55  ;;  %v2538_v62 = vld [vmem:[#allocation24 + $0x10] sm:$0xff] }
 0x8ed   : > { %v2377_v45 = vsub.f32 %v2353_v10, %v2364_v50  ;;  %v9610_v10 = vpack.i.bf16 %v9520_v25, %v9518_v54  ;;  %v9624_v54 = vpack.i.bf16 %v9543_v26, %v9541_v17  ;;  %v9630_v25 = vpack.i.bf16 %v9552_v21, %v9550_v15 }
 0x8ee   : > { %v2389_v39 = vmul.f32 1.442695, %v2378_v7  ;;  %v9601_v7 = vmul.f32 0.17677669, %v2839_v29  ;;  %v2537_v29 = vld [vmem:[#allocation24 + $0x8] sm:$0xff] }
 0x8ef   : > { %v2387_v3 = vmul.f32 1.442695, %v2377_v45  ;;  %v9650_v38 = vmul.f32 0.17677669, %v9589_v63  ;;  %v9659_v63 = vpack.i.bf16 %v9574_v11, %v9572_v22  ;;  %v7658_v11 = vld [vmem:[#allocation3 + $0x60] sm:$0xff] }
 0x8f0   : > { %7496 = vpow2.f32 %v2389_v39 }
 0x8f1   : > { %7498 = vpow2.f32 %v2387_v3 }
 0x8f2   : > { %v7493_v42 = vpop.eup %7492 }
 0x8f3   : > { %v7495_v41 = vpop.eup %7494  ;;  %v2370_v37 = vpop.xlane.xlu1 %2369  ;;  %2506 = vadd.xlane.f32.xlu1 %v7493_v42 }
 0x8f4   : > { %v2380_v60 = vsub.f32 %v9548_v14, %v2370_v37  ;;  %2504 = vadd.xlane.f32.xlu0 %v7495_v41  ;;  %5853 = vmatprep.mubr.f32.mxu1 %v7495_v41  ;;  %v2368_v47 = vpop.xlane.xlu0 %2367  ;;  %v9616_v14 = vpack.i.bf16 %v9532_v58, %v9530_v16 }
 0x8f5   : > { %v2379_v8 = vsub.f32 %v2355_v28, %v2368_v47  ;;  %5854 = vmatmul.mubr.f32.vlgmr.msra.gmra.mrb[24].mxu1 %v7493_v42  ;;  %v2536_v28 = vld [vmem:[#allocation24] sm:$0xff] }
 0x8f6   : > { %v2393_v49 = vmul.f32 1.442695, %v2380_v60  ;;  %v6569_v51 = vpack.c.bf16 %v2537_v29, %v2536_v28 }
 0x8f7   : > { %v2391_v12 = vmul.f32 1.442695, %v2379_v8  ;;  %v2688_v45 = vpop.permute.xlu1 %2687 }
 0x8f8   : > { %7500 = vpow2.f32 %v2393_v49  ;;  %6570 = vmatprep.subr.bf16.mxu1 %v6569_v51 }
 0x8f9   : > { %7502 = vpow2.f32 %v2391_v12  ;;  %6572 = vmatpush3.bf16.msra.mxu1 %v6569_v51 }
 0x8fa   : > { %v7497_v43 = vpop.eup %7496 }
 0x8fb   : > { %v7499_v50 = vpop.eup %7498  ;;  %2510 = vadd.xlane.f32.xlu0 %v7497_v43  ;;  %v2374_v39 = vpop.xlane.xlu0 %2373 }
 0x8fc   : > { %5856 = vmatprep.mubr.f32.mxu1 %v7499_v50  ;;  %v2690_v37 = vpop.permute.xlu1 %2689  ;;  %v2382_v16 = vsub.f32 %v9563_v18, %v2374_v39  ;;  %v9654_v18 = vmul.f32 0.17677669, %v9593_v2 }
 0x8fd   : > { %5857 = vmatmul.mubr.f32.gmra.mrb[26].mxu1 %v7497_v43 }
 0x8fe   : > { %v2397_v26 = vmul.f32 1.442695, %v2382_v16 }
 0x8ff   : > { %2508 = vadd.xlane.f32.xlu0 %v7499_v50  ;;  %v2686_v3 = vpop.permute.xlu0 %2685  ;;  %v7656_v50 = vld [vmem:[#allocation3 + $0x20] sm:$0xff] }
 0x900   : > { %5923 = vmatprep.mubr.msk.f32.mxu0 %vm2173_vm2, %v2686_v3  ;;  %v9671_v3 = vpack.i.bf16 %v7659_v19, %v7658_v11 }
 0x901   : > { %5924 = vmatmul.mubr.msk.f32.gmra.mrb[36].mxu0 %vm2173_vm2, %v2688_v45  ;;  %v7657_v45 = vld [vmem:[#allocation3 + $0x30] sm:$0xff] }
 0x902   : > { %v7501_v41 = vpop.eup %7500  ;;  %5926 = vmatprep.mubr.msk.f32.mxu0 %vm2173_vm2, %v2690_v37  ;;  %v9667_v39 = vpack.i.bf16 %v7657_v45, %v7656_v50  ;;  %v7660_v37 = vld [vmem:[#allocation3 + $0xa0] sm:$0xff] }
 0x903   : > { %v7503_v42 = vpop.eup %7502  ;;  %2514 = vadd.xlane.f32.xlu1 %v7501_v41 }
 0x904   : > { %2512 = vadd.xlane.f32.xlu0 %v7503_v42  ;;  %5859 = vmatprep.mubr.f32.mxu1 %v7503_v42 }
 0x905   : > { %5860 = vmatmul.mubr.f32.gmra.mrb[28].mxu1 %v7501_v41  ;;  %v7661_v41 = vld [vmem:[#allocation3 + $0xb0] sm:$0xff] }
 0x906   : > { %v9675_v42 = vpack.i.bf16 %v7661_v41, %v7660_v37 }
 0x907   : > { %2886 = vmax.xlane.f32.xlu1 %v9601_v7 }
 0x918   : > { %7266 = vrot.lane.b32.xlu1 %v9606_v52, %s8321_s11 }
 0x91a   : > { %7261 = vrot.lane.b32.xlu0 %v9610_v10, %s8321_s11 }
 0x91c   : > { %7271 = vrot.lane.b32.xlu1 %v9616_v14, %s8321_s11 }
 0x920   : > { %7276 = vrot.lane.b32.xlu1 %v9624_v54, %s8321_s11 }
 0x924   : > { %7281 = vrot.lane.b32.xlu1 %v9630_v25, %s8321_s11 }
 0x928   : > { %7286 = vrot.lane.b32.xlu1 %v9636_v56, %s8321_s11 }
 0x92c   : > { %v2372_v58 = vpop.xlane.xlu1 %2371  ;;  %7291 = vrot.lane.b32.xlu1 %v9642_v46, %s8321_s11 }
 0x92d   : > { %v2381_v17 = vsub.f32 %v9584_v27, %v2372_v58  ;;  %v2539_v27 = vld [vmem:[#allocation24 + $0x18] sm:$0xff] }
 0x92e   : > { %v6573_v20 = vpack.c.bf16 %v2539_v27, %v2538_v62 }
 0x92f   : > { %v2395_v15 = vmul.f32 1.442695, %v2381_v17 }
 0x930   : > { %v2692_v21 = vpop.permute.xlu1 %2691  ;;  %6574 = vmatprep.subr.bf16.mxu1 %v6573_v20 }
 0x931   : > { %7504 = vpow2.f32 %v2395_v15  ;;  %5927 = vmatmul.mubr.msk.f32.gmra.mrb[38].mxu0 %vm2173_vm2, %v2692_v21  ;;  %6576 = vmatpush3.bf16.msra.mxu1 %v6573_v20 }
 0x932   : > { %7506 = vpow2.f32 %v2397_v26 }
 0x939   : > { %2888 = vmax.xlane.f32.xlu0 %v9650_v38 }
 0x93b   : > { %v7505_v44 = vpop.eup %7504 }
 0x93c   : > { %v7507_v55 = vpop.eup %7506  ;;  %5862 = vmatprep.mubr.f32.mxu1 %v7505_v44 }
 0x93d   : > { %5863 = vmatmul.mubr.f32.gmra.mrb[30].mxu1 %v7507_v55  ;;  %2890 = vmax.xlane.f32.xlu0 %v9654_v18 }
 0x950   : > { %2518 = vadd.xlane.f32.xlu1 %v7507_v55 }
 0x954   : > { %2516 = vadd.xlane.f32.xlu1 %v7505_v44 }
 0x965   : > { %7296 = vrot.lane.b32.xlu1 %v9659_v63, %s8321_s11  ;;  %s8325_s11 = smov [#allocation32]  }
 0x980   : > { %v2507_v28 = vpop.xlane.xlu1 %2506 }
 0x981   : > { %v2505_v2 = vpop.xlane.xlu0 %2504 }
 0x982   : > { %7508 = vrcp.f32 %v2505_v2 }
 0x983   : > { %7510 = vrcp.f32 %v2507_v28 }
 0x988   : > { %v2511_v60 = vpop.xlane.xlu0 %2510 }
 0x989   : > { %2892 = vmax.xlane.f32.xlu1 %v9664_v35 }
 0x98c   : > { %v2509_v47 = vpop.xlane.xlu0 %2508  ;;  %v7509_v44 = vpop.eup %7508 }
 0x98d   : > { %7512 = vrcp.f32 %v2509_v47  ;;  %v7511_v62 = vpop.eup %7510 }
 0x98e   : > { %7514 = vrcp.f32 %v2511_v60 }
 0x990   : > { %v2515_v29 = vpop.xlane.xlu1 %2514 }
 0x991   : > { %v2513_v8 = vpop.xlane.xlu0 %2512 }
 0x992   : > { %7516 = vrcp.f32 %v2513_v8 }
 0x993   : > { %7518 = vrcp.f32 %v2515_v29 }
 0x994   : > { %v9679_v51 = vpop.xlane.xlu1 %2886 }
 0x995   : > { %v7262_v49 = vpop.permute.xlu0 %7261 }
 0x996   : > { %v7264_v12 = vunpack.i.h.bf16 %v7262_v49  ;;  %v7263_v43 = vunpack.i.l.bf16 %v7262_v49 }
 0x997   : > { %v7513_v11 = vpop.eup %7512 }
 0x998   : > { %v6625_v22 = vpack.c.bf16 %v7264_v12, %v7263_v43  ;;  %v7267_v16 = vpop.permute.xlu1 %7266  ;;  %v7515_v41 = vpop.eup %7514 }
 0x999   : > { %v7269_v26 = vunpack.i.h.bf16 %v7267_v16  ;;  %v7268_v15 = vunpack.i.l.bf16 %v7267_v16 }
 0x99a   : > { %6626 = vmatprep.subr.bf16.mxu1 %v6625_v22  ;;  %7306 = vrot.lane.b32.xlu1 %v9667_v39, %s8323_s21 }
 0x99b   : > { %v6629_v50 = vpack.c.bf16 %v7269_v26, %v7268_v15 }
 0x99c   : > { %v7272_v58 = vpop.permute.xlu1 %7271 }
 0x99d   : > { %v7274_v49 = vunpack.i.h.bf16 %v7272_v58  ;;  %v7273_v12 = vunpack.i.l.bf16 %v7272_v58 }
 0x99e   : > { %7316 = vrot.lane.b32.xlu1 %v9671_v3, %s8323_s21 }
 0x99f   : > { %v6633_v60 = vpack.c.bf16 %v7274_v49, %v7273_v12 }
 0x9a0   : > { %v7277_v17 = vpop.permute.xlu1 %7276 }
 0x9a1   : > { %v7279_v2 = vunpack.i.h.bf16 %v7277_v17  ;;  %v7278_v47 = vunpack.i.l.bf16 %v7277_v17 }
 0x9a2   : > { %7326 = vrot.lane.b32.xlu1 %v9675_v42, %s8323_s21 }
 0x9a3   : > { %v6637_v15 = vpack.c.bf16 %v7279_v2, %v7278_v47 }
 0x9a4   : > { %v7282_v43 = vpop.permute.xlu1 %7281 }
 0x9a5   : > { %v7284_v58 = vunpack.i.h.bf16 %v7282_v43  ;;  %v7283_v26 = vunpack.i.l.bf16 %v7282_v43 }
 0x9a7   : > { %v6641_v29 = vpack.c.bf16 %v7284_v58, %v7283_v26  ;;  %v2902_v26 = vsub.f32 %v9601_v7, %v9679_v51 }
 0x9a8   : > { %v7287_v37 = vpop.permute.xlu1 %7286 }
 0x9c6   : > { %v2889_v58 = vpop.xlane.xlu0 %2888 }
 0x9c8   : > { %v5855_v21 = vpop.f32.mrb[24].mxu1 }
 0x9c9   : > { %v2465_v55 = vpop.f32.mrb[25].mxu1  ;;  %v2529_v20 = vmul.f32 %v7511_v62, %v5855_v21  ;;  %v7289_v21 = vunpack.i.h.bf16 %v7287_v37 }
 0x9ca   : > { %v2528_v27 = vmul.f32 %v7509_v44, %v2465_v55  ;;  %v7288_v44 = vunpack.i.l.bf16 %v7287_v37  ;;  %v7292_v55 = vpop.permute.xlu1 %7291 }
 0x9cb   : > { %v7294_v47 = vunpack.i.h.bf16 %v7292_v55 }
 0x9cc   : > { %5873 = vmatprep.mubr.msk.f32.mxu1 %vm2173_vm2, %v2528_v27  ;;  %v7517_v27 = vpop.eup %7516 }
 0x9cd   : > { %5874 = vmatmul.mubr.msk.f32.vlgmr.msra.gmra.mrb[32].mxu1 %vm2173_vm2, %v2529_v20  ;;  %v7519_v49 = vpop.eup %7518 }
 0x9ce   : > { %6628 = vmatpush3.bf16.msra.mxu1 %v6625_v22 }
 0x9cf   : > { %6630 = vmatprep.subr.bf16.mxu1 %v6629_v50 }
 0x9d0   : > { %v5858_v45 = vpop.f32.mrb[26].mxu1 }
 0x9d1   : > { %v2475_v19 = vpop.f32.mrb[27].mxu1  ;;  %v2531_v16 = vmul.f32 %v7515_v41, %v5858_v45  ;;  %v7293_v45 = vunpack.i.l.bf16 %v7292_v55 }
 0x9d2   : > { %v2530_v28 = vmul.f32 %v7513_v11, %v2475_v19  ;;  %6632 = vmatpush3.bf16.msra.mxu1 %v6629_v50  ;;  %v6645_v50 = vpack.c.bf16 %v7289_v21, %v7288_v44  ;;  %v2910_v44 = vmul.f32 1.442695, %v2902_v26 }
 0x9d3   : > { %6634 = vmatprep.subr.bf16.mxu1 %v6633_v60  ;;  %v6649_v11 = vpack.c.bf16 %v7294_v47, %v7293_v45 }
 0x9d4   : > { %5876 = vmatprep.mubr.msk.f32.mxu1 %vm2173_vm2, %v2530_v28  ;;  %v5925_v8 = vpop.f32.mrb[36].mxu0 }
 0x9d5   : > { %5877 = vmatmul.mubr.msk.f32.gmra.mrb[34].mxu1 %vm2173_vm2, %v2531_v16  ;;  %v2859_v22 = vpop.f32.mrb[37].mxu0  ;;  %v9688_v12 = vmul.f32 0.17677669, %v5925_v8 }
 0x9d6   : > { %v9685_v17 = vmul.f32 0.17677669, %v2859_v22  ;;  %6636 = vmatpush3.bf16.msra.mxu1 %v6633_v60 }
 0x9d7   : > { %6638 = vmatprep.subr.bf16.mxu1 %v6637_v15 }
 0x9d8   : > { %v5861_v62 = vpop.f32.mrb[28].mxu1  ;;  %2894 = vmax.xlane.f32.xlu0 %v9685_v17 }
 0x9d9   : > { %v2485_v20 = vpop.f32.mrb[29].mxu1  ;;  %v2533_v2 = vmul.f32 %v7519_v49, %v5861_v62 }
 0x9da   : > { %v2532_v43 = vmul.f32 %v7517_v27, %v2485_v20  ;;  %6640 = vmatpush3.bf16.msra.mxu1 %v6637_v15  ;;  %v2891_v15 = vpop.xlane.xlu0 %2890 }
 0x9db   : > { %6642 = vmatprep.subr.bf16.mxu1 %v6641_v29  ;;  %v2904_v55 = vsub.f32 %v9654_v18, %v2891_v15  ;;  %v7667_v15 = vld [vmem:[#allocation3 + $0xf0] sm:$0xff] }
 0x9dc   : > { %5879 = vmatprep.mubr.msk.f32.mxu1 %vm2173_vm2, %v2532_v43  ;;  %2896 = vmax.xlane.f32.xlu0 %v9688_v12 }
 0x9dd   : > { %5880 = vmatmul.mubr.msk.f32.gmra.mrb[36].mxu1 %vm2173_vm2, %v2533_v2  ;;  %v2519_v60 = vpop.xlane.xlu1 %2518  ;;  %v2914_v20 = vmul.f32 1.442695, %v2904_v55 }
 0x9de   : > { %6644 = vmatpush3.bf16.msra.mxu1 %v6641_v29  ;;  %v2903_v29 = vsub.f32 %v9650_v38, %v2889_v58 }
 0x9df   : > { %6646 = vmatprep.subr.bf16.mxu1 %v6645_v50 }
 0x9e0   : > { %v2912_v62 = vmul.f32 1.442695, %v2903_v29  ;;  %v3128_v29 = vld [vmem:[#allocation24 + $0x28] sm:$0xff] }
 0x9e1   : > { %v2517_v19 = vpop.xlane.xlu1 %2516 }
 0x9e2   : > { %6648 = vmatpush3.bf16.msra.mxu1 %v6645_v50  ;;  %7520 = vrcp.f32 %v2517_v19  ;;  %v7662_v19 = vld [vmem:[#allocation3] sm:$0xff] }
 0x9e3   : > { %6650 = vmatprep.subr.bf16.mxu1 %v6649_v11  ;;  %7522 = vrcp.f32 %v2519_v60 }
 0x9e4   : > { %7524 = vpow2.f32 %v2910_v44  ;;  %v3129_v44 = vld [vmem:[#allocation24 + $0x30] sm:$0xff] }
 0x9e5   : > { %v7297_v37 = vpop.permute.xlu1 %7296  ;;  %7526 = vpow2.f32 %v2912_v62  ;;  %v3130_v62 = vld [vmem:[#allocation24 + $0x38] sm:$0xff] }
 0x9e6   : > { %v7299_v41 = vunpack.i.h.bf16 %v7297_v37  ;;  %v7298_v28 = vunpack.i.l.bf16 %v7297_v37  ;;  %6652 = vmatpush3.bf16.msra.mxu1 %v6649_v11  ;;  %7528 = vpow2.f32 %v2914_v20  ;;  %v7663_v37 = vld [vmem:[#allocation3 + $0x10] sm:$0xff]  ;;  %v6661_v20 = vpack.c.bf16 %v3130_v62, %v3129_v44 }
 0x9e8   : > { %v6653_v16 = vpack.c.bf16 %v7299_v41, %v7298_v28  ;;  %v9706_v41 = vpack.i.bf16 %v7663_v37, %v7662_v19  ;;  %v7664_v28 = vld [vmem:[#allocation3 + $0x40] sm:$0xff] }
 0x9ea   : > { %6654 = vmatprep.subr.bf16.mxu1 %v6653_v16 }
 0x9eb   : > { %6656 = vmatpush3.bf16.msra.mxu1 %v6653_v16  ;;  %v7665_v16 = vld [vmem:[#allocation3 + $0x50] sm:$0xff] }
 0x9ec   : > { %v7521_v38 = vpop.eup %7520  ;;  %v9710_v58 = vpack.i.bf16 %v7665_v16, %v7664_v28 }
 0x9ed   : > { %v7523_v49 = vpop.eup %7522 }
 0x9ee   : > { %v7525_v18 = vpop.eup %7524 }
 0x9ef   : > { %v7527_v45 = vpop.eup %7526 }
 0x9f0   : > { %v7529_v60 = vpop.eup %7528 }
 0xa04   : > { %v5928_v8 = vpop.f32.mrb[38].mxu0 }
 0xa05   : > { %v2869_v22 = vpop.f32.mrb[39].mxu0  ;;  %v9700_v27 = vmul.f32 0.17677669, %v5928_v8 }
 0xa06   : > { %v9696_v21 = vmul.f32 0.17677669, %v2869_v22  ;;  %v3127_v22 = vld [vmem:[#allocation24 + $0x20] sm:$0xff] }
 0xa07   : > { %v6657_v55 = vpack.c.bf16 %v3128_v29, %v3127_v22 }
 0xa08   : > { %2898 = vmax.xlane.f32.xlu0 %v9696_v21 }
 0xa09   : > { %6658 = vmatprep.subr.bf16.mxu1 %v6657_v55 }
 0xa0c   : > { %2900 = vmax.xlane.f32.xlu0 %v9700_v27 }
 0xa10   : > { %v5864_v7 = vpop.f32.mrb[30].mxu1 }
 0xa11   : > { %v2495_v51 = vpop.f32.mrb[31].mxu1  ;;  %v2535_v50 = vmul.f32 %v7523_v49, %v5864_v7  ;;  %v7668_v7 = vld [vmem:[#allocation3 + $0x80] sm:$0xff] }
 0xa12   : > { %v2534_v43 = vmul.f32 %v7521_v38, %v2495_v51  ;;  %v7669_v38 = vld [vmem:[#allocation3 + $0x90] sm:$0xff] }
 0xa13   : > { %v9718_v51 = vpack.i.bf16 %v7669_v38, %v7668_v7 }
 0xa14   : > { %5882 = vmatprep.mubr.msk.f32.mxu1 %vm2173_vm2, %v2534_v43 }
 0xa15   : > { %5883 = vmatmul.mubr.msk.f32.gmra.mrb[38].mxu1 %vm2173_vm2, %v2535_v50 }
 0xa16   : > { %5961 = vmatprep.mubr.f32.mxu1 %v7525_v18  ;;  %v2893_v2 = vpop.xlane.xlu1 %2892 }
 0xa17   : > { %v2905_v47 = vsub.f32 %v9664_v35, %v2893_v2  ;;  %v7666_v35 = vld [vmem:[#allocation3 + $0xe0] sm:$0xff] }
 0xa18   : > { %v9714_v8 = vpack.i.bf16 %v7667_v15, %v7666_v35 }
 0xa19   : > { %v2916_v11 = vmul.f32 1.442695, %v2905_v47  ;;  %5962 = vmatmul.mubr.f32.vlgmr.msra.gmra.mrb[40].mxu1 %v7527_v45 }
 0xa1a   : > { %5964 = vmatprep.mubr.f32.mxu1 %v7529_v60  ;;  %6660 = vmatpush3.bf16.msra.mxu1 %v6657_v55  ;;  %v7307_v7 = vpop.permute.xlu1 %7306 }
 0xa1b   : > { %7530 = vpow2.f32 %v2916_v11  ;;  %6662 = vmatprep.subr.bf16.mxu1 %v6661_v20  ;;  %v7309_v38 = vunpack.i.h.bf16 %v7307_v7 }
 0xa1e   : > { %6664 = vmatpush3.bf16.msra.mxu1 %v6661_v20 }
 0xa22   : > { %7301 = vrot.lane.b32.xlu0 %v9706_v41, %s8323_s21 }
 0xa25   : > { %v7531_v26 = vpop.eup %7530 }
 0xa26   : > { %3101 = vadd.xlane.f32.xlu1 %v7531_v26  ;;  %5965 = vmatmul.mubr.f32.gmra.mrb[42].mxu1 %v7531_v26  ;;  %v7671_v26 = vld [vmem:[#allocation3 + $0xd0] sm:$0xff] }
 0xa27   : > { %7311 = vrot.lane.b32.xlu0 %v9710_v58, %s8323_s21 }
 0xa37   : > { %7336 = vrot.lane.b32.xlu1 %v9714_v8, %s8323_s21 }
 0xa46   : > { %3097 = vadd.xlane.f32.xlu0 %v7527_v45 }
 0xa4a   : > { %3095 = vadd.xlane.f32.xlu0 %v7525_v18 }
 0xa60   : > { %7321 = vrot.lane.b32.xlu0 %v9718_v51, %s8323_s21 }
 0xa65   : > { %v2895_v49 = vpop.xlane.xlu0 %2894 }
 0xa66   : > { %v2906_v43 = vsub.f32 %v9685_v17, %v2895_v49  ;;  %v7670_v17 = vld [vmem:[#allocation3 + $0xc0] sm:$0xff]  ;;  %v7308_v49 = vunpack.i.l.bf16 %v7307_v7 }
 0xa67   : > { %v9725_v35 = vpack.i.bf16 %v7671_v26, %v7670_v17  ;;  %v7317_v26 = vpop.permute.xlu1 %7316 }
 0xa68   : > { %v2918_v50 = vmul.f32 1.442695, %v2906_v43 }
 0xa69   : > { %v2897_v18 = vpop.xlane.xlu0 %2896 }
 0xa6a   : > { %7532 = vpow2.f32 %v2918_v50  ;;  %v2907_v2 = vsub.f32 %v9688_v12, %v2897_v18 }
 0xa6c   : > { %v2920_v47 = vmul.f32 1.442695, %v2907_v2 }
 0xa6e   : > { %7534 = vpow2.f32 %v2920_v47 }
 0xa74   : > { %v7533_v45 = vpop.eup %7532 }
 0xa75   : > { %5967 = vmatprep.mubr.f32.mxu1 %v7533_v45 }
 0xa78   : > { %v7535_v11 = vpop.eup %7534 }
 0xa79   : > { %5968 = vmatmul.mubr.f32.gmra.mrb[44].mxu1 %v7535_v11 }
 0xa7f   : > { %3099 = vadd.xlane.f32.xlu0 %v7529_v60 }
 0xa83   : > { %3105 = vadd.xlane.f32.xlu0 %v7535_v11 }
 0xa87   : > { %3103 = vadd.xlane.f32.xlu0 %v7533_v45  ;;  %v6671_v45 = vpack.c.bf16 %v7309_v38, %v7308_v49 }
 0xa95   : > { %v2899_v19 = vpop.xlane.xlu0 %2898 }
 0xa96   : > { %v2908_v37 = vsub.f32 %v9696_v21, %v2899_v19 }
 0xa98   : > { %v2922_v28 = vmul.f32 1.442695, %v2908_v37 }
 0xa99   : > { %v2901_v16 = vpop.xlane.xlu0 %2900 }
 0xa9a   : > { %7536 = vpow2.f32 %v2922_v28  ;;  %v2909_v12 = vsub.f32 %v9700_v27, %v2901_v16 }
 0xa9c   : > { %v2924_v15 = vmul.f32 1.442695, %v2909_v12  ;;  %v7319_v12 = vunpack.i.h.bf16 %v7317_v26 }
 0xa9d   : > { %7331 = vrot.lane.b32.xlu0 %v9725_v35, %s8323_s21  ;;  %v7302_v22 = vpop.permute.xlu0 %7301 }
 0xa9e   : > { %7538 = vpow2.f32 %v2924_v15  ;;  %v7304_v60 = vunpack.i.h.bf16 %v7302_v22  ;;  %v7303_v29 = vunpack.i.l.bf16 %v7302_v22  ;;  %v7318_v15 = vunpack.i.l.bf16 %v7317_v26 }
 0xaa0   : > { %v6665_v44 = vpack.c.bf16 %v7304_v60, %v7303_v29  ;;  %v6683_v22 = vpack.c.bf16 %v7319_v12, %v7318_v15 }
 0xaa1   : > { %3268 = vrot.lane.b32.xlu0 %v9395_v61, %s8323_s21  ;;  %v7312_v55 = vpop.permute.xlu0 %7311 }
 0xaa2   : > { %6667 = vmatprep.subr.msk.bf16.mxu1 %vm9279_vm3, %v6665_v44  ;;  %v7314_v19 = vunpack.i.h.bf16 %v7312_v55  ;;  %v7313_v37 = vunpack.i.l.bf16 %v7312_v55 }
 0xaa4   : > { %v7537_v21 = vpop.eup %7536  ;;  %v6677_v28 = vpack.c.bf16 %v7314_v19, %v7313_v37 }
 0xaa5   : > { %3272 = vrot.lane.b32.xlu0 %v9418_v0, %s8323_s21  ;;  %5970 = vmatprep.mubr.f32.mxu1 %v7537_v21 }
 0xaa8   : > { %v7539_v27 = vpop.eup %7538 }
 0xaa9   : > { %3276 = vrot.lane.b32.xlu0 %v9442_v30, %s8323_s21  ;;  %3109 = vadd.xlane.f32.xlu1 %v7539_v27 }
 0xaaa   : > { %5971 = vmatmul.mubr.f32.gmra.mrb[46].mxu1 %v7539_v27 }
 0xaad   : > { %3280 = vrot.lane.b32.xlu0 %v9458_v53, %s8323_s21  ;;  %3107 = vadd.xlane.f32.xlu1 %v7537_v21  ;;  %v7327_v21 = vpop.permute.xlu1 %7326 }
 0xaae   : > { %v7328_v7 = vunpack.i.l.bf16 %v7327_v21 }
 0xab1   : > { %7341 = vrot.lane.b32.xlu0 %v9610_v10, %s8323_s21 }
 0xab3   : > { %v3102_v55 = vpop.xlane.xlu1 %3101 }
 0xab5   : > { %7351 = vrot.lane.b32.xlu0 %v9616_v14, %s8323_s21 }
 0xab9   : > { %7356 = vrot.lane.b32.xlu0 %v9624_v54, %s8323_s21 }
 0xabd   : > { %7371 = vrot.lane.b32.xlu0 %v9642_v46, %s8323_s21 }
 0xabe   : > { %3270 = vrot.lane.b32.xlu1 %v9404_v23, %s8323_s21 }
 0xac1   : > { %7381 = vrot.lane.b32.xlu0 %v9706_v41, %s8324_s17 }
 0xac2   : > { %3274 = vrot.lane.b32.xlu1 %v9429_v24, %s8323_s21 }
 0xac5   : > { %7391 = vrot.lane.b32.xlu0 %v9710_v58, %s8324_s17 }
 0xac6   : > { %3278 = vrot.lane.b32.xlu1 %v9449_v5, %s8323_s21 }
 0xaca   : > { %3282 = vrot.lane.b32.xlu1 %v9465_v57, %s8323_s21 }
 0xace   : > { %7346 = vrot.lane.b32.xlu1 %v9606_v52, %s8323_s21 }
 0xad2   : > { %7361 = vrot.lane.b32.xlu1 %v9630_v25, %s8323_s21 }
 0xad3   : > { %v3098_v62 = vpop.xlane.xlu0 %3097 }
 0xad6   : > { %7366 = vrot.lane.b32.xlu1 %v9636_v56, %s8323_s21 }
 0xad7   : > { %v3096_v20 = vpop.xlane.xlu0 %3095 }
 0xad8   : > { %7540 = vrcp.f32 %v3096_v20  ;;  %v7329_v20 = vunpack.i.h.bf16 %v7327_v21 }
 0xad9   : > { %7542 = vrcp.f32 %v3098_v62 }
 0xada   : > { %v6695_v49 = vpack.c.bf16 %v7329_v20, %v7328_v7  ;;  %7376 = vrot.lane.b32.xlu1 %v9659_v63, %s8323_s21  ;;  %s8144_s21 = sshll.u32 %s8325_s11, 4  ;;  %s8145_s21 = int_to_ptr.vmem [resolvable:$false] %s8144_s21 }
 0xadb   : > { %v7322_v60 = vpop.permute.xlu0 %7321  ;;  %p8147_p5 = scmp.lt.s32.totalorder %s10040_s29, %s8145_s21 }
 0xadc   : > { %v7324_v29 = vunpack.i.h.bf16 %v7322_v60 }
 0xade   : > { %7386 = vrot.lane.b32.xlu1 %v9667_v39, %s8324_s17 }
 0xae2   : > { %v7541_v50 = vpop.eup %7540 }
 0xae3   : > { %v7543_v2 = vpop.eup %7542 }
 0xaec   : > { %v5963_v43 = vpop.f32.mrb[40].mxu1 }
 0xaed   : > { %v3056_v18 = vpop.f32.mrb[41].mxu1  ;;  %v3120_v11 = vmul.f32 %v7543_v2, %v5963_v43 }
 0xaee   : > { %v3119_v47 = vmul.f32 %v7541_v50, %v3056_v18 }
 0xaf0   : > { %5981 = vmatprep.mubr.msk.f32.mxu1 %vm2173_vm2, %v3119_v47 }
 0xaf1   : > { %5982 = vmatmul.mubr.msk.f32.vlgmr.msra.gmra.mrb[32].mxu1 %vm2173_vm2, %v3120_v11 }
 0xaf2   : > { %6670 = vmatpush3.bf16.xpose.msk.msra.mxu1 %vm9279_vm3, %v6665_v44  ;;  %v7323_v44 = vunpack.i.l.bf16 %v7322_v60 }
 0xaf3   : > { %6673 = vmatprep.subr.msk.bf16.mxu1 %vm9279_vm3, %v6671_v45 }
 0xaf4   : > { %v6689_v27 = vpack.c.bf16 %v7324_v29, %v7323_v44 }
 0xaf9   : > { %v5966_v16 = vpop.f32.mrb[42].mxu1 }
 0xafa   : > { %6676 = vmatpush3.bf16.xpose.msk.msra.mxu1 %vm9279_vm3, %v6671_v45  ;;  %v3066_v17 = vpop.f32.mrb[43].mxu1  ;;  %v7337_v45 = vpop.permute.xlu1 %7336 }
 0xafb   : > { %6679 = vmatprep.subr.msk.bf16.mxu1 %vm9279_vm3, %v6677_v28  ;;  %v7339_v10 = vunpack.i.h.bf16 %v7337_v45 }
 0xb02   : > { %6682 = vmatpush3.bf16.xpose.msk.msra.mxu1 %vm9279_vm3, %v6677_v28  ;;  %v7338_v28 = vunpack.i.l.bf16 %v7337_v45 }
 0xb03   : > { %6685 = vmatprep.subr.msk.bf16.mxu1 %vm9279_vm3, %v6683_v22 }
 0xb04   : > { %v6707_v14 = vpack.c.bf16 %v7339_v10, %v7338_v28 }
 0xb0a   : > { %6688 = vmatpush3.bf16.xpose.msk.msra.mxu1 %vm9279_vm3, %v6683_v22 }
 0xb0b   : > { %6691 = vmatprep.subr.msk.bf16.mxu1 %vm9279_vm3, %v6689_v27 }
 0xb0c   : > { %v3100_v62 = vpop.xlane.xlu0 %3099 }
 0xb0d   : > { %7544 = vrcp.f32 %v3100_v62 }
 0xb0e   : > { %7546 = vrcp.f32 %v3102_v55 }
 0xb10   : > { %v3106_v38 = vpop.xlane.xlu0 %3105 }
 0xb12   : > { %6694 = vmatpush3.bf16.xpose.msk.msra.mxu1 %vm9279_vm3, %v6689_v27 }
 0xb13   : > { %6697 = vmatprep.subr.msk.bf16.mxu1 %vm9279_vm3, %v6695_v49 }
 0xb14   : > { %v3104_v43 = vpop.xlane.xlu0 %3103 }
 0xb15   : > { %7548 = vrcp.f32 %v3104_v43 }
 0xb16   : > { %7550 = vrcp.f32 %v3106_v38 }
 0xb17   : > { %v7545_v50 = vpop.eup %7544 }
 0xb18   : > { %v7547_v18 = vpop.eup %7546  ;;  %v7332_v2 = vpop.permute.xlu0 %7331  ;;  %v3121_v47 = vmul.f32 %v7545_v50, %v3066_v17 }
 0xb19   : > { %v3122_v11 = vmul.f32 %v7547_v18, %v5966_v16  ;;  %v7334_v19 = vunpack.i.h.bf16 %v7332_v2  ;;  %v7333_v37 = vunpack.i.l.bf16 %v7332_v2 }
 0xb1a   : > { %5984 = vmatprep.mubr.msk.f32.mxu1 %vm2173_vm2, %v3121_v47  ;;  %6700 = vmatpush3.bf16.xpose.msk.msra.mxu1 %vm9279_vm3, %v6695_v49 }
 0xb1b   : > { %v6701_v52 = vpack.c.bf16 %v7334_v19, %v7333_v37  ;;  %5985 = vmatmul.mubr.msk.f32.gmra.mrb[34].mxu1 %vm2173_vm2, %v3122_v11 }
 0xb1c   : > { %v3269_v58 = vpop.permute.xlu0 %3268 }
 0xb1d   : > { %6703 = vmatprep.subr.msk.bf16.mxu1 %vm9279_vm3, %v6701_v52 }
 0xb1f   : > { %v7549_v25 = vpop.eup %7548 }
 0xb20   : > { %v7551_v46 = vpop.eup %7550  ;;  %v3273_v44 = vpop.permute.xlu0 %3272 }
 0xb22   : > { %6706 = vmatpush3.bf16.xpose.msk.msra.mxu1 %vm9279_vm3, %v6701_v52 }
 0xb23   : > { %6709 = vmatprep.subr.msk.bf16.mxu1 %vm9279_vm3, %v6707_v14 }
 0xb24   : > { %v3277_v27 = vpop.permute.xlu0 %3276 }
 0xb28   : > { %v3281_v62 = vpop.permute.xlu0 %3280 }
 0xb2a   : > { %6712 = vmatpush3.bf16.xpose.msk.msra.mxu1 %vm9279_vm3, %v6707_v14 }
 0xb2c   : > { %v7342_v7 = vpop.permute.xlu0 %7341 }
 0xb2d   : > { %v7344_v49 = vunpack.i.h.bf16 %v7342_v7  ;;  %v7343_v43 = vunpack.i.l.bf16 %v7342_v7 }
 0xb2f   : > { %v6713_v2 = vpack.c.bf16 %v7344_v49, %v7343_v43 }
 0xb30   : > { %v7352_v45 = vpop.permute.xlu0 %7351 }
 0xb31   : > { %6714 = vmatprep.subr.bf16.mxu0 %v6713_v2  ;;  %v7354_v11 = vunpack.i.h.bf16 %v7352_v45  ;;  %v7353_v19 = vunpack.i.l.bf16 %v7352_v45 }
 0xb32   : > { %6716 = vmatpush3.bf16.msra.mxu0 %v6713_v2 }
 0xb33   : > { %v6721_v37 = vpack.c.bf16 %v7354_v11, %v7353_v19 }
 0xb34   : > { %v7357_v52 = vpop.permute.xlu0 %7356 }
 0xb35   : > { %v7359_v10 = vunpack.i.h.bf16 %v7357_v52  ;;  %v7358_v28 = vunpack.i.l.bf16 %v7357_v52 }
 0xb36   : > { %v3110_v41 = vpop.xlane.xlu1 %3109 }
 0xb37   : > { %v6725_v14 = vpack.c.bf16 %v7359_v10, %v7358_v28  ;;  %v7679_v10 = vld [vmem:[#allocation3 + $0x58] sm:$0xff] }
 0xb3a   : > { %v3108_v39 = vpop.xlane.xlu1 %3107 }
 0xb3b   : > { %7552 = vrcp.f32 %v3108_v39 }
 0xb3c   : > { %7554 = vrcp.f32 %v3110_v41 }
 0xb3e   : > { %v3271_v22 = vpop.permute.xlu1 %3270 }
 0xb42   : > { %v3275_v21 = vpop.permute.xlu1 %3274 }
 0xb45   : > { %v7553_v26 = vpop.eup %7552 }
 0xb46   : > { %v7555_v15 = vpop.eup %7554  ;;  %v3279_v55 = vpop.permute.xlu1 %3278 }
 0xb4a   : > { %v3283_v20 = vpop.permute.xlu1 %3282 }
 0xb4c   : > { %v5969_v54 = vpop.f32.mrb[44].mxu1 }
 0xb4d   : > { %v3076_v56 = vpop.f32.mrb[45].mxu1  ;;  %v3124_v16 = vmul.f32 %v7551_v46, %v5969_v54 }
 0xb4e   : > { %v3123_v63 = vmul.f32 %v7549_v25, %v3076_v56  ;;  %v7347_v38 = vpop.permute.xlu1 %7346 }
 0xb4f   : > { %v7349_v50 = vunpack.i.h.bf16 %v7347_v38  ;;  %v7348_v18 = vunpack.i.l.bf16 %v7347_v38 }
 0xb50   : > { %5987 = vmatprep.mubr.msk.f32.mxu1 %vm2173_vm2, %v3123_v63 }
 0xb51   : > { %5988 = vmatmul.mubr.msk.f32.gmra.mrb[36].mxu1 %vm2173_vm2, %v3124_v16  ;;  %v6717_v47 = vpack.c.bf16 %v7349_v50, %v7348_v18  ;;  %v7372_v16 = vpop.permute.xlu0 %7371 }
 0xb52   : > { %v7362_v54 = vpop.permute.xlu1 %7361 }
 0xb53   : > { %6718 = vmatprep.subr.bf16.mxu0 %v6717_v47  ;;  %v7364_v25 = vunpack.i.h.bf16 %v7362_v54  ;;  %v7363_v56 = vunpack.i.l.bf16 %v7362_v54 }
 0xb54   : > { %6720 = vmatpush3.bf16.msra.mxu0 %v6717_v47 }
 0xb55   : > { %6722 = vmatprep.subr.bf16.mxu0 %v6721_v37  ;;  %v6729_v46 = vpack.c.bf16 %v7364_v25, %v7363_v56 }
 0xb56   : > { %v7367_v63 = vpop.permute.xlu1 %7366 }
 0xb57   : > { %v7369_v41 = vunpack.i.h.bf16 %v7367_v63  ;;  %v7368_v39 = vunpack.i.l.bf16 %v7367_v63 }
 0xb58   : > { %6724 = vmatpush3.bf16.msra.mxu0 %v6721_v37 }
 0xb59   : > { %6726 = vmatprep.subr.bf16.mxu0 %v6725_v14 }
 0xb5c   : > { %6728 = vmatpush3.bf16.msra.mxu0 %v6725_v14 }
 0xb5d   : > { %6730 = vmatprep.subr.bf16.mxu0 %v6729_v46 }
 0xb60   : > { %6732 = vmatpush3.bf16.msra.mxu0 %v6729_v46 }
 0xb7d   : > { %v5972_v17 = vpop.f32.mrb[46].mxu1 }
 0xb7e   : > { %v3086_v12 = vpop.f32.mrb[47].mxu1  ;;  %v3126_v29 = vmul.f32 %v7555_v15, %v5972_v17  ;;  %v7373_v17 = vunpack.i.l.bf16 %v7372_v16  ;;  %v7377_v15 = vpop.permute.xlu1 %7376 }
 0xb7f   : > { %v3125_v60 = vmul.f32 %v7553_v26, %v3086_v12  ;;  %v6733_v26 = vpack.c.bf16 %v7369_v41, %v7368_v39 }
 0xb81   : > { %5990 = vmatprep.mubr.msk.f32.mxu1 %vm2173_vm2, %v3125_v60  ;;  %6734 = vmatprep.subr.bf16.mxu0 %v6733_v26  ;;  %v7379_v60 = vunpack.i.h.bf16 %v7377_v15 }
 0xb82   : > { %5991 = vmatmul.mubr.msk.f32.gmra.mrb[38].mxu1 %vm2173_vm2, %v3126_v29  ;;  %6736 = vmatpush3.bf16.msra.mxu0 %v6733_v26  ;;  %v7378_v29 = vunpack.i.l.bf16 %v7377_v15  ;;  %v7387_v25 = vpop.permute.xlu1 %7386 }
 0xb83   : > { %6025 = vmatprep.mubr.msk.f32.mxu1 %vm2173_vm2, %v3269_v58  ;;  %v7374_v58 = vunpack.i.h.bf16 %v7372_v16 }
 0xb85   : > { %v6737_v12 = vpack.c.bf16 %v7374_v58, %v7373_v17  ;;  %v7389_v58 = vunpack.i.h.bf16 %v7387_v25  ;;  %v7388_v17 = vunpack.i.l.bf16 %v7387_v25 }
 0xb86   : > { %6026 = vmatmul.mubr.msk.f32.vlgmr.msra.gmra.mrb[48].mxu1 %vm2173_vm2, %v3271_v22  ;;  %v7382_v22 = vpop.permute.xlu0 %7381 }
 0xb87   : > { %6028 = vmatprep.mubr.msk.f32.mxu1 %vm2173_vm2, %v3273_v44  ;;  %6738 = vmatprep.subr.bf16.mxu0 %v6737_v12  ;;  %v7384_v44 = vunpack.i.h.bf16 %v7382_v22  ;;  %v6759_v15 = vpack.c.bf16 %v7389_v58, %v7388_v17 }
 0xb88   : > { %6740 = vmatpush3.bf16.msra.mxu0 %v6737_v12 }
 0xb8a   : > { %6029 = vmatmul.mubr.msk.f32.gmra.mrb[50].mxu1 %vm2173_vm2, %v3275_v21  ;;  %v7383_v21 = vunpack.i.l.bf16 %v7382_v22  ;;  %v7392_v54 = vpop.permute.xlu0 %7391 }
 0xb8b   : > { %6031 = vmatprep.mubr.msk.f32.mxu1 %vm2173_vm2, %v3277_v27  ;;  %v6741_v27 = vpack.c.bf16 %v7379_v60, %v7378_v29  ;;  %v7394_v22 = vunpack.i.h.bf16 %v7392_v54  ;;  %v7393_v60 = vunpack.i.l.bf16 %v7392_v54 }
 0xb8d   : > { %6742 = vmatprep.subr.bf16.mxu0 %v6741_v27  ;;  %v6765_v29 = vpack.c.bf16 %v7394_v22, %v7393_v60 }
 0xb8e   : > { %6032 = vmatmul.mubr.msk.f32.gmra.mrb[52].mxu1 %vm2173_vm2, %v3279_v55  ;;  %v9816_v55 = vpack.c.bf16 %v7384_v44, %v7383_v21  ;;  %6744 = vmatpush3.bf16.msra.mxu0 %v6741_v27 }
 0xb8f   : > { %6034 = vmatprep.mubr.msk.f32.mxu1 %vm2173_vm2, %v3281_v62 }
 0xb90   : > { %6755 = vmatprep.subr.msk.bf16.mxu0 %vm9279_vm3, %v9816_v55 }
 0xb92   : > { %6035 = vmatmul.mubr.msk.f32.gmra.mrb[54].mxu1 %vm2173_vm2, %v3283_v20 }
 0xc59   : > { %v6027_v62 = vpop.f32.mrb[48].mxu1 }
 0xc5a   : > { %v3470_v20 = vmul.f32 0.17677669, %v6027_v62  ;;  %v3430_v7 = vpop.f32.mrb[49].mxu1 }
 0xc5b   : > { %v3469_v38 = vmul.f32 0.17677669, %v3430_v7  ;;  %v7683_v7 = vld [vmem:[#allocation3 + $0xb8] sm:$0xff] }
 0xc5c   : > { %3479 = vmax.xlane.f32.xlu0 %v3470_v20 }
 0xc5d   : > { %3477 = vmax.xlane.f32.xlu1 %v3469_v38  ;;  %v6030_v49 = vpop.f32.mrb[50].mxu1 }
 0xc5e   : > { %v3440_v43 = vpop.f32.mrb[51].mxu1  ;;  %v9825_v45 = vmul.f32 0.17677669, %v6030_v49 }
 0xc5f   : > { %v9827_v11 = vmul.f32 0.17677669, %v3440_v43 }
 0xc61   : > { %v6033_v50 = vpop.f32.mrb[52].mxu1 }
 0xc62   : > { %v3450_v18 = vpop.f32.mrb[53].mxu1  ;;  %v9833_v37 = vmul.f32 0.17677669, %v6033_v50 }
 0xc63   : > { %v9831_v19 = vmul.f32 0.17677669, %v3450_v18 }
 0xc65   : > { %v6036_v2 = vpop.f32.mrb[54].mxu1 }
 0xc66   : > { %v3460_v47 = vpop.f32.mrb[55].mxu1 }
 0xc6e   : > { %7401 = vrot.lane.b32.xlu1 %v9718_v51, %s8324_s17  ;;  %v9837_v51 = vmul.f32 0.17677669, %v6036_v2 }
 0xc72   : > { %7396 = vrot.lane.b32.xlu0 %v9671_v3, %s8324_s17  ;;  %v9840_v3 = vmul.f32 0.17677669, %v3460_v47 }
 0xc91   : > { %3483 = vmax.xlane.f32.xlu0 %v9825_v45 }
 0xc92   : > { %3481 = vmax.xlane.f32.xlu1 %v9827_v11 }
 0xc95   : > { %3485 = vmax.xlane.f32.xlu0 %v9831_v19 }
 0xc96   : > { %3487 = vmax.xlane.f32.xlu1 %v9833_v37 }
 0xc99   : > { %3491 = vmax.xlane.f32.xlu0 %v9837_v51 }
 0xc9d   : > { %3489 = vmax.xlane.f32.xlu0 %v9840_v3 }
 0xca7   : > { %7411 = vrot.lane.b32.xlu1 %v9725_v35, %s8324_s17 }
 0xcab   : > { %7416 = vrot.lane.b32.xlu1 %v9714_v8, %s8324_s17  ;;  %v7674_v8 = vld [vmem:[#allocation3 + $0x8] sm:$0xff] }
 0xcaf   : > { %3843 = vrot.lane.b32.xlu1 %v9395_v61, %s8324_s17  ;;  %v7672_v61 = vld [vmem:[#allocation3 + $0x28] sm:$0xff] }
 0xcb3   : > { %3845 = vrot.lane.b32.xlu1 %v9404_v23, %s8324_s17  ;;  %7406 = vrot.lane.b32.xlu0 %v9675_v42, %s8324_s17  ;;  %v7673_v23 = vld [vmem:[#allocation3 + $0x38] sm:$0xff] }
 0xcb4   : > { %v7425_v42 = vpack.i.bf16 %v7673_v23, %v7672_v61 }
 0xcb7   : > { %3849 = vrot.lane.b32.xlu1 %v9429_v24, %s8324_s17  ;;  %3847 = vrot.lane.b32.xlu0 %v9418_v0, %s8324_s17  ;;  %v7675_v24 = vld [vmem:[#allocation3 + $0x18] sm:$0xff]  ;;  %v7676_v0 = vld [vmem:[#allocation3 + $0x68] sm:$0xff] }
 0xcb8   : > { %v7420_v35 = vpack.i.bf16 %v7675_v24, %v7674_v8 }
 0xcbb   : > { %3853 = vrot.lane.b32.xlu1 %v9449_v5, %s8324_s17  ;;  %3851 = vrot.lane.b32.xlu0 %v9442_v30, %s8324_s17  ;;  %v7677_v5 = vld [vmem:[#allocation3 + $0x78] sm:$0xff]  ;;  %v7678_v30 = vld [vmem:[#allocation3 + $0x48] sm:$0xff] }
 0xcbc   : > { %v7435_v52 = vpack.i.bf16 %v7677_v5, %v7676_v0  ;;  %v7430_v28 = vpack.i.bf16 %v7679_v10, %v7678_v30 }
 0xcbf   : > { %3857 = vrot.lane.b32.xlu1 %v9465_v57, %s8324_s17  ;;  %3855 = vrot.lane.b32.xlu0 %v9458_v53, %s8324_s17  ;;  %v7680_v53 = vld [vmem:[#allocation3 + $0x88] sm:$0xff]  ;;  %v7681_v57 = vld [vmem:[#allocation3 + $0x98] sm:$0xff] }
 0xcc0   : > { %v7440_v14 = vpack.i.bf16 %v7681_v57, %v7680_v53  ;;  %v5032_v57 = vmul.f32 -1.442695, %v9502_v59 }
 0xcc3   : > { %7426 = vrot.lane.b32.xlu1 %v7425_v42, %s8324_s17  ;;  %7421 = vrot.lane.b32.xlu0 %v7420_v35, %s8324_s17 }
 0xcc7   : > { %7436 = vrot.lane.b32.xlu1 %v7435_v52, %s8324_s17  ;;  %7431 = vrot.lane.b32.xlu0 %v7430_v28, %s8324_s17 }
 0xccb   : > { %7441 = vrot.lane.b32.xlu0 %v7440_v14, %s8324_s17 }
 0xce9   : > { %v3480_v56 = vpop.xlane.xlu0 %3479 }
 0xcea   : > { %v3494_v46 = vsub.f32 %v3470_v20, %v3480_v56  ;;  %v3478_v63 = vpop.xlane.xlu1 %3477 }
 0xceb   : > { %v3493_v16 = vsub.f32 %v3469_v38, %v3478_v63 }
 0xcec   : > { %v3503_v41 = vmul.f32 1.442695, %v3494_v46 }
 0xced   : > { %v3501_v39 = vmul.f32 1.442695, %v3493_v16  ;;  %v7397_v44 = vpop.permute.xlu0 %7396 }
 0xcee   : > { %7556 = vpow2.f32 %v3503_v41  ;;  %v7399_v21 = vunpack.i.h.bf16 %v7397_v44  ;;  %v7398_v27 = vunpack.i.l.bf16 %v7397_v44  ;;  %v7402_v20 = vpop.permute.xlu1 %7401  ;;  %v4434_v44 = vld [vmem:[#allocation29] sm:$0xff] }
 0xcef   : > { %7558 = vpow2.f32 %v3501_v39  ;;  %v7404_v49 = vunpack.i.h.bf16 %v7402_v20  ;;  %v7403_v43 = vunpack.i.l.bf16 %v7402_v20  ;;  %v5034_v20 = vmul.f32 -1.442695, %v9508_v33 }
 0xcf0   : > { %v6771_v62 = vpack.c.bf16 %v7399_v21, %v7398_v27  ;;  %v4435_v21 = vld [vmem:[#allocation29 + $0x8] sm:$0xff]  ;;  %v5033_v27 = vmul.f32 -1.442695, %v9499_v6  ;;  %v4436_v6 = vld [vmem:[#allocation29 + $0x10] sm:$0xff]  ;;  %v5037_v33 = vmul.f32 -1.442695, %v9510_v4 }
 0xcf1   : > { %v6777_v50 = vpack.c.bf16 %v7404_v49, %v7403_v43  ;;  %v3704_v4 = vld [vmem:[#allocation24 + $0x50] sm:$0xff] }
 0xcf8   : > { %v7557_v26 = vpop.eup %7556 }
 0xcf9   : > { %v7559_v12 = vpop.eup %7558  ;;  %3672 = vadd.xlane.f32.xlu1 %v7557_v26 }
 0xcfa   : > { %6069 = vmatprep.mubr.f32.mxu0 %v7559_v12  ;;  %3670 = vadd.xlane.f32.xlu0 %v7559_v12 }
 0xcfb   : > { %6070 = vmatmul.mubr.f32.vlgmr.msra.gmra.mrb[40].mxu0 %v7557_v26 }
 0xcfc   : > { %6758 = vmatpush3.bf16.xpose.msk.msra.mxu0 %vm9279_vm3, %v9816_v55  ;;  %v7682_v55 = vld [vmem:[#allocation3 + $0xa8] sm:$0xff] }
 0xcfd   : > { %6761 = vmatprep.subr.msk.bf16.mxu0 %vm9279_vm3, %v6759_v15  ;;  %v7445_v38 = vpack.i.bf16 %v7683_v7, %v7682_v55  ;;  %v6841_v55 = vpack.c.bf16 %v4435_v21, %v4434_v44  ;;  %v5035_v7 = vmul.f32 -1.442695, %v9505_v1  ;;  %v3703_v1 = vld [vmem:[#allocation24 + $0x48] sm:$0xff] }
 0xcfe   : > { %v4446_v21 = vld [vmem:[#allocation29 + $0x60] sm:$0xff] }
 0xd04   : > { %6764 = vmatpush3.bf16.xpose.msk.msra.mxu0 %vm9279_vm3, %v6759_v15 }
 0xd05   : > { %6767 = vmatprep.subr.msk.bf16.mxu0 %vm9279_vm3, %v6765_v29 }
 0xd0c   : > { %6770 = vmatpush3.bf16.xpose.msk.msra.mxu0 %vm9279_vm3, %v6765_v29 }
 0xd0d   : > { %6773 = vmatprep.subr.msk.bf16.mxu0 %vm9279_vm3, %v6771_v62 }
 0xd10   : > { %7446 = vrot.lane.b32.xlu0 %v7445_v38, %s8324_s17  ;;  %v5036_v38 = vmul.f32 -1.442695, %v9512_v9 }
 0xd14   : > { %6776 = vmatpush3.bf16.xpose.msk.msra.mxu0 %vm9279_vm3, %v6771_v62 }
 0xd15   : > { %6779 = vmatprep.subr.msk.bf16.mxu0 %vm9279_vm3, %v6777_v50 }
 0xd1c   : > { %6782 = vmatpush3.bf16.xpose.msk.msra.mxu0 %vm9279_vm3, %v6777_v50  ;;  %v4437_v50 = vld [vmem:[#allocation29 + $0x18] sm:$0xff] }
 0xd1e   : > { %v3484_v18 = vpop.xlane.xlu0 %3483 }
 0xd1f   : > { %v3496_v2 = vsub.f32 %v9825_v45, %v3484_v18  ;;  %v3482_v47 = vpop.xlane.xlu1 %3481  ;;  %v5038_v18 = vmul.f32 -1.442695, %v9516_v13  ;;  %v3705_v13 = vld [vmem:[#allocation24 + $0x58] sm:$0xff] }
 0xd20   : > { %v3495_v61 = vsub.f32 %v9827_v11, %v3482_v47  ;;  %v6845_v47 = vpack.c.bf16 %v4437_v50, %v4436_v6 }
 0xd21   : > { %v3507_v23 = vmul.f32 1.442695, %v3496_v2  ;;  %v3702_v2 = vld [vmem:[#allocation24 + $0x40] sm:$0xff] }
 0xd22   : > { %v3505_v42 = vmul.f32 1.442695, %v3495_v61  ;;  %v3486_v8 = vpop.xlane.xlu0 %3485  ;;  %v6745_v9 = vpack.c.bf16 %v3703_v1, %v3702_v2  ;;  %v4418_v2 = vld [vmem:[#allocation27] sm:$0xff]  ;;  %v4419_v1 = vld [vmem:[#allocation27 + $0x8] sm:$0xff] }
 0xd23   : > { %7560 = vpow2.f32 %v3507_v23  ;;  %v3497_v24 = vsub.f32 %v9831_v19, %v3486_v8  ;;  %v3488_v35 = vpop.xlane.xlu1 %3487 }
 0xd24   : > { %7562 = vpow2.f32 %v3505_v42  ;;  %v3498_v0 = vsub.f32 %v9833_v37, %v3488_v35  ;;  %v4438_v42 = vld [vmem:[#allocation29 + $0x20] sm:$0xff]  ;;  %6746 = vmatprep.subr.bf16.mxu1 %v6745_v9 }
 0xd25   : > { %v3509_v5 = vmul.f32 1.442695, %v3497_v24  ;;  %6748 = vmatpush3.bf16.msra.mxu1 %v6745_v9 }
 0xd26   : > { %v3511_v52 = vmul.f32 1.442695, %v3498_v0  ;;  %v3492_v30 = vpop.xlane.xlu0 %3491  ;;  %v1735_v0 = vstv %s9910_s25 }
 0xd27   : > { %7564 = vpow2.f32 %v3509_v5  ;;  %v3500_v10 = vsub.f32 %v9837_v51, %v3492_v30  ;;  %v7412_v19 = vpop.permute.xlu1 %7411  ;;  %v5039_v5 = vmul.f32 -1.442695, %v9514_v48  ;;  %v6849_v30 = vpack.c.bf16 %v4439_v32, %v4438_v42 }
 0xd28   : > { %7566 = vpow2.f32 %v3511_v52  ;;  %v7414_v25 = vunpack.i.h.bf16 %v7412_v19  ;;  %v7413_v37 = vunpack.i.l.bf16 %v7412_v19 }
 0xd29   : > { %v3515_v45 = vmul.f32 1.442695, %v3500_v10  ;;  %v6749_v10 = vpack.c.bf16 %v3705_v13, %v3704_v4  ;;  %v10277_v4 = vld [vmem:[#allocation56_spill] sm:$0xff] }
 0xd2a   : > { %v3490_v28 = vpop.xlane.xlu0 %3489 }
 0xd2b   : > { %7568 = vpow2.f32 %v3515_v45  ;;  %v3499_v11 = vsub.f32 %v9840_v3, %v3490_v28  ;;  %v6789_v3 = vpack.c.bf16 %v7414_v25, %v7413_v37  ;;  %v7417_v39 = vpop.permute.xlu1 %7416  ;;  %v5031_v28 = vmul.f32 -1.442695, %v1735_v0  ;;  %6750 = vmatprep.subr.bf16.mxu1 %v6749_v10 }
 0xd2c   : > { %v7419_v58 = vunpack.i.h.bf16 %v7417_v39  ;;  %v7418_v17 = vunpack.i.l.bf16 %v7417_v39  ;;  %6752 = vmatpush3.bf16.msra.mxu1 %v6749_v10 }
 0xd2d   : > { %v7561_v53 = vpop.eup %7560  ;;  %v3513_v14 = vmul.f32 1.442695, %v3499_v11  ;;  %v4440_v11 = vld [vmem:[#allocation29 + $0x30] sm:$0xff] }
 0xd2e   : > { %v7563_v54 = vpop.eup %7562  ;;  %v7407_v56 = vpop.permute.xlu0 %7406  ;;  %v6795_v12 = vpack.c.bf16 %v7419_v58, %v7418_v17 }
 0xd2f   : > { %7570 = vpow2.f32 %v3513_v14  ;;  %v7409_v46 = vunpack.i.h.bf16 %v7407_v56  ;;  %v7408_v63 = vunpack.i.l.bf16 %v7407_v56  ;;  %6072 = vmatprep.mubr.f32.mxu0 %v7563_v54  ;;  %3676 = vadd.xlane.f32.xlu0 %v7561_v53  ;;  %v3844_v60 = vpop.permute.xlu1 %3843 }
 0xd30   : > { %6073 = vmatmul.mubr.f32.gmra.mrb[42].mxu0 %v7561_v53  ;;  %7572 = vpow2.f32 %v5032_v57  ;;  %v4441_v53 = vld [vmem:[#allocation29 + $0x38] sm:$0xff] }
 0xd31   : > { %v7565_v51 = vpop.eup %7564  ;;  %v6783_v16 = vpack.c.bf16 %v7409_v46, %v7408_v63  ;;  %v6853_v37 = vpack.c.bf16 %v4441_v53, %v4440_v11  ;;  %v4442_v63 = vld [vmem:[#allocation29 + $0x40] sm:$0xff] }
 0xd32   : > { %v7567_v41 = vpop.eup %7566  ;;  %6075 = vmatprep.mubr.f32.mxu0 %v7565_v51  ;;  %v3848_v15 = vpop.permute.xlu0 %3847 }
 0xd33   : > { %3680 = vadd.xlane.f32.xlu1 %v7567_v41  ;;  %3674 = vadd.xlane.f32.xlu0 %v7563_v54  ;;  %v3846_v49 = vpop.permute.xlu1 %3845 }
 0xd34   : > { %6785 = vmatprep.subr.msk.bf16.mxu0 %vm9279_vm3, %v6783_v16  ;;  %6076 = vmatmul.mubr.f32.gmra.mrb[44].mxu0 %v7567_v41 }
 0xd35   : > { %v7569_v59 = vpop.eup %7568  ;;  %6788 = vmatpush3.bf16.xpose.msk.msra.mxu0 %vm9279_vm3, %v6783_v16 }
 0xd36   : > { %6791 = vmatprep.subr.msk.bf16.mxu0 %vm9279_vm3, %v6789_v3  ;;  %v3852_v62 = vpop.permute.xlu0 %3851 }
 0xd37   : > { %3684 = vadd.xlane.f32.xlu1 %v7569_v59  ;;  %3678 = vadd.xlane.f32.xlu0 %v7565_v51  ;;  %v3850_v23 = vpop.permute.xlu1 %3849  ;;  %v4443_v51 = vld [vmem:[#allocation29 + $0x48] sm:$0xff] }
 0xd38   : > { %v6857_v39 = vpack.c.bf16 %v4443_v51, %v4442_v63  ;;  %v10282_v51 = vld [vmem:[#allocation60_spill] sm:$0xff] }
 0xd39   : > { %v7571_v26 = vpop.eup %7570 }
 0xd3a   : > { %6078 = vmatprep.mubr.f32.mxu0 %v7571_v26  ;;  %v7573_v22 = vpop.eup %7572  ;;  %v3856_v43 = vpop.permute.xlu0 %3855 }
 0xd3b   : > { %3682 = vadd.xlane.f32.xlu1 %v7571_v26  ;;  %6079 = vmatmul.mubr.f32.gmra.mrb[46].mxu0 %v7569_v59  ;;  %v2077_v29 = vadd.f32 1.0, %v7573_v22  ;;  %v3854_v14 = vpop.permute.xlu1 %3853 }
 0xd3c   : > { %6133 = vmatprep.mubr.msk.f32.mxu0 %vm2173_vm2, %v3844_v60 }
 0xd3d   : > { %6794 = vmatpush3.bf16.xpose.msk.msra.mxu0 %vm9279_vm3, %v6789_v3  ;;  %7574 = vrcp.f32 %v2077_v29 }
 0xd3e   : > { %6797 = vmatprep.subr.msk.bf16.mxu0 %vm9279_vm3, %v6795_v12  ;;  %7576 = vpow2.f32 %v5033_v27  ;;  %v7422_v61 = vpop.permute.xlu0 %7421  ;;  %v4447_v27 = vld [vmem:[#allocation29 + $0x68] sm:$0xff] }
 0xd3f   : > { %7578 = vpow2.f32 %v5034_v20  ;;  %v7424_v8 = vunpack.i.h.bf16 %v7422_v61  ;;  %v7423_v24 = vunpack.i.l.bf16 %v7422_v61  ;;  %v3858_v17 = vpop.permute.xlu1 %3857 }
 0xd40   : > { %7580 = vpow2.f32 %v5035_v7 }
 0xd41   : > { %7582 = vpow2.f32 %v5036_v38  ;;  %v9922_v48 = vpack.c.bf16 %v7424_v8, %v7423_v24  ;;  %v4448_v38 = vld [vmem:[#allocation29 + $0x70] sm:$0xff] }
 0xd42   : > { %7584 = vpow2.f32 %v5037_v33  ;;  %v4420_v24 = vld [vmem:[#allocation27 + $0x10] sm:$0xff] }
 0xd43   : > { %7586 = vpow2.f32 %v5038_v18  ;;  %6802 = vmatprep.subr.bf16.mxu1 %v9922_v48 }
 0xd44   : > { %7588 = vpow2.f32 %v5039_v5 }
 0xd45   : > { %6800 = vmatpush3.bf16.xpose.msk.msra.mxu0 %vm9279_vm3, %v6795_v12  ;;  %7590 = vpow2.f32 %v5031_v28  ;;  %v4444_v12 = vld [vmem:[#allocation29 + $0x50] sm:$0xff] }
 0xd46   : > { %6842 = vmatprep.subr.bf16.mxu0 %v6841_v55 }
 0xd47   : > { %v7575_v35 = vpop.eup %7574 }
 0xd48   : > { %v7577_v52 = vpop.eup %7576  ;;  %v2109_v57 = vsub.f32 1.0, %v7575_v35  ;;  %v2101_v41 = vmul.f32 %v7575_v35, %v9166_v36  ;;  %v4421_v35 = vld [vmem:[#allocation27 + $0x18] sm:$0xff] }
 0xd49   : > { %v7579_v45 = vpop.eup %7578  ;;  %v2078_v19 = vadd.f32 1.0, %v7577_v52  ;;  %v10278_v52 = vld [vmem:[#allocation58_spill] sm:$0xff]  ;;  %v6877_v11 = vpack.c.bf16 %v4421_v35, %v4420_v24 }
 0xd4a   : > { %v7581_v54 = vpop.eup %7580  ;;  %v2079_v25 = vadd.f32 1.0, %v7579_v45  ;;  %v2117_v46 = vmul.f32 %v2109_v57, %v9368_v31  ;;  %v10279_v45 = vld [vmem:[#allocation63_spill] sm:$0xff]  ;;  %v4432_v24 = vld [vmem:[#allocation27 + $0x70] sm:$0xff] }
 0xd4b   : > { %v7583_v56 = vpop.eup %7582  ;;  %7592 = vrcp.f32 %v2078_v19  ;;  %v2080_v16 = vadd.f32 1.0, %v7581_v54  ;;  %v4433_v35 = vld [vmem:[#allocation27 + $0x78] sm:$0xff] }
 0xd4c   : > { %6134 = vmatmul.mubr.msk.f32.vlgmr.msra.gmra.mrb[48].mxu0 %vm2173_vm2, %v3846_v49  ;;  %v7585_v3 = vpop.eup %7584  ;;  %7594 = vrcp.f32 %v2079_v25  ;;  %v2081_v59 = vadd.f32 1.0, %v7583_v56  ;;  %v2125_v26 = vadd.f32 %v2117_v46, %v2101_v41  ;;  %v4449_v49 = vld [vmem:[#allocation29 + $0x78] sm:$0xff]  ;;  %v4422_v25 = vld [vmem:[#allocation27 + $0x20] sm:$0xff]  ;;  %v10281_v46 = vld [vmem:[#allocation57_spill] sm:$0xff] }
 0xd4d   : > { %6136 = vmatprep.mubr.msk.f32.mxu0 %vm2173_vm2, %v3848_v15  ;;  %6844 = vmatpush3.bf16.msra.mxu0 %v6841_v55  ;;  %v7587_v58 = vpop.eup %7586  ;;  %v4445_v15 = vld [vmem:[#allocation29 + $0x58] sm:$0xff]  ;;  %7596 = vrcp.f32 %v2080_v16  ;;  %v2082_v22 = vadd.f32 1.0, %v7585_v3  ;;  %v6865_v55 = vpack.c.bf16 %v4447_v27, %v4446_v21  ;;  %v6869_v33 = vpack.c.bf16 %v4449_v49, %v4448_v38 }
 0xd4e   : > { %6846 = vmatprep.subr.bf16.mxu0 %v6845_v47  ;;  %v7589_v60 = vpop.eup %7588  ;;  %7598 = vrcp.f32 %v2081_v59  ;;  %v2083_v29 = vadd.f32 1.0, %v7587_v58  ;;  %v6861_v44 = vpack.c.bf16 %v4445_v15, %v4444_v12  ;;  %v10283_v59 = vld [vmem:[#allocation65_spill] sm:$0xff]  ;;  %v10284_v15 = vld [vmem:[#allocation66_spill] sm:$0xff] }
 0xd4f   : > { %7600 = vrcp.f32 %v2082_v22  ;;  %v2084_v20 = vadd.f32 1.0, %v7589_v60  ;;  %v4424_v60 = vld [vmem:[#allocation27 + $0x30] sm:$0xff] }
 0xd50   : > { %6137 = vmatmul.mubr.msk.f32.gmra.mrb[50].mxu0 %vm2173_vm2, %v3850_v23  ;;  %7602 = vrcp.f32 %v2083_v29  ;;  %v6873_v23 = vpack.c.bf16 %v4419_v1, %v4418_v2  ;;  %v4425_v29 = vld [vmem:[#allocation27 + $0x38] sm:$0xff] }
 0xd51   : > { %6139 = vmatprep.mubr.msk.f32.mxu0 %vm2173_vm2, %v3852_v62  ;;  %6848 = vmatpush3.bf16.msra.mxu0 %v6845_v47  ;;  %v7591_v62 = vpop.eup %7590  ;;  %7604 = vrcp.f32 %v2084_v20  ;;  %v10286_v27 = vld [vmem:[#allocation62_spill] sm:$0xff]  ;;  %v6885_v38 = vpack.c.bf16 %v4425_v29, %v4424_v60 }
 0xd52   : > { %6850 = vmatprep.subr.bf16.mxu0 %v6849_v30  ;;  %v1739_v6 = vadd.f32 1.0, %v7591_v62 }
 0xd54   : > { %6140 = vmatmul.mubr.msk.f32.gmra.mrb[52].mxu0 %vm2173_vm2, %v3854_v14  ;;  %7606 = vrcp.f32 %v1739_v6  ;;  %v10280_v14 = vld [vmem:[#allocation64_spill] sm:$0xff] }
 0xd55   : > { %6142 = vmatprep.mubr.msk.f32.mxu0 %vm2173_vm2, %v3856_v43  ;;  %6852 = vmatpush3.bf16.msra.mxu0 %v6849_v30  ;;  %v7593_v7 = vpop.eup %7592  ;;  %v4426_v6 = vld [vmem:[#allocation27 + $0x40] sm:$0xff] }
 0xd56   : > { %6854 = vmatprep.subr.bf16.mxu0 %v6853_v37  ;;  %v7595_v43 = vpop.eup %7594  ;;  %v2110_v50 = vsub.f32 1.0, %v7593_v7  ;;  %v2102_v13 = vmul.f32 %v7593_v7, %v10277_v4 }
 0xd57   : > { %v7597_v18 = vpop.eup %7596  ;;  %v2111_v47 = vsub.f32 1.0, %v7595_v43  ;;  %v2103_v30 = vmul.f32 %v7595_v43, %v10278_v52 }
 0xd58   : > { %6143 = vmatmul.mubr.msk.f32.gmra.mrb[54].mxu0 %vm2173_vm2, %v3858_v17  ;;  %v7599_v61 = vpop.eup %7598  ;;  %v2118_v9 = vmul.f32 %v2110_v50, %v9370_v34  ;;  %v2112_v42 = vsub.f32 1.0, %v7597_v18  ;;  %v2104_v63 = vmul.f32 %v7597_v18, %v10281_v46  ;;  %v4427_v50 = vld [vmem:[#allocation27 + $0x48] sm:$0xff] }
 0xd59   : > { %6856 = vmatpush3.bf16.msra.mxu0 %v6853_v37  ;;  %6241 = vmatprep.mubr.f32.mxu0 %v2125_v26  ;;  %v7601_v32 = vpop.eup %7600  ;;  %v2119_v8 = vmul.f32 %v2111_v47, %v9374_v40  ;;  %v2113_v0 = vsub.f32 1.0, %v7599_v61  ;;  %v4423_v37 = vld [vmem:[#allocation27 + $0x28] sm:$0xff]  ;;  %v2105_v16 = vmul.f32 %v7599_v61, %v10282_v51  ;;  %v6889_v47 = vpack.c.bf16 %v4427_v50, %v4426_v6 }
 0xd5a   : > { %6858 = vmatprep.subr.bf16.mxu0 %v6857_v39  ;;  %v7603_v5 = vpop.eup %7602  ;;  %v2126_v10 = vadd.f32 %v2118_v9, %v2102_v13  ;;  %v2120_v28 = vmul.f32 %v2112_v42, %v10279_v45  ;;  %v2114_v53 = vsub.f32 1.0, %v7601_v32  ;;  %v6881_v58 = vpack.c.bf16 %v4423_v37, %v4422_v25  ;;  %v4428_v9 = vld [vmem:[#allocation27 + $0x50] sm:$0xff]  ;;  %v4430_v42 = vld [vmem:[#allocation27 + $0x60] sm:$0xff] }
 0xd5b   : > { %v7605_v57 = vpop.eup %7604  ;;  %v2127_v19 = vadd.f32 %v2119_v8, %v2103_v30  ;;  %v2121_v54 = vmul.f32 %v2113_v0, %v10280_v14  ;;  %v2115_v56 = vsub.f32 1.0, %v7603_v5  ;;  %v2107_v62 = vmul.f32 %v7603_v5, %v10286_v27 }
 0xd5c   : > { %v2128_v3 = vadd.f32 %v2120_v28, %v2104_v63  ;;  %v2116_v17 = vsub.f32 1.0, %v7605_v57  ;;  %v7432_v63 = vpop.permute.xlu0 %7431 }
 0xd5d   : > { %6860 = vmatpush3.bf16.msra.mxu0 %v6857_v39  ;;  %v2122_v39 = vmul.f32 %v2114_v53, %v10283_v59  ;;  %v2129_v12 = vadd.f32 %v2121_v54, %v2105_v16  ;;  %v2123_v22 = vmul.f32 %v2115_v56, %v10284_v15 }
 0xd5e   : > { %6862 = vmatprep.subr.bf16.mxu0 %v6861_v44  ;;  %v9940_v41 = vpop.eup %7606 }
 0xd5f   : > { %v9944_v26 = vsub.f32 1.0, %v9940_v41  ;;  %v2131_v43 = vadd.f32 %v2123_v22, %v2107_v62  ;;  %v1742_v2 = vmul.f32 %v9940_v41, %v9166_v36  ;;  %v6901_v36 = vpack.c.bf16 %v4433_v35, %v4432_v24 }
 0xd60   : > { %v1743_v13 = vmul.f32 %v9940_v41, %v10277_v4  ;;  %v1744_v30 = vmul.f32 %v9940_v41, %v10278_v52  ;;  %v7442_v16 = vpop.permute.xlu0 %7441 }
 0xd61   : > { %6864 = vmatpush3.bf16.msra.mxu0 %v6861_v44  ;;  %v10285_v44 = vld [vmem:[#allocation59_spill] sm:$0xff]  ;;  %v1751_v49 = vmul.f32 %v9944_v26, %v9368_v31  ;;  %v1752_v0 = vmul.f32 %v9944_v26, %v9370_v34  ;;  %v1753_v5 = vmul.f32 %v9944_v26, %v9374_v40  ;;  %v1754_v28 = vmul.f32 %v9944_v26, %v10279_v45 }
 0xd62   : > { %6866 = vmatprep.subr.bf16.mxu0 %v6865_v55  ;;  %v2106_v21 = vmul.f32 %v7601_v32, %v10285_v44  ;;  %v4431_v32 = vld [vmem:[#allocation27 + $0x68] sm:$0xff]  ;;  %v1745_v34 = vmul.f32 %v9940_v41, %v10281_v46  ;;  %v1746_v40 = vmul.f32 %v9940_v41, %v10282_v51  ;;  %v1756_v4 = vmul.f32 %v9944_v26, %v10283_v59  ;;  %v7427_v51 = vpop.permute.xlu1 %7426 }
 0xd63   : > { %v1759_v61 = vadd.f32 %v1751_v49, %v1742_v2  ;;  %v6897_v8 = vpack.c.bf16 %v4431_v32, %v4430_v42  ;;  %v1761_v53 = vadd.f32 %v1753_v5, %v1744_v30 }
 0xd64   : > { %v2130_v20 = vadd.f32 %v2122_v39, %v2106_v21  ;;  %v1762_v52 = vadd.f32 %v1754_v28, %v1745_v34 }
 0xd65   : > { %6868 = vmatpush3.bf16.msra.mxu0 %v6865_v55  ;;  %v10287_v55 = vld [vmem:[#allocation67_spill] sm:$0xff] }
 0xd66   : > { %6870 = vmatprep.subr.bf16.mxu0 %v6869_v33  ;;  %v2124_v7 = vmul.f32 %v2116_v17, %v10287_v55  ;;  %v1758_v54 = vmul.f32 %v9944_v26, %v10287_v55  ;;  %v7428_v17 = vunpack.i.l.bf16 %v7427_v51 }
 0xd69   : > { %6872 = vmatpush3.bf16.msra.mxu0 %v6869_v33  ;;  %v10288_v33 = vld [vmem:[#allocation61_spill] sm:$0xff] }
 0xd6a   : > { %6874 = vmatprep.subr.bf16.mxu0 %v6873_v23  ;;  %v2108_v18 = vmul.f32 %v7605_v57, %v10288_v33  ;;  %v1757_v57 = vmul.f32 %v9944_v26, %v10284_v15  ;;  %v1749_v56 = vmul.f32 %v9940_v41, %v10288_v33 }
 0xd6c   : > { %6242 = vmatmul.mubr.f32.vlgmr.msra.gmra.mrb[56].mxu0 %v2126_v10  ;;  %v2132_v1 = vadd.f32 %v2124_v7, %v2108_v18  ;;  %v1760_v10 = vadd.f32 %v1752_v0, %v1743_v13  ;;  %v1766_v46 = vadd.f32 %v1758_v54, %v1749_v56  ;;  %v7444_v7 = vunpack.i.h.bf16 %v7442_v16 }
 0xd6d   : > { %6244 = vmatprep.mubr.f32.mxu0 %v2127_v19  ;;  %6876 = vmatpush3.bf16.msra.mxu0 %v6873_v23  ;;  %v4429_v23 = vld [vmem:[#allocation27 + $0x58] sm:$0xff]  ;;  %v1747_v19 = vmul.f32 %v9940_v41, %v10285_v44  ;;  %v7433_v44 = vunpack.i.l.bf16 %v7432_v63 }
 0xd6e   : > { %6878 = vmatprep.subr.bf16.mxu0 %v6877_v11  ;;  %v6893_v31 = vpack.c.bf16 %v4429_v23, %v4428_v9 }
 0xd6f   : > { %v1764_v25 = vadd.f32 %v1756_v4, %v1747_v19 }
 0xd70   : > { %6245 = vmatmul.mubr.f32.gmra.mrb[58].mxu0 %v2128_v3  ;;  %v7437_v3 = vpop.permute.xlu1 %7436 }
 0xd71   : > { %6247 = vmatprep.mubr.f32.mxu0 %v2129_v12  ;;  %6880 = vmatpush3.bf16.msra.mxu0 %v6877_v11  ;;  %v1755_v11 = vmul.f32 %v9944_v26, %v10280_v14  ;;  %v1748_v14 = vmul.f32 %v9940_v41, %v10286_v27  ;;  %v7434_v41 = vunpack.i.h.bf16 %v7432_v63  ;;  %v7439_v62 = vunpack.i.h.bf16 %v7437_v3 }
 0xd72   : > { %6882 = vmatprep.subr.bf16.mxu0 %v6881_v58 }
 0xd73   : > { %v1763_v45 = vadd.f32 %v1755_v11, %v1746_v40  ;;  %v1765_v37 = vadd.f32 %v1757_v57, %v1748_v14  ;;  %v6809_v27 = vpack.c.bf16 %v7434_v41, %v7433_v44 }
 0xd74   : > { %6248 = vmatmul.mubr.f32.gmra.mrb[60].mxu0 %v2130_v20  ;;  %v7438_v20 = vunpack.i.l.bf16 %v7437_v3 }
 0xd75   : > { %6250 = vmatprep.mubr.f32.mxu0 %v2131_v43  ;;  %6884 = vmatpush3.bf16.msra.mxu0 %v6881_v58  ;;  %v7429_v58 = vunpack.i.h.bf16 %v7427_v51 }
 0xd76   : > { %6886 = vmatprep.subr.bf16.mxu0 %v6885_v38  ;;  %v6813_v55 = vpack.c.bf16 %v7439_v62, %v7438_v20 }
 0xd77   : > { %v6805_v29 = vpack.c.bf16 %v7429_v58, %v7428_v17  ;;  %v7686_v17 = vld [vmem:[#allocation3 + $0xc8] sm:$0xff] }
 0xd78   : > { %6251 = vmatmul.mubr.f32.gmra.mrb[62].mxu0 %v2132_v1 }
 0xd79   : > { %6888 = vmatpush3.bf16.msra.mxu0 %v6885_v38  ;;  %6285 = vmatprep.mubr.f32.mxu0 %v1759_v61  ;;  %v7443_v38 = vunpack.i.l.bf16 %v7442_v16 }
 0xd7a   : > { %6890 = vmatprep.subr.bf16.mxu0 %v6889_v47 }
 0xd7b   : > { %v6817_v43 = vpack.c.bf16 %v7444_v7, %v7443_v38 }
 0xd7d   : > { %6892 = vmatpush3.bf16.msra.mxu0 %v6889_v47 }
 0xd7e   : > { %6894 = vmatprep.subr.bf16.mxu0 %v6893_v31 }
 0xd81   : > { %6896 = vmatpush3.bf16.msra.mxu0 %v6893_v31 }
 0xd82   : > { %6898 = vmatprep.subr.bf16.mxu0 %v6897_v8 }
 0xd85   : > { %6900 = vmatpush3.bf16.msra.mxu0 %v6897_v8 }
 0xd86   : > { %6902 = vmatprep.subr.bf16.mxu0 %v6901_v36  ;;  %v3673_v39 = vpop.xlane.xlu1 %3672 }
 0xd87   : > { %v3671_v59 = vpop.xlane.xlu0 %3670 }
 0xd88   : > { %7608 = vrcp.f32 %v3671_v59  ;;  %v7684_v59 = vld [vmem:[#allocation3 + $0xe8] sm:$0xff] }
 0xd89   : > { %6904 = vmatpush3.bf16.msra.mxu0 %v6901_v36  ;;  %7610 = vrcp.f32 %v3673_v39  ;;  %v7685_v39 = vld [vmem:[#allocation3 + $0xf8] sm:$0xff] }
 0xd8a   : > { %v7455_v58 = vpack.i.bf16 %v7685_v39, %v7684_v59 }
 0xd8b   : > { %v7447_v49 = vpop.permute.xlu0 %7446 }
 0xd8c   : > { %6286 = vmatmul.mubr.f32.vlgmr.msra.gmra.mrb[56].mxu0 %v1760_v10  ;;  %v7449_v6 = vunpack.i.h.bf16 %v7447_v49  ;;  %v7448_v50 = vunpack.i.l.bf16 %v7447_v49 }
 0xd8d   : > { %6288 = vmatprep.mubr.f32.mxu0 %v1761_v53 }
 0xd8e   : > { %v6821_v33 = vpack.c.bf16 %v7449_v6, %v7448_v50 }
 0xd90   : > { %6289 = vmatmul.mubr.f32.gmra.mrb[58].mxu0 %v1762_v52 }
 0xd91   : > { %6291 = vmatprep.mubr.f32.mxu0 %v1763_v45 }
 0xd92   : > { %v7609_v12 = vpop.eup %7608 }
 0xd93   : > { %v7611_v22 = vpop.eup %7610 }
 0xd94   : > { %6292 = vmatmul.mubr.f32.gmra.mrb[60].mxu0 %v1764_v25 }
 0xd95   : > { %6294 = vmatprep.mubr.f32.mxu0 %v1765_v37 }
 0xd98   : > { %6295 = vmatmul.mubr.f32.gmra.mrb[62].mxu0 %v1766_v46 }
 0xdc0   : > { %v3681_v2 = vpop.xlane.xlu1 %3680 }
 0xdc4   : > { %v3685_v47 = vpop.xlane.xlu1 %3684 }
 0xdc8   : > { %v3683_v61 = vpop.xlane.xlu1 %3682 }
 0xdce   : > { %v6071_v26 = vpop.f32.mrb[40].mxu0 }
 0xdcf   : > { %v3631_v15 = vpop.f32.mrb[41].mxu0  ;;  %v3695_v21 = vmul.f32 %v7611_v22, %v6071_v26  ;;  %v7687_v26 = vld [vmem:[#allocation3 + $0xd8] sm:$0xff] }
 0xdd0   : > { %v3694_v60 = vmul.f32 %v7609_v12, %v3631_v15  ;;  %v7450_v12 = vpack.i.bf16 %v7687_v26, %v7686_v17 }
 0xdd2   : > { %6089 = vmatprep.mubr.msk.f32.mxu1 %vm2173_vm2, %v3694_v60 }
 0xdd3   : > { %6090 = vmatmul.mubr.msk.f32.vlgmr.msra.gmra.mrb[32].mxu1 %vm2173_vm2, %v3695_v21 }
 0xdd4   : > { %6804 = vmatpush3.bf16.msra.mxu1 %v9922_v48  ;;  %v3677_v48 = vpop.xlane.xlu0 %3676 }
 0xdd5   : > { %6806 = vmatprep.subr.bf16.mxu1 %v6805_v29 }
 0xdd8   : > { %6808 = vmatpush3.bf16.msra.mxu1 %v6805_v29  ;;  %v3675_v18 = vpop.xlane.xlu0 %3674 }
 0xdd9   : > { %6810 = vmatprep.subr.bf16.mxu1 %v6809_v27  ;;  %7612 = vrcp.f32 %v3675_v18 }
 0xdda   : > { %7614 = vrcp.f32 %v3677_v48 }
 0xddc   : > { %6812 = vmatpush3.bf16.msra.mxu1 %v6809_v27  ;;  %v3679_v1 = vpop.xlane.xlu0 %3678 }
 0xddd   : > { %6814 = vmatprep.subr.bf16.mxu1 %v6813_v55  ;;  %7616 = vrcp.f32 %v3679_v1 }
 0xdde   : > { %7618 = vrcp.f32 %v3681_v2 }
 0xddf   : > { %7620 = vrcp.f32 %v3683_v61 }
 0xde0   : > { %6816 = vmatpush3.bf16.msra.mxu1 %v6813_v55  ;;  %7622 = vrcp.f32 %v3685_v47 }
 0xde1   : > { %6818 = vmatprep.subr.bf16.mxu1 %v6817_v43 }
 0xde3   : > { %v7613_v23 = vpop.eup %7612 }
 0xde4   : > { %6820 = vmatpush3.bf16.msra.mxu1 %v6817_v43  ;;  %v7615_v42 = vpop.eup %7614 }
 0xde5   : > { %6822 = vmatprep.subr.bf16.mxu1 %v6821_v33 }
 0xde7   : > { %v7617_v35 = vpop.eup %7616 }
 0xde8   : > { %6824 = vmatpush3.bf16.msra.mxu1 %v6821_v33  ;;  %v7619_v0 = vpop.eup %7618 }
 0xde9   : > { %v7621_v10 = vpop.eup %7620 }
 0xdea   : > { %v7623_v11 = vpop.eup %7622 }
 0xe03   : > { %v6074_v9 = vpop.f32.mrb[42].mxu0 }
 0xe04   : > { %v3641_v31 = vpop.f32.mrb[43].mxu0  ;;  %v3697_v8 = vmul.f32 %v7615_v42, %v6074_v9 }
 0xe05   : > { %v3696_v32 = vmul.f32 %v7613_v23, %v3641_v31 }
 0xe07   : > { %v6077_v24 = vpop.f32.mrb[44].mxu0  ;;  %6092 = vmatprep.mubr.msk.f32.mxu1 %vm2173_vm2, %v3696_v32 }
 0xe08   : > { %v3651_v36 = vpop.f32.mrb[45].mxu0  ;;  %6093 = vmatmul.mubr.msk.f32.gmra.mrb[34].mxu1 %vm2173_vm2, %v3697_v8  ;;  %v3699_v13 = vmul.f32 %v7619_v0, %v6077_v24 }
 0xe09   : > { %v3698_v5 = vmul.f32 %v7617_v35, %v3651_v36 }
 0xe0b   : > { %6095 = vmatprep.mubr.msk.f32.mxu1 %vm2173_vm2, %v3698_v5 }
 0xe0c   : > { %6096 = vmatmul.mubr.msk.f32.gmra.mrb[36].mxu1 %vm2173_vm2, %v3699_v13 }
 0xe0e   : > { %v6080_v30 = vpop.f32.mrb[46].mxu0 }
 0xe0f   : > { %v3661_v28 = vpop.f32.mrb[47].mxu0  ;;  %v3701_v34 = vmul.f32 %v7623_v11, %v6080_v30 }
 0xe10   : > { %v3700_v53 = vmul.f32 %v7621_v10, %v3661_v28 }
 0xe12   : > { %6098 = vmatprep.mubr.msk.f32.mxu1 %vm2173_vm2, %v3700_v53 }
 0xe13   : > { %6099 = vmatmul.mubr.msk.f32.gmra.mrb[38].mxu1 %vm2173_vm2, %v3701_v34 }
 0xe1f   : > { %v6135_v40 = vpop.f32.mrb[48].mxu0 }
 0xe20   : > { %v4045_v4 = vmul.f32 0.17677669, %v6135_v40  ;;  %v4005_v52 = vpop.f32.mrb[49].mxu0 }
 0xe21   : > { %v4044_v57 = vmul.f32 0.17677669, %v4005_v52 }
 0xe22   : > { %4054 = vmax.xlane.f32.xlu0 %v4045_v4 }
 0xe23   : > { %4052 = vmax.xlane.f32.xlu1 %v4044_v57  ;;  %v6138_v45 = vpop.f32.mrb[50].mxu0 }
 0xe24   : > { %v4047_v19 = vmul.f32 0.17677669, %v6138_v45  ;;  %v4015_v14 = vpop.f32.mrb[51].mxu0 }
 0xe25   : > { %v4046_v56 = vmul.f32 0.17677669, %v4015_v14  ;;  %v4277_v14 = vld [vmem:[#allocation24 + $0x60] sm:$0xff] }
 0xe27   : > { %4058 = vmax.xlane.f32.xlu1 %v4047_v19  ;;  %v6141_v54 = vpop.f32.mrb[52].mxu0 }
 0xe28   : > { %v4049_v25 = vmul.f32 0.17677669, %v6141_v54  ;;  %v4025_v37 = vpop.f32.mrb[53].mxu0  ;;  %v4278_v54 = vld [vmem:[#allocation24 + $0x68] sm:$0xff] }
 0xe29   : > { %v4048_v51 = vmul.f32 0.17677669, %v4025_v37  ;;  %v6833_v37 = vpack.c.bf16 %v4278_v54, %v4277_v14 }
 0xe2a   : > { %4062 = vmax.xlane.f32.xlu0 %v4049_v25 }
 0xe2b   : > { %4056 = vmax.xlane.f32.xlu1 %v4046_v56  ;;  %v6144_v46 = vpop.f32.mrb[54].mxu0 }
 0xe2c   : > { %v4035_v63 = vpop.f32.mrb[55].mxu0  ;;  %v4051_v16 = vmul.f32 0.17677669, %v6144_v46 }
 0xe2d   : > { %v4050_v3 = vmul.f32 0.17677669, %v4035_v63 }
 0xe2f   : > { %4060 = vmax.xlane.f32.xlu1 %v4048_v51 }
 0xe33   : > { %4066 = vmax.xlane.f32.xlu1 %v4051_v16 }
 0xe37   : > { %4064 = vmax.xlane.f32.xlu1 %v4050_v3 }
 0xe40   : > { %7456 = vrot.lane.b32.xlu0 %v7455_v58, %s8324_s17 }
 0xe48   : > { %7451 = vrot.lane.b32.xlu1 %v7450_v12, %s8324_s17  ;;  %s8146_s17 = scalar_lea.vmem %s8145_s21, 2048 }
 0xe49   : > { %p8148_p6 = scmp.lt.s32.totalorder %s8146_s17, %s8140_s4 }
 0xe4b   : > { %p8149_p1 = por %p8148_p6, %p8147_p5 }
 0xe4d   : > { %p8150_p4 = pnand %p8149_p1, %p8143_p11 }
 0xe5f   : > { %v9994_v15 = vpop.f32.mrb[56].mxu0 }
 0xe60   : > { %v9996_v22 = vpop.f32.mrb[57].mxu0 }
 0xe63   : > { %v9998_v60 = vpop.f32.mrb[58].mxu0 }
 0xe64   : > { %v10000_v29 = vpop.f32.mrb[59].mxu0 }
 0xe67   : > { %v10002_v41 = vpop.f32.mrb[60].mxu0 }
 0xe68   : > { %v10004_v44 = vpop.f32.mrb[61].mxu0 }
 0xe6b   : > { %v10006_v21 = vpop.f32.mrb[62].mxu0 }
 0xe6c   : > { %v10008_v27 = vpop.f32.mrb[63].mxu0 }
 0xeaf   : > { %v4055_v62 = vpop.xlane.xlu0 %4054 }
 0xeb0   : > { %v4069_v20 = vsub.f32 %v4045_v4, %v4055_v62  ;;  %v4053_v55 = vpop.xlane.xlu1 %4052 }
 0xeb1   : > { %v4068_v7 = vsub.f32 %v4044_v57, %v4053_v55 }
 0xeb2   : > { %v4078_v38 = vmul.f32 1.442695, %v4069_v20 }
 0xeb3   : > { %v4076_v49 = vmul.f32 1.442695, %v4068_v7 }
 0xeb4   : > { %7624 = vpow2.f32 %v4078_v38  ;;  %v4059_v43 = vpop.xlane.xlu1 %4058 }
 0xeb5   : > { %7626 = vpow2.f32 %v4076_v49  ;;  %v4071_v6 = vsub.f32 %v4047_v19, %v4059_v43 }
 0xeb7   : > { %v4082_v50 = vmul.f32 1.442695, %v4071_v6  ;;  %v4063_v33 = vpop.xlane.xlu0 %4062 }
 0xeb8   : > { %v4057_v48 = vpop.xlane.xlu1 %4056  ;;  %v4073_v18 = vsub.f32 %v4049_v25, %v4063_v33  ;;  %v4279_v25 = vld [vmem:[#allocation24 + $0x70] sm:$0xff] }
 0xeb9   : > { %7628 = vpow2.f32 %v4082_v50  ;;  %v4070_v2 = vsub.f32 %v4046_v56, %v4057_v48  ;;  %v4280_v56 = vld [vmem:[#allocation24 + $0x78] sm:$0xff] }
 0xeba   : > { %v4086_v61 = vmul.f32 1.442695, %v4073_v18  ;;  %v6837_v46 = vpack.c.bf16 %v4280_v56, %v4279_v25 }
 0xebb   : > { %v4080_v1 = vmul.f32 1.442695, %v4070_v2  ;;  %v7457_v0 = vpop.permute.xlu0 %7456 }
 0xebc   : > { %v4061_v47 = vpop.xlane.xlu1 %4060  ;;  %v7459_v10 = vunpack.i.h.bf16 %v7457_v0  ;;  %v7458_v28 = vunpack.i.l.bf16 %v7457_v0 }
 0xebd   : > { %7630 = vpow2.f32 %v4080_v1  ;;  %v4072_v9 = vsub.f32 %v4048_v51, %v4061_v47 }
 0xebe   : > { %v7625_v23 = vpop.eup %7624  ;;  %7632 = vpow2.f32 %v4086_v61  ;;  %v6829_v52 = vpack.c.bf16 %v7459_v10, %v7458_v28 }
 0xebf   : > { %v7627_v31 = vpop.eup %7626  ;;  %4247 = vadd.xlane.f32.xlu1 %v7625_v23  ;;  %v4084_v42 = vmul.f32 1.442695, %v4072_v9 }
 0xec0   : > { %6177 = vmatprep.mubr.f32.mxu1 %v7627_v31  ;;  %4245 = vadd.xlane.f32.xlu0 %v7627_v31  ;;  %v4067_v32 = vpop.xlane.xlu1 %4066 }
 0xec1   : > { %v4075_v8 = vsub.f32 %v4051_v16, %v4067_v32  ;;  %7634 = vpow2.f32 %v4084_v42 }
 0xec3   : > { %v7629_v24 = vpop.eup %7628  ;;  %v4090_v35 = vmul.f32 1.442695, %v4075_v8 }
 0xec4   : > { %4251 = vadd.xlane.f32.xlu0 %v7629_v24  ;;  %v4065_v36 = vpop.xlane.xlu1 %4064 }
 0xec5   : > { %7636 = vpow2.f32 %v4090_v35  ;;  %v4074_v5 = vsub.f32 %v4050_v3, %v4065_v36  ;;  %v5169_v35 = vld [vmem:[#allocation30] ss:$0 sm:$0xff] }
 0xec6   : > { %v4667_v28 = vadd.f32 %v5169_v35, %v9996_v22  ;;  %v4669_v14 = vadd.f32 %v5169_v35, %v10000_v29  ;;  %v4671_v29 = vadd.f32 %v5169_v35, %v10004_v44  ;;  %v4673_v44 = vadd.f32 %v5169_v35, %v10008_v27 }
 0xec7   : > { %v7631_v13 = vpop.eup %7630  ;;  %v4088_v30 = vmul.f32 1.442695, %v4074_v5 }
 0xec8   : > { %4249 = vadd.xlane.f32.xlu0 %v7631_v13  ;;  %v7452_v11 = vpop.permute.xlu1 %7451  ;;  %v7633_v40 = vpop.eup %7632 }
 0xec9   : > { %7638 = vpow2.f32 %v4088_v30  ;;  %v7454_v53 = vunpack.i.h.bf16 %v7452_v11  ;;  %v7453_v34 = vunpack.i.l.bf16 %v7452_v11  ;;  %v4668_v30 = vadd.f32 %v9994_v15, %v5169_v35 }
 0xecb   : > { %v6825_v4 = vpack.c.bf16 %v7454_v53, %v7453_v34  ;;  %v7635_v57 = vpop.eup %7634 }
 0xecc   : > { %4255 = vadd.xlane.f32.xlu0 %v7633_v40 }
 0xecd   : > { %6826 = vmatprep.subr.bf16.mxu1 %v6825_v4 }
 0xece   : > { %6828 = vmatpush3.bf16.msra.mxu1 %v6825_v4 }
 0xecf   : > { %v7637_v45 = vpop.eup %7636  ;;  %6830 = vmatprep.subr.bf16.mxu1 %v6829_v52 }
 0xed0   : > { %4253 = vadd.xlane.f32.xlu0 %v7635_v57  ;;  %4259 = vadd.xlane.f32.xlu1 %v7637_v45 }
 0xed2   : > { %6832 = vmatpush3.bf16.msra.mxu1 %v6829_v52 }
 0xed3   : > { %v7639_v19 = vpop.eup %7638  ;;  %6834 = vmatprep.subr.bf16.mxu1 %v6833_v37 }
 0xed4   : > { %4257 = vadd.xlane.f32.xlu0 %v7639_v19 }
 0xed5   : > { %6178 = vmatmul.mubr.f32.vlgmr.msra.gmra.mrb[56].mxu1 %v7625_v23 }
 0xed6   : > { %6180 = vmatprep.mubr.f32.mxu1 %v7631_v13  ;;  %6836 = vmatpush3.bf16.msra.mxu1 %v6833_v37 }
 0xed7   : > { %6838 = vmatprep.subr.bf16.mxu1 %v6837_v46 }
 0xed9   : > { %6181 = vmatmul.mubr.f32.gmra.mrb[58].mxu1 %v7629_v24  ;;  %v5040_v24 = vld [vmem:[#allocation26] ss:$0 sm:$0xff] }
 0xeda   : > { %6183 = vmatprep.mubr.f32.mxu1 %v7635_v57  ;;  %6840 = vmatpush3.bf16.msra.mxu1 %v6837_v46 }
 0xedd   : > { %6184 = vmatmul.mubr.f32.gmra.mrb[60].mxu1 %v7633_v40 }
 0xede   : > { %6186 = vmatprep.mubr.f32.mxu1 %v7639_v19 }
 0xee1   : > { %6187 = vmatmul.mubr.f32.gmra.mrb[62].mxu1 %v7637_v45  ;;  %v4670_v45 = vadd.f32 %v9998_v60, %v5169_v35 }
 0xf4c   : > { %v4248_v59 = vpop.xlane.xlu1 %4247 }
 0xf4d   : > { %v4246_v63 = vpop.xlane.xlu0 %4245 }
 0xf4e   : > { %7640 = vrcp.f32 %v4246_v63  ;;  %v4672_v63 = vadd.f32 %v10002_v41, %v5169_v35  ;;  %v4674_v41 = vadd.f32 %v10006_v21, %v5169_v35 }
 0xf4f   : > { %7642 = vrcp.f32 %v4248_v59 }
 0xf51   : > { %v4252_v51 = vpop.xlane.xlu0 %4251 }
 0xf55   : > { %v4250_v16 = vpop.xlane.xlu0 %4249 }
 0xf56   : > { %7644 = vrcp.f32 %v4250_v16 }
 0xf57   : > { %7646 = vrcp.f32 %v4252_v51 }
 0xf58   : > { %v7641_v26 = vpop.eup %7640 }
 0xf59   : > { %v4256_v3 = vpop.xlane.xlu0 %4255  ;;  %v7643_v20 = vpop.eup %7642 }
 0xf5d   : > { %v4254_v39 = vpop.xlane.xlu0 %4253  ;;  %v4260_v12 = vpop.xlane.xlu1 %4259 }
 0xf5e   : > { %7648 = vrcp.f32 %v4254_v39 }
 0xf5f   : > { %7650 = vrcp.f32 %v4256_v3 }
 0xf60   : > { %v7645_v49 = vpop.eup %7644 }
 0xf61   : > { %v4258_v58 = vpop.xlane.xlu0 %4257  ;;  %v7647_v6 = vpop.eup %7646 }
 0xf62   : > { %7652 = vrcp.f32 %v4258_v58 }
 0xf63   : > { %7654 = vrcp.f32 %v4260_v12 }
 0xf68   : > { %v7649_v18 = vpop.eup %7648 }
 0xf69   : > { %v7651_v1 = vpop.eup %7650 }
 0xf6c   : > { %v7653_v23 = vpop.eup %7652 }
 0xf6d   : > { %v7655_v42 = vpop.eup %7654 }
 0xfa8   : > { %v6179_v17 = vpop.f32.mrb[56].mxu1 }
 0xfa9   : > { %v4206_v62 = vpop.f32.mrb[57].mxu1  ;;  %v4270_v7 = vmul.f32 %v7643_v20, %v6179_v17 }
 0xfaa   : > { %v4269_v55 = vmul.f32 %v7641_v26, %v4206_v62 }
 0xfac   : > { %v6182_v38 = vpop.f32.mrb[58].mxu1  ;;  %6197 = vmatprep.mubr.msk.f32.mxu1 %vm2173_vm2, %v4269_v55 }
 0xfad   : > { %v4216_v43 = vpop.f32.mrb[59].mxu1  ;;  %6198 = vmatmul.mubr.msk.f32.vlgmr.msra.gmra.mrb[32].mxu1 %vm2173_vm2, %v4270_v7  ;;  %v4272_v33 = vmul.f32 %v7647_v6, %v6182_v38 }
 0xfae   : > { %v4271_v50 = vmul.f32 %v7645_v49, %v4216_v43 }
 0xfb0   : > { %v6185_v48 = vpop.f32.mrb[60].mxu1  ;;  %6200 = vmatprep.mubr.msk.f32.mxu1 %vm2173_vm2, %v4271_v50 }
 0xfb1   : > { %v4226_v2 = vpop.f32.mrb[61].mxu1  ;;  %6201 = vmatmul.mubr.msk.f32.gmra.mrb[34].mxu1 %vm2173_vm2, %v4272_v33  ;;  %v4274_v61 = vmul.f32 %v7651_v1, %v6185_v48 }
 0xfb2   : > { %v4273_v47 = vmul.f32 %v7649_v18, %v4226_v2 }
 0xfb4   : > { %v6188_v9 = vpop.f32.mrb[62].mxu1  ;;  %6203 = vmatprep.mubr.msk.f32.mxu1 %vm2173_vm2, %v4273_v47 }
 0xfb5   : > { %v4236_v31 = vpop.f32.mrb[63].mxu1  ;;  %6204 = vmatmul.mubr.msk.f32.gmra.mrb[36].mxu1 %vm2173_vm2, %v4274_v61  ;;  %v4276_v8 = vmul.f32 %v7655_v42, %v6188_v9 }
 0xfb6   : > { %v4275_v32 = vmul.f32 %v7653_v23, %v4236_v31 }
 0xfb8   : > { %6206 = vmatprep.mubr.msk.f32.mxu1 %vm2173_vm2, %v4275_v32 }
 0xfb9   : > { %6207 = vmatmul.mubr.msk.f32.gmra.mrb[38].mxu1 %vm2173_vm2, %v4276_v8 }
0x1080   : > { %v6199_v36 = vpop.f32.mrb[32].mxu1 }
0x1081   : > { %v6921_v0 = vadd.f32 %v6199_v36, %v5040_v24  ;;  %v4371_v5 = vpop.f32.mrb[33].mxu1 }
0x1082   : > { %v6922_v13 = vadd.f32 %v5040_v24, %v4371_v5 }
0x1083   : > { %v4676_v10 = vmul.f32 0.1, %v6921_v0 }
0x1084   : > { %v4675_v11 = vmul.f32 0.1, %v6922_v13  ;;  %v6202_v53 = vpop.f32.mrb[34].mxu1 }
0x1085   : > { %v4684_v34 = vadd.f32 %v4676_v10, %v4668_v30  ;;  %v6923_v40 = vadd.f32 %v6202_v53, %v5040_v24  ;;  %v4381_v4 = vpop.f32.mrb[35].mxu1 }
0x1086   : > { %v4683_v52 = vadd.f32 %v4675_v11, %v4667_v28  ;;  %v6924_v57 = vadd.f32 %v5040_v24, %v4381_v4 }
0x1087   : > { %4692 = vst [vmem:[%s9045_s19 + $0x8] sm:$0xff] %v4684_v34  ;;  %v4678_v19 = vmul.f32 0.1, %v6923_v40 }
0x1088   : > { %4691 = vst [vmem:[%s9045_s19] sm:$0xff] %v4683_v52  ;;  %v4677_v15 = vmul.f32 0.1, %v6924_v57  ;;  %v6205_v54 = vpop.f32.mrb[36].mxu1 }
0x1089   : > { %v4686_v22 = vadd.f32 %v4678_v19, %v4670_v45  ;;  %v6925_v25 = vadd.f32 %v6205_v54, %v5040_v24  ;;  %v4391_v37 = vpop.f32.mrb[37].mxu1 }
0x108a   : > { %v4685_v56 = vadd.f32 %v4677_v15, %v4669_v14  ;;  %v6926_v46 = vadd.f32 %v5040_v24, %v4391_v37 }
0x108b   : > { %4694 = vst [vmem:[%s9045_s19 + $0x18] sm:$0xff] %v4686_v22  ;;  %v4680_v60 = vmul.f32 0.1, %v6925_v25 }
0x108c   : > { %4693 = vst [vmem:[%s9045_s19 + $0x10] sm:$0xff] %v4685_v56  ;;  %v4679_v51 = vmul.f32 0.1, %v6926_v46  ;;  %v6208_v16 = vpop.f32.mrb[38].mxu1 }
0x108d   : > { %v4688_v3 = vadd.f32 %v4680_v60, %v4672_v63  ;;  %v6927_v59 = vadd.f32 %v6208_v16, %v5040_v24  ;;  %v4401_v39 = vpop.f32.mrb[39].mxu1 }
0x108e   : > { %v4687_v58 = vadd.f32 %v4679_v51, %v4671_v29  ;;  %v6928_v17 = vadd.f32 %v5040_v24, %v4401_v39 }
0x108f   : > { %4696 = vst [vmem:[%s9045_s19 + $0x28] sm:$0xff] %v4688_v3  ;;  %v4682_v26 = vmul.f32 0.1, %v6927_v59 }
0x1090   : > { %4695 = vst [vmem:[%s9045_s19 + $0x20] sm:$0xff] %v4687_v58  ;;  %v4681_v12 = vmul.f32 0.1, %v6928_v17 }
0x1091   : > { %v4690_v62 = vadd.f32 %v4682_v26, %v4674_v41 }
0x1092   : > { %v4689_v20 = vadd.f32 %v4681_v12, %v4673_v44 }
0x1093   : > { %4698 = vst [vmem:[%s9045_s19 + $0x38] sm:$0xff] %v4690_v62 }
0x1094   : > { %4697 = vst [vmem:[%s9045_s19 + $0x30] sm:$0xff] %v4689_v20 }
0x1095   : > { %8153 = shalt.err (!%p8150_p4)
}
0x1096   : > { %s8154_s19 = scalar_lea.hbm %s10038_s1, 1024  ;;  %s8158_s12 = scalar_lea.hbm %s10291_s5, 4096 }
0x1097   : > { %p8155_p8 = scmp.ne.s32.totalorder %s10038_s1, %s8154_s19  ;;  %p8159_p3 = scmp.lt.u32.totalorder %s10038_s1, %s10291_s5 }
0x1098   : > { %p8160_p7 = scmp.lt.u32.totalorder %s8158_s12, %s8154_s19  ;;  %p8162_p10 = scmp.lt.u32.totalorder %s8154_s19, %s10038_s1 }
0x1099   : > { %p8156_p0 = pnand %p8155_p8, %p10292_p12 }
0x109a   : > { %p8161_p2 = por %p8160_p7, %p8159_p3 }
0x109b   : > { %p8157_p9 = pneg %p8156_p0 }
0x109c   : > { %p8163_p13 = por %p8162_p10, %p8161_p2 }
0x109e   : > { %p8164_p11 = pnand %p8163_p13, %p8157_p9 }
0x10a0   : > { %8167 = shalt.err (!%p8164_p11)
}
0x10a1   : > { %s8326_s28 = smov 128   ;;  %s8327_s27 = smov 8  }
0x10a2   : > { %7021 = dma.vmem_to_hbm [thread:$0]  (%p10292_p12), %s10040_s29, 1024, %s10038_s1, %s4700_s30, %s8326_s28, %s8326_s28, %s8327_s27  }
0x10a3 PF: > { %s10293_s0 = sld [smem:[#allocation47_spill]]  ;;  %p7106_p5 = scmp.ge.s32.totalorder %s8298_s22, 2 }
0x10a4   : > { %p10294_p6 = scmp.ne.s32.totalorder %s10227_s3, 0 }
0x10a6   : > { %p7074_p1 = pnand %p7106_p5, %p10294_p6 }
0x10a9   : > { %s4730_s26 = sand.u32 1, %s10293_s0  }
0x10aa   : > { %s4731_s4 = scalar_lea.sflag [#allocation8], %s4730_s26 }
0x10ab   : > { %8253 = dma.done.wait (!%p7074_p1), %s4731_s4, 1024  }
0x10ac   : > { %8255 = vsyncadd (!%p7074_p1), %s4731_s4, 4294966272  ;;  %s44_s22 = sadd.s32 1, %s8298_s22   ;;  %s10295_s27 = sld [smem:[#allocation45_spill]] }
0x10ad   : > { %p41_p4 = scmp.ge.s32.totalorder %s44_s22, 6   ;;  %s10296_s28 = sld [smem:[#allocation46_spill]] }
0x10ae   : > { %s10297_s0 = sld [smem:[#allocation48_spill]]  ;;  %s10298_s30 = sld [smem:[#allocation49_spill]] }
0x10af   : > { %s10299_s19 = sld [smem:[#allocation52_spill]]  ;;  %s10300_s1 = sld [smem:[#allocation53_spill]] }
0x10b0   : > { %s10301_s29 = smov %s8933_s10  ;;  %s10302_s18 = smov %s10311_s24 }
0x10b1   : > { %s10303_s21 = smov %s10309_s2  ;;  %43 = sbr.rel (!%p41_p4) target bundleno = 34 (0x22), region = 202 }
0x10b8   :  { %4736 = vsyncpa [#allocation7], 1 }
0x10b9   :  { %4738 = vsyncpa [#allocation7 + $0x1], 1 }
0x10ba   :  { %4739 = vsyncpa [#allocation10], 1 }
0x10bb   :  { %4741 = vsyncpa [#allocation10 + $0x1], 1 }
0x10bc   :  { %4742 = vsyncpa [#allocation13], 1 }
0x10bd   :  { %4743 = vsyncpa [#allocation16], 1 }
0x10be   :  { %4744 = vsyncpa [#allocation19], 1 }
0x10bf   :  { %4745 = vsyncpa [#allocation22], 1 }
0x10c0   :  { %4746 = vsyncpa [#allocation25], 1 }
0x10c1   :  { %4747 = vsyncpa [#allocation28], 1 }
0x10c2   :  { %4748 = vsyncpa [#allocation31], 1 }
0x10c3   :  { %4749 = vsyncpa [#allocation8], 1 }
0x10c4   :  { %4751 = vsyncpa [#allocation8 + $0x1], 1 }

</bundles_post_ra>
